<compile_context>
chip_gen: v5e
topology: v5e:2x2
jax: 0.10.0
libtpu: 0.0.40
codegen_flags: <defaults>
</compile_context>

<pallas_src>
import functools

import jax
import jax.numpy as jnp
from jax.experimental import pallas as pl
from jax.experimental.pallas import tpu as pltpu

# ---------------- synthetic "roberta-base"-style config (small, lane-dense) ----------------
H = 128          # hidden size (stand-in for 768); multiple of 128 -> lane-dense activations
NH = 4           # attention heads
DH = H // NH     # head dim
FF = 512         # intermediate size (stand-in for 3072); multiple of 128
L = 2            # encoder layers (stand-in for 12)
VOCAB = 100
MAX_POS = 32
PAD_IDX = 1      # roberta position-embedding padding_idx
LN_EPS = 1e-5


def _vmem_limit_bytes():
    # Generation-aware scoped-VMEM budget: ~75% of physical, capped at 96 MiB
    # (-> ~96 MiB on v5e/v6e with 128 MiB VMEM, ~48 MiB on v7x with 64 MiB VMEM).
    try:
        cap = pltpu.get_tpu_info().vmem_capacity_bytes
        return min(int(cap * 3 // 4), 96 * 1024 * 1024)
    except Exception:
        return 64 * 1024 * 1024


VMEM_LIMIT = _vmem_limit_bytes()


def _cparams(dimension_semantics):
    return pltpu.CompilerParams(
        dimension_semantics=dimension_semantics,
        vmem_limit_bytes=VMEM_LIMIT,
    )


def _gelu_tanh(y):
    # TODO(synk): HF RoBERTa uses exact erf-GELU; tanh approximation used here (EUP-friendly).
    c = jnp.float32(0.7978845608028654)  # sqrt(2/pi)
    return 0.5 * y * (1.0 + jnp.tanh(c * (y + 0.044715 * y * y * y)))


# ---------------------------- Pallas kernels ----------------------------------
def _layernorm_kernel(x_ref, g_ref, b_ref, o_ref, *, eps):
    x = x_ref[...].astype(jnp.float32)
    mu = jnp.mean(x, axis=-1, keepdims=True)
    var = jnp.mean((x - mu) * (x - mu), axis=-1, keepdims=True)
    y = (x - mu) * jax.lax.rsqrt(var + eps)
    o_ref[...] = (y * g_ref[...] + b_ref[...]).astype(o_ref.dtype)


def layernorm(x, gamma, beta, eps=LN_EPS, out_dtype=jnp.bfloat16):
    """Embeddings layernorm. HBM-bandwidth bound -> large token tile (up to 512 rows)."""
    M, N = x.shape
    TM = M if M <= 512 else 512
    kernel = functools.partial(_layernorm_kernel, eps=eps)
    return pl.pallas_call(
        kernel,
        out_shape=jax.ShapeDtypeStruct((M, N), out_dtype),
        grid=(pl.cdiv(M, TM),),
        in_specs=[
            pl.BlockSpec((TM, N), lambda i: (i, 0)),
            pl.BlockSpec((1, N), lambda i: (0, 0)),
            pl.BlockSpec((1, N), lambda i: (0, 0)),
        ],
        out_specs=pl.BlockSpec((TM, N), lambda i: (i, 0)),
        compiler_params=_cparams(("parallel",)),
    )(x, gamma.reshape(1, N), beta.reshape(1, N))


def _layer_kernel(x_ref, bias_ref,
                  wqkv_ref, bqkv_ref, wo_ref, bo_ref, g1_ref, b1_ref,
                  w1_ref, bb1_ref, w2_ref, bb2_ref, g2_ref, b2_ref,
                  o_ref, *, num_heads, eps):
    """One full encoder layer per grid step (one batch element resident in VMEM):
    QKV -> per-head softmax attention -> single full-K out-proj -> +residual -> LN1
        -> FFN (GELU) -> +residual -> LN2.
    """
    S, Hd = x_ref.shape
    dh = Hd // num_heads
    x_bf = x_ref[...]                               # (S, H) bf16
    x = x_bf.astype(jnp.float32)

    # Fused QKV projection; the Q third of wqkv/bqkv is pre-scaled by 1/sqrt(dh) at init,
    # so no per-head score scaling is needed. Single bf16 cast before the head loop.
    qkv = (jnp.dot(x_bf, wqkv_ref[...], preferred_element_type=jnp.float32)
           + bqkv_ref[...]).astype(jnp.bfloat16)    # (S, 3H) bf16

    # Hoist the additive key-mask broadcast out of the unrolled head loop
    # (JAX does not CSE broadcast_in_dim -> would otherwise be emitted NH times).
    bias_full = jnp.broadcast_to(bias_ref[0], (S, S))   # (S, S) f32, 0 / -1e9

    # TODO(synk): at NH=12 / S=512 scale, move heads onto a grid axis (or reuse explicit VMEM
    # scratch) to bound the live ranges of the per-head (S,S) score/prob temporaries.
    ctx_heads = []
    for h in range(num_heads):                      # unrolled; heads are static lane slices
        q = qkv[:, h * dh:(h + 1) * dh]
        k = qkv[:, Hd + h * dh:Hd + (h + 1) * dh]
        v = qkv[:, 2 * Hd + h * dh:2 * Hd + (h + 1) * dh]
        # scores = q @ k^T without an explicit transpose (contract the head dims)
        s = jax.lax.dot_general(q, k, (((1,), (1,)), ((), ())),
                                preferred_element_type=jnp.float32)       # (S, S)
        s = s + bias_full
        s = s - jnp.max(s, axis=-1, keepdims=True)
        p = jnp.exp(s)
        p = p * pl.reciprocal(jnp.sum(p, axis=-1, keepdims=True), approx=True)
        ctx_heads.append(jnp.dot(p.astype(jnp.bfloat16), v,
                                 preferred_element_type=jnp.float32))     # (S, dh)

    # Pack heads along lanes, then ONE full-depth (S,H)@(H,H) MXU matmul for the out-projection
    # (replaces NH small K=dh matmuls that underfill the 128/256-deep MXU).
    ctx = jnp.concatenate(ctx_heads, axis=-1).astype(jnp.bfloat16)        # (S, H) bf16
    attn_out = jnp.dot(ctx, wo_ref[...], preferred_element_type=jnp.float32) + bo_ref[...]

    # residual + layernorm 1
    y = x + attn_out
    mu = jnp.mean(y, axis=-1, keepdims=True)
    var = jnp.mean((y - mu) * (y - mu), axis=-1, keepdims=True)
    y = (y - mu) * jax.lax.rsqrt(var + eps)
    y = y * g1_ref[...] + b1_ref[...]
    y_bf = y.astype(jnp.bfloat16)

    # FFN: gelu(y @ w1 + b1) @ w2 + b2, + residual, + layernorm 2 (all fused, no HBM round trip)
    hmid = jnp.dot(y_bf, w1_ref[...], preferred_element_type=jnp.float32) + bb1_ref[...]
    hmid = _gelu_tanh(hmid)
    z = jnp.dot(hmid.astype(jnp.bfloat16), w2_ref[...],
                preferred_element_type=jnp.float32) + bb2_ref[...]
    z = z + y
    mu = jnp.mean(z, axis=-1, keepdims=True)
    var = jnp.mean((z - mu) * (z - mu), axis=-1, keepdims=True)
    z = (z - mu) * jax.lax.rsqrt(var + eps)
    o_ref[...] = (z * g2_ref[...] + b2_ref[...]).astype(o_ref.dtype)


def encoder_layer(x, bias, p, B, S):
    kernel = functools.partial(_layer_kernel, num_heads=NH, eps=LN_EPS)
    w = pl.BlockSpec  # brevity
    return pl.pallas_call(
        kernel,
        out_shape=jax.ShapeDtypeStruct((B * S, H), jnp.bfloat16),
        grid=(B,),
        in_specs=[
            w((S, H), lambda b: (b, 0)),            # activations (one batch per step)
            w((1, 1, S), lambda b: (b, 0, 0)),      # additive key-mask bias
            # resident layer weights (constant index_map -> fetched once, stay in VMEM)
            w((H, 3 * H), lambda b: (0, 0)),
            w((1, 3 * H), lambda b: (0, 0)),
            w((H, H), lambda b: (0, 0)),
            w((1, H), lambda b: (0, 0)),
            w((1, H), lambda b: (0, 0)),
            w((1, H), lambda b: (0, 0)),
            w((H, FF), lambda b: (0, 0)),
            w((1, FF), lambda b: (0, 0)),
            w((FF, H), lambda b: (0, 0)),
            w((1, H), lambda b: (0, 0)),
            w((1, H), lambda b: (0, 0)),
            w((1, H), lambda b: (0, 0)),
        ],
        out_specs=pl.BlockSpec((S, H), lambda b: (b, 0)),
        compiler_params=_cparams(("parallel",)),
    )(x, bias, p["wqkv"], p["bqkv"], p["wo"], p["bo"], p["ln1_g"], p["ln1_b"],
      p["w1"], p["b1"], p["w2"], p["b2"], p["ln2_g"], p["ln2_b"])


# ---------------------------- parameter init -----------------------------------
def init_params(key):
    def nrm(k, shape):
        return jax.random.normal(k, shape, dtype=jnp.float32) * 0.02

    keys = iter(jax.random.split(key, 8 + L * 8))
    p = {
        "word_emb": nrm(next(keys), (VOCAB, H)),
        "pos_emb": nrm(next(keys), (MAX_POS, H)),
        "type_emb": nrm(next(keys), (1, H)),
        "emb_ln_g": jnp.ones((H,), jnp.float32),
        "emb_ln_b": jnp.zeros((H,), jnp.float32),
        "pooler_w": nrm(next(keys), (H, H)),            # pooler + regressor stay in plain JAX
        "pooler_b": jnp.zeros((1, H), jnp.float32),
        "reg_w": nrm(next(keys), (H, 1)),
        "reg_b": jnp.zeros((1, 1), jnp.float32),
        "layers": [],
    }
    scale = 1.0 / (DH ** 0.5)
    for _ in range(L):
        wqkv = nrm(next(keys), (H, 3 * H))
        bqkv = jnp.zeros((1, 3 * H), jnp.float32)
        # fold the softmax 1/sqrt(dh) scale into the Q projection (weights + bias)
        wqkv = wqkv.at[:, :H].multiply(scale)
        bqkv = bqkv.at[:, :H].multiply(scale)
        layer = {
            "wqkv": wqkv.astype(jnp.bfloat16),          # packed q|k|v weights
            "bqkv": bqkv,
            "wo": nrm(next(keys), (H, H)).astype(jnp.bfloat16),
            "bo": jnp.zeros((1, H), jnp.float32),
            "ln1_g": jnp.ones((1, H), jnp.float32),
            "ln1_b": jnp.zeros((1, H), jnp.float32),
            "w1": nrm(next(keys), (H, FF)).astype(jnp.bfloat16),
            "b1": jnp.zeros((1, FF), jnp.float32),
            "w2": nrm(next(keys), (FF, H)).astype(jnp.bfloat16),
            "b2": jnp.zeros((1, H), jnp.float32),
            "ln2_g": jnp.ones((1, H), jnp.float32),
            "ln2_b": jnp.zeros((1, H), jnp.float32),
        }
        p["layers"].append(layer)
    return p


# ---------------------------- model forward -------------------------------------
def regression_model_forward(params, input_ids, attention_mask):
    B, S = input_ids.shape
    mask_f = attention_mask.astype(jnp.float32)

    # RoBERTa-style position ids: pad tokens -> padding_idx, real tokens start at padding_idx+1
    mask_i = attention_mask.astype(jnp.int32)
    position_ids = jnp.cumsum(mask_i, axis=1) * mask_i + PAD_IDX

    # embeddings (gathers are plain-JAX glue; layernorm is a Pallas kernel)
    emb = (params["word_emb"][input_ids]
           + params["pos_emb"][position_ids]
           + params["type_emb"][0][None, None, :])
    x = layernorm(emb.reshape(B * S, H), params["emb_ln_g"], params["emb_ln_b"])  # (B*S, H) bf16

    # additive attention-mask bias: 0 keep / -1e9 masked key, one row per batch
    bias = ((1.0 - mask_f) * jnp.float32(-1e9)).reshape(B, 1, S)

    # one fused Pallas kernel per encoder layer (attention + FFN + both layernorms)
    for layer in params["layers"]:
        x = encoder_layer(x, bias, layer, B, S)

    # pooler (dense + tanh on [CLS]) + linear regressor: tiny (B,H) GEMMs, left to XLA
    cls = x.reshape(B, S, H)[:, 0, :].astype(jnp.float32)
    pooled = jnp.tanh(cls @ params["pooler_w"] + params["pooler_b"])
    logits = pooled @ params["reg_w"] + params["reg_b"]
    return logits


# ---------------------------------- main -----------------------------------------
if __name__ == "__main__":
    B, S = 2, 8
    key = jax.random.PRNGKey(0)
    k_param, k_ids = jax.random.split(key)

    params = init_params(k_param)
    input_ids = jax.random.randint(k_ids, (B, S), 0, VOCAB, dtype=jnp.int32)
    # batch 0 fully attended; batch 1 has last 3 positions padded out
    attention_mask = jnp.array(
        [[1, 1, 1, 1, 1, 1, 1, 1],
         [1, 1, 1, 1, 1, 0, 0, 0]], dtype=jnp.float32)

    fwd = jax.jit(regression_model_forward)
    logits = fwd(params, input_ids, attention_mask)
    jax.block_until_ready(logits)
    assert logits.shape == (B, 1) and logits.dtype == jnp.float32
    print("KERNEL_OK")
</pallas_src>

<mosaic_0001>
module attributes {stable_mosaic.version = 11 : i64} {
  func.func @_layernorm_kernel(%arg0: i32, %arg1: memref<16x128xf32, #tpu.memory_space<vmem>>, %arg2: memref<1x128xf32, #tpu.memory_space<vmem>>, %arg3: memref<1x128xf32, #tpu.memory_space<vmem>>, %arg4: memref<16x128xbf16, #tpu.memory_space<vmem>>) attributes {dimension_semantics = [#tpu.dimension_semantics<parallel>], iteration_bounds = array<i64: 1>, scalar_prefetch = 0 : i64, scratch_operands = 0 : i64, tpu.core_type = #tpu.core_type<tc>, window_params = [{transform_indices = @transform_0, window_bounds = array<i64: 16, 128>}, {pipeline_mode = #tpu.pipeline_mode<synchronous>, transform_indices = @transform_1, window_bounds = array<i64: 1, 128>}, {pipeline_mode = #tpu.pipeline_mode<synchronous>, transform_indices = @transform_2, window_bounds = array<i64: 1, 128>}, {transform_indices = @transform_3, window_bounds = array<i64: 16, 128>}]} {
    %c0 = arith.constant 0 : index
    %c0_0 = arith.constant 0 : index
    %0 = vector.load %arg1[%c0, %c0_0] : memref<16x128xf32, #tpu.memory_space<vmem>>, vector<16x128xf32>
    %cst = arith.constant dense<0.000000e+00> : vector<16xf32>
    %1 = vector.multi_reduction <add>, %0, %cst [1] : vector<16x128xf32> to vector<16xf32>
    %2 = vector.shape_cast %1 : vector<16xf32> to vector<16x1xf32>
    %cst_1 = arith.constant 1.280000e+02 : f32
    %3 = vector.broadcast %cst_1 : f32 to vector<16x1xf32>
    %4 = arith.divf %2, %3 : vector<16x1xf32>
    %5 = vector.broadcast %4 : vector<16x1xf32> to vector<16x128xf32>
    %6 = arith.subf %0, %5 : vector<16x128xf32>
    %7 = vector.broadcast %4 : vector<16x1xf32> to vector<16x128xf32>
    %8 = arith.subf %0, %7 : vector<16x128xf32>
    %9 = arith.mulf %6, %8 : vector<16x128xf32>
    %cst_2 = arith.constant dense<0.000000e+00> : vector<16xf32>
    %10 = vector.multi_reduction <add>, %9, %cst_2 [1] : vector<16x128xf32> to vector<16xf32>
    %11 = vector.shape_cast %10 : vector<16xf32> to vector<16x1xf32>
    %cst_3 = arith.constant 1.280000e+02 : f32
    %12 = vector.broadcast %cst_3 : f32 to vector<16x1xf32>
    %13 = arith.divf %11, %12 : vector<16x1xf32>
    %14 = vector.broadcast %4 : vector<16x1xf32> to vector<16x128xf32>
    %15 = arith.subf %0, %14 : vector<16x128xf32>
    %cst_4 = arith.constant 9.99999974E-6 : f32
    %16 = vector.broadcast %cst_4 : f32 to vector<16x1xf32>
    %17 = arith.addf %13, %16 : vector<16x1xf32>
    %18 = math.rsqrt %17 : vector<16x1xf32>
    %19 = vector.broadcast %18 : vector<16x1xf32> to vector<16x128xf32>
    %20 = arith.mulf %15, %19 : vector<16x128xf32>
    %c0_5 = arith.constant 0 : index
    %c0_6 = arith.constant 0 : index
    %21 = vector.load %arg2[%c0_5, %c0_6] : memref<1x128xf32, #tpu.memory_space<vmem>>, vector<1x128xf32>
    %22 = vector.broadcast %21 : vector<1x128xf32> to vector<16x128xf32>
    %23 = arith.mulf %20, %22 : vector<16x128xf32>
    %c0_7 = arith.constant 0 : index
    %c0_8 = arith.constant 0 : index
    %24 = vector.load %arg3[%c0_7, %c0_8] : memref<1x128xf32, #tpu.memory_space<vmem>>, vector<1x128xf32>
    %25 = vector.broadcast %24 : vector<1x128xf32> to vector<16x128xf32>
    %26 = arith.addf %23, %25 : vector<16x128xf32>
    %27 = arith.truncf %26 : vector<16x128xf32> to vector<16x128xbf16>
    %c0_9 = arith.constant 0 : index
    %c0_10 = arith.constant 0 : index
    %28 = vector.load %arg4[%c0_9, %c0_10] : memref<16x128xbf16, #tpu.memory_space<vmem>>, vector<16x128xbf16>
    tpu.vector_store %arg4[%c0_9, %c0_10], %27 {strides = array<i32>} : memref<16x128xbf16, #tpu.memory_space<vmem>>, vector<16x128xbf16>,
    return
  }
  func.func @transform_0(%arg0: i32) -> (i32, i32) {
    %c0_i32 = arith.constant 0 : i32
    %c0_i32_0 = arith.constant 0 : i32
    return %arg0, %c0_i32 : i32, i32
  }
  func.func @transform_1(%arg0: i32) -> (i32, i32) {
    %c0_i32 = arith.constant 0 : i32
    %c0_i32_0 = arith.constant 0 : i32
    %c0_i32_1 = arith.constant 0 : i32
    return %c0_i32, %c0_i32_0 : i32, i32
  }
  func.func @transform_2(%arg0: i32) -> (i32, i32) {
    %c0_i32 = arith.constant 0 : i32
    %c0_i32_0 = arith.constant 0 : i32
    %c0_i32_1 = arith.constant 0 : i32
    return %c0_i32, %c0_i32_0 : i32, i32
  }
  func.func @transform_3(%arg0: i32) -> (i32, i32) {
    %c0_i32 = arith.constant 0 : i32
    %c0_i32_0 = arith.constant 0 : i32
    return %arg0, %c0_i32 : i32, i32
  }
}

module attributes {stable_mosaic.version = 11 : i64} {
  func.func @_layer_kernel(%arg0: i32, %arg1: memref<8x128xbf16, #tpu.memory_space<vmem>>, %arg2: memref<1x1x8xf32, #tpu.memory_space<vmem>>, %arg3: memref<128x384xbf16, #tpu.memory_space<vmem>>, %arg4: memref<1x384xf32, #tpu.memory_space<vmem>>, %arg5: memref<128x128xbf16, #tpu.memory_space<vmem>>, %arg6: memref<1x128xf32, #tpu.memory_space<vmem>>, %arg7: memref<1x128xf32, #tpu.memory_space<vmem>>, %arg8: memref<1x128xf32, #tpu.memory_space<vmem>>, %arg9: memref<128x512xbf16, #tpu.memory_space<vmem>>, %arg10: memref<1x512xf32, #tpu.memory_space<vmem>>, %arg11: memref<512x128xbf16, #tpu.memory_space<vmem>>, %arg12: memref<1x128xf32, #tpu.memory_space<vmem>>, %arg13: memref<1x128xf32, #tpu.memory_space<vmem>>, %arg14: memref<1x128xf32, #tpu.memory_space<vmem>>, %arg15: memref<8x128xbf16, #tpu.memory_space<vmem>>) attributes {dimension_semantics = [#tpu.dimension_semantics<parallel>], iteration_bounds = array<i64: 2>, scalar_prefetch = 0 : i64, scratch_operands = 0 : i64, tpu.core_type = #tpu.core_type<tc>, window_params = [{transform_indices = @transform_0, window_bounds = array<i64: 8, 128>}, {transform_indices = @transform_1, window_bounds = array<i64: 1, 1, 8>}, {pipeline_mode = #tpu.pipeline_mode<synchronous>, transform_indices = @transform_2, window_bounds = array<i64: 128, 384>}, {pipeline_mode = #tpu.pipeline_mode<synchronous>, transform_indices = @transform_3, window_bounds = array<i64: 1, 384>}, {pipeline_mode = #tpu.pipeline_mode<synchronous>, transform_indices = @transform_4, window_bounds = array<i64: 128, 128>}, {pipeline_mode = #tpu.pipeline_mode<synchronous>, transform_indices = @transform_5, window_bounds = array<i64: 1, 128>}, {pipeline_mode = #tpu.pipeline_mode<synchronous>, transform_indices = @transform_6, window_bounds = array<i64: 1, 128>}, {pipeline_mode = #tpu.pipeline_mode<synchronous>, transform_indices = @transform_7, window_bounds = array<i64: 1, 128>}, {pipeline_mode = #tpu.pipeline_mode<synchronous>, transform_indices = @transform_8, window_bounds = array<i64: 128, 512>}, {pipeline_mode = #tpu.pipeline_mode<synchronous>, transform_indices = @transform_9, window_bounds = array<i64: 1, 512>}, {pipeline_mode = #tpu.pipeline_mode<synchronous>, transform_indices = @transform_10, window_bounds = array<i64: 512, 128>}, {pipeline_mode = #tpu.pipeline_mode<synchronous>, transform_indices = @transform_11, window_bounds = array<i64: 1, 128>}, {pipeline_mode = #tpu.pipeline_mode<synchronous>, transform_indices = @transform_12, window_bounds = array<i64: 1, 128>}, {pipeline_mode = #tpu.pipeline_mode<synchronous>, transform_indices = @transform_13, window_bounds = array<i64: 1, 128>}, {transform_indices = @transform_14, window_bounds = array<i64: 8, 128>}]} {
    %c0 = arith.constant 0 : index
    %c0_0 = arith.constant 0 : index
    %0 = vector.load %arg1[%c0, %c0_0] : memref<8x128xbf16, #tpu.memory_space<vmem>>, vector<8x128xbf16>
    %1 = arith.extf %0 : vector<8x128xbf16> to vector<8x128xf32>
    %c0_1 = arith.constant 0 : index
    %c0_2 = arith.constant 0 : index
    %2 = vector.load %arg3[%c0_1, %c0_2] : memref<128x384xbf16, #tpu.memory_space<vmem>>, vector<128x384xbf16>
    %cst = arith.constant dense<0.000000e+00> : vector<8x384xf32>
    %3 = tpu.matmul %0, %2, %cst {dimension_numbers = #tpu.dot_dimension_numbers<[1], [0], [0], [1], [0, 0, 1, 1], [], []>} : vector<8x128xbf16>, vector<128x384xbf16>, vector<8x384xf32> -> vector<8x384xf32>
    %c0_3 = arith.constant 0 : index
    %c0_4 = arith.constant 0 : index
    %4 = vector.load %arg4[%c0_3, %c0_4] : memref<1x384xf32, #tpu.memory_space<vmem>>, vector<1x384xf32>
    %5 = vector.broadcast %4 : vector<1x384xf32> to vector<8x384xf32>
    %6 = arith.addf %3, %5 : vector<8x384xf32>
    %7 = arith.truncf %6 : vector<8x384xf32> to vector<8x384xbf16>
    %c0_5 = arith.constant 0 : index
    %c0_6 = arith.constant 0 : index
    %c0_7 = arith.constant 0 : index
    %8 = vector.load %arg2[%c0_5, %c0_6, %c0_7] : memref<1x1x8xf32, #tpu.memory_space<vmem>>, vector<1x1x8xf32>
    %9 = vector.shape_cast %8 : vector<1x1x8xf32> to vector<1x8xf32>
    %10 = vector.shape_cast %9 : vector<1x8xf32> to vector<1x8xf32>
    %11 = vector.broadcast %10 : vector<1x8xf32> to vector<8x8xf32>
    %12 = vector.extract_strided_slice %7 {offsets = [0, 0], sizes = [8, 32], strides = [1, 1]} : vector<8x384xbf16> to vector<8x32xbf16>
    %13 = vector.extract_strided_slice %7 {offsets = [0, 128], sizes = [8, 32], strides = [1, 1]} : vector<8x384xbf16> to vector<8x32xbf16>
    %14 = vector.extract_strided_slice %7 {offsets = [0, 256], sizes = [8, 32], strides = [1, 1]} : vector<8x384xbf16> to vector<8x32xbf16>
    %cst_8 = arith.constant dense<0.000000e+00> : vector<8x8xf32>
    %15 = tpu.matmul %12, %13, %cst_8 {dimension_numbers = #tpu.dot_dimension_numbers<[1], [1], [0], [0], [0, 0, 1, 0], [], []>} : vector<8x32xbf16>, vector<8x32xbf16>, vector<8x8xf32> -> vector<8x8xf32>
    %16 = arith.addf %15, %11 : vector<8x8xf32>
    %cst_9 = arith.constant dense<0xFF800000> : vector<8xf32>
    %17 = vector.multi_reduction <maximumf>, %16, %cst_9 [1] : vector<8x8xf32> to vector<8xf32>
    %18 = vector.shape_cast %17 : vector<8xf32> to vector<8x1xf32>
    %19 = vector.broadcast %18 : vector<8x1xf32> to vector<8x8xf32>
    %20 = arith.subf %16, %19 : vector<8x8xf32>
    %21 = math.exp %20 : vector<8x8xf32>
    %cst_10 = arith.constant dense<0.000000e+00> : vector<8xf32>
    %22 = vector.multi_reduction <add>, %21, %cst_10 [1] : vector<8x8xf32> to vector<8xf32>
    %23 = vector.shape_cast %22 : vector<8xf32> to vector<8x1xf32>
    %24 = tpu.reciprocal %23 {approx = true} : vector<8x1xf32> -> vector<8x1xf32>
    %25 = vector.broadcast %24 : vector<8x1xf32> to vector<8x8xf32>
    %26 = arith.mulf %21, %25 : vector<8x8xf32>
    %27 = arith.truncf %26 : vector<8x8xf32> to vector<8x8xbf16>
    %cst_11 = arith.constant dense<0.000000e+00> : vector<8x32xf32>
    %28 = tpu.matmul %27, %14, %cst_11 {dimension_numbers = #tpu.dot_dimension_numbers<[1], [0], [0], [1], [0, 0, 1, 1], [], []>} : vector<8x8xbf16>, vector<8x32xbf16>, vector<8x32xf32> -> vector<8x32xf32>
    %29 = vector.extract_strided_slice %7 {offsets = [0, 32], sizes = [8, 32], strides = [1, 1]} : vector<8x384xbf16> to vector<8x32xbf16>
    %30 = vector.extract_strided_slice %7 {offsets = [0, 160], sizes = [8, 32], strides = [1, 1]} : vector<8x384xbf16> to vector<8x32xbf16>
    %31 = vector.extract_strided_slice %7 {offsets = [0, 288], sizes = [8, 32], strides = [1, 1]} : vector<8x384xbf16> to vector<8x32xbf16>
    %cst_12 = arith.constant dense<0.000000e+00> : vector<8x8xf32>
    %32 = tpu.matmul %29, %30, %cst_12 {dimension_numbers = #tpu.dot_dimension_numbers<[1], [1], [0], [0], [0, 0, 1, 0], [], []>} : vector<8x32xbf16>, vector<8x32xbf16>, vector<8x8xf32> -> vector<8x8xf32>
    %33 = arith.addf %32, %11 : vector<8x8xf32>
    %cst_13 = arith.constant dense<0xFF800000> : vector<8xf32>
    %34 = vector.multi_reduction <maximumf>, %33, %cst_13 [1] : vector<8x8xf32> to vector<8xf32>
    %35 = vector.shape_cast %34 : vector<8xf32> to vector<8x1xf32>
    %36 = vector.broadcast %35 : vector<8x1xf32> to vector<8x8xf32>
    %37 = arith.subf %33, %36 : vector<8x8xf32>
    %38 = math.exp %37 : vector<8x8xf32>
    %cst_14 = arith.constant dense<0.000000e+00> : vector<8xf32>
    %39 = vector.multi_reduction <add>, %38, %cst_14 [1] : vector<8x8xf32> to vector<8xf32>
    %40 = vector.shape_cast %39 : vector<8xf32> to vector<8x1xf32>
    %41 = tpu.reciprocal %40 {approx = true} : vector<8x1xf32> -> vector<8x1xf32>
    %42 = vector.broadcast %41 : vector<8x1xf32> to vector<8x8xf32>
    %43 = arith.mulf %38, %42 : vector<8x8xf32>
    %44 = arith.truncf %43 : vector<8x8xf32> to vector<8x8xbf16>
    %cst_15 = arith.constant dense<0.000000e+00> : vector<8x32xf32>
    %45 = tpu.matmul %44, %31, %cst_15 {dimension_numbers = #tpu.dot_dimension_numbers<[1], [0], [0], [1], [0, 0, 1, 1], [], []>} : vector<8x8xbf16>, vector<8x32xbf16>, vector<8x32xf32> -> vector<8x32xf32>
    %46 = vector.extract_strided_slice %7 {offsets = [0, 64], sizes = [8, 32], strides = [1, 1]} : vector<8x384xbf16> to vector<8x32xbf16>
    %47 = vector.extract_strided_slice %7 {offsets = [0, 192], sizes = [8, 32], strides = [1, 1]} : vector<8x384xbf16> to vector<8x32xbf16>
    %48 = vector.extract_strided_slice %7 {offsets = [0, 320], sizes = [8, 32], strides = [1, 1]} : vector<8x384xbf16> to vector<8x32xbf16>
    %cst_16 = arith.constant dense<0.000000e+00> : vector<8x8xf32>
    %49 = tpu.matmul %46, %47, %cst_16 {dimension_numbers = #tpu.dot_dimension_numbers<[1], [1], [0], [0], [0, 0, 1, 0], [], []>} : vector<8x32xbf16>, vector<8x32xbf16>, vector<8x8xf32> -> vector<8x8xf32>
    %50 = arith.addf %49, %11 : vector<8x8xf32>
    %cst_17 = arith.constant dense<0xFF800000> : vector<8xf32>
    %51 = vector.multi_reduction <maximumf>, %50, %cst_17 [1] : vector<8x8xf32> to vector<8xf32>
    %52 = vector.shape_cast %51 : vector<8xf32> to vector<8x1xf32>
    %53 = vector.broadcast %52 : vector<8x1xf32> to vector<8x8xf32>
    %54 = arith.subf %50, %53 : vector<8x8xf32>
    %55 = math.exp %54 : vector<8x8xf32>
    %cst_18 = arith.constant dense<0.000000e+00> : vector<8xf32>
    %56 = vector.multi_reduction <add>, %55, %cst_18 [1] : vector<8x8xf32> to vector<8xf32>
    %57 = vector.shape_cast %56 : vector<8xf32> to vector<8x1xf32>
    %58 = tpu.reciprocal %57 {approx = true} : vector<8x1xf32> -> vector<8x1xf32>
    %59 = vector.broadcast %58 : vector<8x1xf32> to vector<8x8xf32>
    %60 = arith.mulf %55, %59 : vector<8x8xf32>
    %61 = arith.truncf %60 : vector<8x8xf32> to vector<8x8xbf16>
    %cst_19 = arith.constant dense<0.000000e+00> : vector<8x32xf32>
    %62 = tpu.matmul %61, %48, %cst_19 {dimension_numbers = #tpu.dot_dimension_numbers<[1], [0], [0], [1], [0, 0, 1, 1], [], []>} : vector<8x8xbf16>, vector<8x32xbf16>, vector<8x32xf32> -> vector<8x32xf32>
    %63 = vector.extract_strided_slice %7 {offsets = [0, 96], sizes = [8, 32], strides = [1, 1]} : vector<8x384xbf16> to vector<8x32xbf16>
    %64 = vector.extract_strided_slice %7 {offsets = [0, 224], sizes = [8, 32], strides = [1, 1]} : vector<8x384xbf16> to vector<8x32xbf16>
    %65 = vector.extract_strided_slice %7 {offsets = [0, 352], sizes = [8, 32], strides = [1, 1]} : vector<8x384xbf16> to vector<8x32xbf16>
    %cst_20 = arith.constant dense<0.000000e+00> : vector<8x8xf32>
    %66 = tpu.matmul %63, %64, %cst_20 {dimension_numbers = #tpu.dot_dimension_numbers<[1], [1], [0], [0], [0, 0, 1, 0], [], []>} : vector<8x32xbf16>, vector<8x32xbf16>, vector<8x8xf32> -> vector<8x8xf32>
    %67 = arith.addf %66, %11 : vector<8x8xf32>
    %cst_21 = arith.constant dense<0xFF800000> : vector<8xf32>
    %68 = vector.multi_reduction <maximumf>, %67, %cst_21 [1] : vector<8x8xf32> to vector<8xf32>
    %69 = vector.shape_cast %68 : vector<8xf32> to vector<8x1xf32>
    %70 = vector.broadcast %69 : vector<8x1xf32> to vector<8x8xf32>
    %71 = arith.subf %67, %70 : vector<8x8xf32>
    %72 = math.exp %71 : vector<8x8xf32>
    %cst_22 = arith.constant dense<0.000000e+00> : vector<8xf32>
    %73 = vector.multi_reduction <add>, %72, %cst_22 [1] : vector<8x8xf32> to vector<8xf32>
    %74 = vector.shape_cast %73 : vector<8xf32> to vector<8x1xf32>
    %75 = tpu.reciprocal %74 {approx = true} : vector<8x1xf32> -> vector<8x1xf32>
    %76 = vector.broadcast %75 : vector<8x1xf32> to vector<8x8xf32>
    %77 = arith.mulf %72, %76 : vector<8x8xf32>
    %78 = arith.truncf %77 : vector<8x8xf32> to vector<8x8xbf16>
    %cst_23 = arith.constant dense<0.000000e+00> : vector<8x32xf32>
    %79 = tpu.matmul %78, %65, %cst_23 {dimension_numbers = #tpu.dot_dimension_numbers<[1], [0], [0], [1], [0, 0, 1, 1], [], []>} : vector<8x8xbf16>, vector<8x32xbf16>, vector<8x32xf32> -> vector<8x32xf32>
    %80 = tpu.concatenate %28, %45, %62, %79 in 1 : vector<8x32xf32>, vector<8x32xf32>, vector<8x32xf32>, vector<8x32xf32> -> vector<8x128xf32>
    %81 = arith.truncf %80 : vector<8x128xf32> to vector<8x128xbf16>
    %c0_24 = arith.constant 0 : index
    %c0_25 = arith.constant 0 : index
    %82 = vector.load %arg5[%c0_24, %c0_25] : memref<128x128xbf16, #tpu.memory_space<vmem>>, vector<128x128xbf16>
    %cst_26 = arith.constant dense<0.000000e+00> : vector<8x128xf32>
    %83 = tpu.matmul %81, %82, %cst_26 {dimension_numbers = #tpu.dot_dimension_numbers<[1], [0], [0], [1], [0, 0, 1, 1], [], []>} : vector<8x128xbf16>, vector<128x128xbf16>, vector<8x128xf32> -> vector<8x128xf32>
    %c0_27 = arith.constant 0 : index
    %c0_28 = arith.constant 0 : index
    %84 = vector.load %arg6[%c0_27, %c0_28] : memref<1x128xf32, #tpu.memory_space<vmem>>, vector<1x128xf32>
    %85 = vector.broadcast %84 : vector<1x128xf32> to vector<8x128xf32>
    %86 = arith.addf %83, %85 : vector<8x128xf32>
    %87 = arith.addf %1, %86 : vector<8x128xf32>
    %cst_29 = arith.constant dense<0.000000e+00> : vector<8xf32>
    %88 = vector.multi_reduction <add>, %87, %cst_29 [1] : vector<8x128xf32> to vector<8xf32>
    %89 = vector.shape_cast %88 : vector<8xf32> to vector<8x1xf32>
    %cst_30 = arith.constant 1.280000e+02 : f32
    %90 = vector.broadcast %cst_30 : f32 to vector<8x1xf32>
    %91 = arith.divf %89, %90 : vector<8x1xf32>
    %92 = vector.broadcast %91 : vector<8x1xf32> to vector<8x128xf32>
    %93 = arith.subf %87, %92 : vector<8x128xf32>
    %94 = vector.broadcast %91 : vector<8x1xf32> to vector<8x128xf32>
    %95 = arith.subf %87, %94 : vector<8x128xf32>
    %96 = arith.mulf %93, %95 : vector<8x128xf32>
    %cst_31 = arith.constant dense<0.000000e+00> : vector<8xf32>
    %97 = vector.multi_reduction <add>, %96, %cst_31 [1] : vector<8x128xf32> to vector<8xf32>
    %98 = vector.shape_cast %97 : vector<8xf32> to vector<8x1xf32>
    %cst_32 = arith.constant 1.280000e+02 : f32
    %99 = vector.broadcast %cst_32 : f32 to vector<8x1xf32>
    %100 = arith.divf %98, %99 : vector<8x1xf32>
    %101 = vector.broadcast %91 : vector<8x1xf32> to vector<8x128xf32>
    %102 = arith.subf %87, %101 : vector<8x128xf32>
    %cst_33 = arith.constant 9.99999974E-6 : f32
    %103 = vector.broadcast %cst_33 : f32 to vector<8x1xf32>
    %104 = arith.addf %100, %103 : vector<8x1xf32>
    %105 = math.rsqrt %104 : vector<8x1xf32>
    %106 = vector.broadcast %105 : vector<8x1xf32> to vector<8x128xf32>
    %107 = arith.mulf %102, %106 : vector<8x128xf32>
    %c0_34 = arith.constant 0 : index
    %c0_35 = arith.constant 0 : index
    %108 = vector.load %arg7[%c0_34, %c0_35] : memref<1x128xf32, #tpu.memory_space<vmem>>, vector<1x128xf32>
    %109 = vector.broadcast %108 : vector<1x128xf32> to vector<8x128xf32>
    %110 = arith.mulf %107, %109 : vector<8x128xf32>
    %c0_36 = arith.constant 0 : index
    %c0_37 = arith.constant 0 : index
    %111 = vector.load %arg8[%c0_36, %c0_37] : memref<1x128xf32, #tpu.memory_space<vmem>>, vector<1x128xf32>
    %112 = vector.broadcast %111 : vector<1x128xf32> to vector<8x128xf32>
    %113 = arith.addf %110, %112 : vector<8x128xf32>
    %114 = arith.truncf %113 : vector<8x128xf32> to vector<8x128xbf16>
    %c0_38 = arith.constant 0 : index
    %c0_39 = arith.constant 0 : index
    %115 = vector.load %arg9[%c0_38, %c0_39] : memref<128x512xbf16, #tpu.memory_space<vmem>>, vector<128x512xbf16>
    %cst_40 = arith.constant dense<0.000000e+00> : vector<8x512xf32>
    %116 = tpu.matmul %114, %115, %cst_40 {dimension_numbers = #tpu.dot_dimension_numbers<[1], [0], [0], [1], [0, 0, 1, 1], [], []>} : vector<8x128xbf16>, vector<128x512xbf16>, vector<8x512xf32> -> vector<8x512xf32>
    %c0_41 = arith.constant 0 : index
    %c0_42 = arith.constant 0 : index
    %117 = vector.load %arg10[%c0_41, %c0_42] : memref<1x512xf32, #tpu.memory_space<vmem>>, vector<1x512xf32>
    %118 = vector.broadcast %117 : vector<1x512xf32> to vector<8x512xf32>
    %119 = arith.addf %116, %118 : vector<8x512xf32>
    %cst_43 = arith.constant 5.000000e-01 : f32
    %120 = vector.broadcast %cst_43 : f32 to vector<8x512xf32>
    %121 = arith.mulf %120, %119 : vector<8x512xf32>
    %cst_44 = arith.constant 4.471500e-02 : f32
    %122 = vector.broadcast %cst_44 : f32 to vector<8x512xf32>
    %123 = arith.mulf %122, %119 : vector<8x512xf32>
    %124 = arith.mulf %123, %119 : vector<8x512xf32>
    %125 = arith.mulf %124, %119 : vector<8x512xf32>
    %126 = arith.addf %119, %125 : vector<8x512xf32>
    %cst_45 = arith.constant 0.797884583 : f32
    %127 = vector.broadcast %cst_45 : f32 to vector<8x512xf32>
    %128 = arith.mulf %127, %126 : vector<8x512xf32>
    %129 = math.tanh %128 : vector<8x512xf32>
    %cst_46 = arith.constant 1.000000e+00 : f32
    %130 = vector.broadcast %cst_46 : f32 to vector<8x512xf32>
    %131 = arith.addf %130, %129 : vector<8x512xf32>
    %132 = arith.mulf %121, %131 : vector<8x512xf32>
    %133 = arith.truncf %132 : vector<8x512xf32> to vector<8x512xbf16>
    %c0_47 = arith.constant 0 : index
    %c0_48 = arith.constant 0 : index
    %134 = vector.load %arg11[%c0_47, %c0_48] : memref<512x128xbf16, #tpu.memory_space<vmem>>, vector<512x128xbf16>
    %cst_49 = arith.constant dense<0.000000e+00> : vector<8x128xf32>
    %135 = tpu.matmul %133, %134, %cst_49 {dimension_numbers = #tpu.dot_dimension_numbers<[1], [0], [0], [1], [0, 0, 1, 1], [], []>} : vector<8x512xbf16>, vector<512x128xbf16>, vector<8x128xf32> -> vector<8x128xf32>
    %c0_50 = arith.constant 0 : index
    %c0_51 = arith.constant 0 : index
    %136 = vector.load %arg12[%c0_50, %c0_51] : memref<1x128xf32, #tpu.memory_space<vmem>>, vector<1x128xf32>
    %137 = vector.broadcast %136 : vector<1x128xf32> to vector<8x128xf32>
    %138 = arith.addf %135, %137 : vector<8x128xf32>
    %139 = arith.addf %138, %113 : vector<8x128xf32>
    %cst_52 = arith.constant dense<0.000000e+00> : vector<8xf32>
    %140 = vector.multi_reduction <add>, %139, %cst_52 [1] : vector<8x128xf32> to vector<8xf32>
    %141 = vector.shape_cast %140 : vector<8xf32> to vector<8x1xf32>
    %cst_53 = arith.constant 1.280000e+02 : f32
    %142 = vector.broadcast %cst_53 : f32 to vector<8x1xf32>
    %143 = arith.divf %141, %142 : vector<8x1xf32>
    %144 = vector.broadcast %143 : vector<8x1xf32> to vector<8x128xf32>
    %145 = arith.subf %139, %144 : vector<8x128xf32>
    %146 = vector.broadcast %143 : vector<8x1xf32> to vector<8x128xf32>
    %147 = arith.subf %139, %146 : vector<8x128xf32>
    %148 = arith.mulf %145, %147 : vector<8x128xf32>
    %cst_54 = arith.constant dense<0.000000e+00> : vector<8xf32>
    %149 = vector.multi_reduction <add>, %148, %cst_54 [1] : vector<8x128xf32> to vector<8xf32>
    %150 = vector.shape_cast %149 : vector<8xf32> to vector<8x1xf32>
    %cst_55 = arith.constant 1.280000e+02 : f32
    %151 = vector.broadcast %cst_55 : f32 to vector<8x1xf32>
    %152 = arith.divf %150, %151 : vector<8x1xf32>
    %153 = vector.broadcast %143 : vector<8x1xf32> to vector<8x128xf32>
    %154 = arith.subf %139, %153 : vector<8x128xf32>
    %cst_56 = arith.constant 9.99999974E-6 : f32
    %155 = vector.broadcast %cst_56 : f32 to vector<8x1xf32>
    %156 = arith.addf %152, %155 : vector<8x1xf32>
    %157 = math.rsqrt %156 : vector<8x1xf32>
    %158 = vector.broadcast %157 : vector<8x1xf32> to vector<8x128xf32>
    %159 = arith.mulf %154, %158 : vector<8x128xf32>
    %c0_57 = arith.constant 0 : index
    %c0_58 = arith.constant 0 : index
    %160 = vector.load %arg13[%c0_57, %c0_58] : memref<1x128xf32, #tpu.memory_space<vmem>>, vector<1x128xf32>
    %161 = vector.broadcast %160 : vector<1x128xf32> to vector<8x128xf32>
    %162 = arith.mulf %159, %161 : vector<8x128xf32>
    %c0_59 = arith.constant 0 : index
    %c0_60 = arith.constant 0 : index
    %163 = vector.load %arg14[%c0_59, %c0_60] : memref<1x128xf32, #tpu.memory_space<vmem>>, vector<1x128xf32>
    %164 = vector.broadcast %163 : vector<1x128xf32> to vector<8x128xf32>
    %165 = arith.addf %162, %164 : vector<8x128xf32>
    %166 = arith.truncf %165 : vector<8x128xf32> to vector<8x128xbf16>
    %c0_61 = arith.constant 0 : index
    %c0_62 = arith.constant 0 : index
    %167 = vector.load %arg15[%c0_61, %c0_62] : memref<8x128xbf16, #tpu.memory_space<vmem>>, vector<8x128xbf16>
    tpu.vector_store %arg15[%c0_61, %c0_62], %166 {strides = array<i32>} : memref<8x128xbf16, #tpu.memory_space<vmem>>, vector<8x128xbf16>,
    return
  }
  func.func @transform_0(%arg0: i32) -> (i32, i32) {
    %c0_i32 = arith.constant 0 : i32
    %c0_i32_0 = arith.constant 0 : i32
    return %arg0, %c0_i32 : i32, i32
  }
  func.func @transform_1(%arg0: i32) -> (i32, i32, i32) {
    %c0_i32 = arith.constant 0 : i32
    %c0_i32_0 = arith.constant 0 : i32
    %c0_i32_1 = arith.constant 0 : i32
    return %arg0, %c0_i32, %c0_i32_0 : i32, i32, i32
  }
  func.func @transform_2(%arg0: i32) -> (i32, i32) {
    %c0_i32 = arith.constant 0 : i32
    %c0_i32_0 = arith.constant 0 : i32
    %c0_i32_1 = arith.constant 0 : i32
    return %c0_i32, %c0_i32_0 : i32, i32
  }
  func.func @transform_3(%arg0: i32) -> (i32, i32) {
    %c0_i32 = arith.constant 0 : i32
    %c0_i32_0 = arith.constant 0 : i32
    %c0_i32_1 = arith.constant 0 : i32
    return %c0_i32, %c0_i32_0 : i32, i32
  }
  func.func @transform_4(%arg0: i32) -> (i32, i32) {
    %c0_i32 = arith.constant 0 : i32
    %c0_i32_0 = arith.constant 0 : i32
    %c0_i32_1 = arith.constant 0 : i32
    return %c0_i32, %c0_i32_0 : i32, i32
  }
  func.func @transform_5(%arg0: i32) -> (i32, i32) {
    %c0_i32 = arith.constant 0 : i32
    %c0_i32_0 = arith.constant 0 : i32
    %c0_i32_1 = arith.constant 0 : i32
    return %c0_i32, %c0_i32_0 : i32, i32
  }
  func.func @transform_6(%arg0: i32) -> (i32, i32) {
    %c0_i32 = arith.constant 0 : i32
    %c0_i32_0 = arith.constant 0 : i32
    %c0_i32_1 = arith.constant 0 : i32
    return %c0_i32, %c0_i32_0 : i32, i32
  }
  func.func @transform_7(%arg0: i32) -> (i32, i32) {
    %c0_i32 = arith.constant 0 : i32
    %c0_i32_0 = arith.constant 0 : i32
    %c0_i32_1 = arith.constant 0 : i32
    return %c0_i32, %c0_i32_0 : i32, i32
  }
  func.func @transform_8(%arg0: i32) -> (i32, i32) {
    %c0_i32 = arith.constant 0 : i32
    %c0_i32_0 = arith.constant 0 : i32
    %c0_i32_1 = arith.constant 0 : i32
    return %c0_i32, %c0_i32_0 : i32, i32
  }
  func.func @transform_9(%arg0: i32) -> (i32, i32) {
    %c0_i32 = arith.constant 0 : i32
    %c0_i32_0 = arith.constant 0 : i32
    %c0_i32_1 = arith.constant 0 : i32
    return %c0_i32, %c0_i32_0 : i32, i32
  }
  func.func @transform_10(%arg0: i32) -> (i32, i32) {
    %c0_i32 = arith.constant 0 : i32
    %c0_i32_0 = arith.constant 0 : i32
    %c0_i32_1 = arith.constant 0 : i32
    return %c0_i32, %c0_i32_0 : i32, i32
  }
  func.func @transform_11(%arg0: i32) -> (i32, i32) {
    %c0_i32 = arith.constant 0 : i32
    %c0_i32_0 = arith.constant 0 : i32
    %c0_i32_1 = arith.constant 0 : i32
    return %c0_i32, %c0_i32_0 : i32, i32
  }
  func.func @transform_12(%arg0: i32) -> (i32, i32) {
    %c0_i32 = arith.constant 0 : i32
    %c0_i32_0 = arith.constant 0 : i32
    %c0_i32_1 = arith.constant 0 : i32
    return %c0_i32, %c0_i32_0 : i32, i32
  }
  func.func @transform_13(%arg0: i32) -> (i32, i32) {
    %c0_i32 = arith.constant 0 : i32
    %c0_i32_0 = arith.constant 0 : i32
    %c0_i32_1 = arith.constant 0 : i32
    return %c0_i32, %c0_i32_0 : i32, i32
  }
  func.func @transform_14(%arg0: i32) -> (i32, i32) {
    %c0_i32 = arith.constant 0 : i32
    %c0_i32_0 = arith.constant 0 : i32
    return %arg0, %c0_i32 : i32, i32
  }
}

module attributes {stable_mosaic.version = 11 : i64} {
  func.func @_layer_kernel(%arg0: i32, %arg1: memref<8x128xbf16, #tpu.memory_space<vmem>>, %arg2: memref<1x1x8xf32, #tpu.memory_space<vmem>>, %arg3: memref<128x384xbf16, #tpu.memory_space<vmem>>, %arg4: memref<1x384xf32, #tpu.memory_space<vmem>>, %arg5: memref<128x128xbf16, #tpu.memory_space<vmem>>, %arg6: memref<1x128xf32, #tpu.memory_space<vmem>>, %arg7: memref<1x128xf32, #tpu.memory_space<vmem>>, %arg8: memref<1x128xf32, #tpu.memory_space<vmem>>, %arg9: memref<128x512xbf16, #tpu.memory_space<vmem>>, %arg10: memref<1x512xf32, #tpu.memory_space<vmem>>, %arg11: memref<512x128xbf16, #tpu.memory_space<vmem>>, %arg12: memref<1x128xf32, #tpu.memory_space<vmem>>, %arg13: memref<1x128xf32, #tpu.memory_space<vmem>>, %arg14: memref<1x128xf32, #tpu.memory_space<vmem>>, %arg15: memref<8x128xbf16, #tpu.memory_space<vmem>>) attributes {dimension_semantics = [#tpu.dimension_semantics<parallel>], iteration_bounds = array<i64: 2>, scalar_prefetch = 0 : i64, scratch_operands = 0 : i64, tpu.core_type = #tpu.core_type<tc>, window_params = [{transform_indices = @transform_0, window_bounds = array<i64: 8, 128>}, {transform_indices = @transform_1, window_bounds = array<i64: 1, 1, 8>}, {pipeline_mode = #tpu.pipeline_mode<synchronous>, transform_indices = @transform_2, window_bounds = array<i64: 128, 384>}, {pipeline_mode = #tpu.pipeline_mode<synchronous>, transform_indices = @transform_3, window_bounds = array<i64: 1, 384>}, {pipeline_mode = #tpu.pipeline_mode<synchronous>, transform_indices = @transform_4, window_bounds = array<i64: 128, 128>}, {pipeline_mode = #tpu.pipeline_mode<synchronous>, transform_indices = @transform_5, window_bounds = array<i64: 1, 128>}, {pipeline_mode = #tpu.pipeline_mode<synchronous>, transform_indices = @transform_6, window_bounds = array<i64: 1, 128>}, {pipeline_mode = #tpu.pipeline_mode<synchronous>, transform_indices = @transform_7, window_bounds = array<i64: 1, 128>}, {pipeline_mode = #tpu.pipeline_mode<synchronous>, transform_indices = @transform_8, window_bounds = array<i64: 128, 512>}, {pipeline_mode = #tpu.pipeline_mode<synchronous>, transform_indices = @transform_9, window_bounds = array<i64: 1, 512>}, {pipeline_mode = #tpu.pipeline_mode<synchronous>, transform_indices = @transform_10, window_bounds = array<i64: 512, 128>}, {pipeline_mode = #tpu.pipeline_mode<synchronous>, transform_indices = @transform_11, window_bounds = array<i64: 1, 128>}, {pipeline_mode = #tpu.pipeline_mode<synchronous>, transform_indices = @transform_12, window_bounds = array<i64: 1, 128>}, {pipeline_mode = #tpu.pipeline_mode<synchronous>, transform_indices = @transform_13, window_bounds = array<i64: 1, 128>}, {transform_indices = @transform_14, window_bounds = array<i64: 8, 128>}]} {
    %c0 = arith.constant 0 : index
    %c0_0 = arith.constant 0 : index
    %0 = vector.load %arg1[%c0, %c0_0] : memref<8x128xbf16, #tpu.memory_space<vmem>>, vector<8x128xbf16>
    %1 = arith.extf %0 : vector<8x128xbf16> to vector<8x128xf32>
    %c0_1 = arith.constant 0 : index
    %c0_2 = arith.constant 0 : index
    %2 = vector.load %arg3[%c0_1, %c0_2] : memref<128x384xbf16, #tpu.memory_space<vmem>>, vector<128x384xbf16>
    %cst = arith.constant dense<0.000000e+00> : vector<8x384xf32>
    %3 = tpu.matmul %0, %2, %cst {dimension_numbers = #tpu.dot_dimension_numbers<[1], [0], [0], [1], [0, 0, 1, 1], [], []>} : vector<8x128xbf16>, vector<128x384xbf16>, vector<8x384xf32> -> vector<8x384xf32>
    %c0_3 = arith.constant 0 : index
    %c0_4 = arith.constant 0 : index
    %4 = vector.load %arg4[%c0_3, %c0_4] : memref<1x384xf32, #tpu.memory_space<vmem>>, vector<1x384xf32>
    %5 = vector.broadcast %4 : vector<1x384xf32> to vector<8x384xf32>
    %6 = arith.addf %3, %5 : vector<8x384xf32>
    %7 = arith.truncf %6 : vector<8x384xf32> to vector<8x384xbf16>
    %c0_5 = arith.constant 0 : index
    %c0_6 = arith.constant 0 : index
    %c0_7 = arith.constant 0 : index
    %8 = vector.load %arg2[%c0_5, %c0_6, %c0_7] : memref<1x1x8xf32, #tpu.memory_space<vmem>>, vector<1x1x8xf32>
    %9 = vector.shape_cast %8 : vector<1x1x8xf32> to vector<1x8xf32>
    %10 = vector.shape_cast %9 : vector<1x8xf32> to vector<1x8xf32>
    %11 = vector.broadcast %10 : vector<1x8xf32> to vector<8x8xf32>
    %12 = vector.extract_strided_slice %7 {offsets = [0, 0], sizes = [8, 32], strides = [1, 1]} : vector<8x384xbf16> to vector<8x32xbf16>
    %13 = vector.extract_strided_slice %7 {offsets = [0, 128], sizes = [8, 32], strides = [1, 1]} : vector<8x384xbf16> to vector<8x32xbf16>
    %14 = vector.extract_strided_slice %7 {offsets = [0, 256], sizes = [8, 32], strides = [1, 1]} : vector<8x384xbf16> to vector<8x32xbf16>
    %cst_8 = arith.constant dense<0.000000e+00> : vector<8x8xf32>
    %15 = tpu.matmul %12, %13, %cst_8 {dimension_numbers = #tpu.dot_dimension_numbers<[1], [1], [0], [0], [0, 0, 1, 0], [], []>} : vector<8x32xbf16>, vector<8x32xbf16>, vector<8x8xf32> -> vector<8x8xf32>
    %16 = arith.addf %15, %11 : vector<8x8xf32>
    %cst_9 = arith.constant dense<0xFF800000> : vector<8xf32>
    %17 = vector.multi_reduction <maximumf>, %16, %cst_9 [1] : vector<8x8xf32> to vector<8xf32>
    %18 = vector.shape_cast %17 : vector<8xf32> to vector<8x1xf32>
    %19 = vector.broadcast %18 : vector<8x1xf32> to vector<8x8xf32>
    %20 = arith.subf %16, %19 : vector<8x8xf32>
    %21 = math.exp %20 : vector<8x8xf32>
    %cst_10 = arith.constant dense<0.000000e+00> : vector<8xf32>
    %22 = vector.multi_reduction <add>, %21, %cst_10 [1] : vector<8x8xf32> to vector<8xf32>
    %23 = vector.shape_cast %22 : vector<8xf32> to vector<8x1xf32>
    %24 = tpu.reciprocal %23 {approx = true} : vector<8x1xf32> -> vector<8x1xf32>
    %25 = vector.broadcast %24 : vector<8x1xf32> to vector<8x8xf32>
    %26 = arith.mulf %21, %25 : vector<8x8xf32>
    %27 = arith.truncf %26 : vector<8x8xf32> to vector<8x8xbf16>
    %cst_11 = arith.constant dense<0.000000e+00> : vector<8x32xf32>
    %28 = tpu.matmul %27, %14, %cst_11 {dimension_numbers = #tpu.dot_dimension_numbers<[1], [0], [0], [1], [0, 0, 1, 1], [], []>} : vector<8x8xbf16>, vector<8x32xbf16>, vector<8x32xf32> -> vector<8x32xf32>
    %29 = vector.extract_strided_slice %7 {offsets = [0, 32], sizes = [8, 32], strides = [1, 1]} : vector<8x384xbf16> to vector<8x32xbf16>
    %30 = vector.extract_strided_slice %7 {offsets = [0, 160], sizes = [8, 32], strides = [1, 1]} : vector<8x384xbf16> to vector<8x32xbf16>
    %31 = vector.extract_strided_slice %7 {offsets = [0, 288], sizes = [8, 32], strides = [1, 1]} : vector<8x384xbf16> to vector<8x32xbf16>
    %cst_12 = arith.constant dense<0.000000e+00> : vector<8x8xf32>
    %32 = tpu.matmul %29, %30, %cst_12 {dimension_numbers = #tpu.dot_dimension_numbers<[1], [1], [0], [0], [0, 0, 1, 0], [], []>} : vector<8x32xbf16>, vector<8x32xbf16>, vector<8x8xf32> -> vector<8x8xf32>
    %33 = arith.addf %32, %11 : vector<8x8xf32>
    %cst_13 = arith.constant dense<0xFF800000> : vector<8xf32>
    %34 = vector.multi_reduction <maximumf>, %33, %cst_13 [1] : vector<8x8xf32> to vector<8xf32>
    %35 = vector.shape_cast %34 : vector<8xf32> to vector<8x1xf32>
    %36 = vector.broadcast %35 : vector<8x1xf32> to vector<8x8xf32>
    %37 = arith.subf %33, %36 : vector<8x8xf32>
    %38 = math.exp %37 : vector<8x8xf32>
    %cst_14 = arith.constant dense<0.000000e+00> : vector<8xf32>
    %39 = vector.multi_reduction <add>, %38, %cst_14 [1] : vector<8x8xf32> to vector<8xf32>
    %40 = vector.shape_cast %39 : vector<8xf32> to vector<8x1xf32>
    %41 = tpu.reciprocal %40 {approx = true} : vector<8x1xf32> -> vector<8x1xf32>
    %42 = vector.broadcast %41 : vector<8x1xf32> to vector<8x8xf32>
    %43 = arith.mulf %38, %42 : vector<8x8xf32>
    %44 = arith.truncf %43 : vector<8x8xf32> to vector<8x8xbf16>
    %cst_15 = arith.constant dense<0.000000e+00> : vector<8x32xf32>
    %45 = tpu.matmul %44, %31, %cst_15 {dimension_numbers = #tpu.dot_dimension_numbers<[1], [0], [0], [1], [0, 0, 1, 1], [], []>} : vector<8x8xbf16>, vector<8x32xbf16>, vector<8x32xf32> -> vector<8x32xf32>
    %46 = vector.extract_strided_slice %7 {offsets = [0, 64], sizes = [8, 32], strides = [1, 1]} : vector<8x384xbf16> to vector<8x32xbf16>
    %47 = vector.extract_strided_slice %7 {offsets = [0, 192], sizes = [8, 32], strides = [1, 1]} : vector<8x384xbf16> to vector<8x32xbf16>
    %48 = vector.extract_strided_slice %7 {offsets = [0, 320], sizes = [8, 32], strides = [1, 1]} : vector<8x384xbf16> to vector<8x32xbf16>
    %cst_16 = arith.constant dense<0.000000e+00> : vector<8x8xf32>
    %49 = tpu.matmul %46, %47, %cst_16 {dimension_numbers = #tpu.dot_dimension_numbers<[1], [1], [0], [0], [0, 0, 1, 0], [], []>} : vector<8x32xbf16>, vector<8x32xbf16>, vector<8x8xf32> -> vector<8x8xf32>
    %50 = arith.addf %49, %11 : vector<8x8xf32>
    %cst_17 = arith.constant dense<0xFF800000> : vector<8xf32>
    %51 = vector.multi_reduction <maximumf>, %50, %cst_17 [1] : vector<8x8xf32> to vector<8xf32>
    %52 = vector.shape_cast %51 : vector<8xf32> to vector<8x1xf32>
    %53 = vector.broadcast %52 : vector<8x1xf32> to vector<8x8xf32>
    %54 = arith.subf %50, %53 : vector<8x8xf32>
    %55 = math.exp %54 : vector<8x8xf32>
    %cst_18 = arith.constant dense<0.000000e+00> : vector<8xf32>
    %56 = vector.multi_reduction <add>, %55, %cst_18 [1] : vector<8x8xf32> to vector<8xf32>
    %57 = vector.shape_cast %56 : vector<8xf32> to vector<8x1xf32>
    %58 = tpu.reciprocal %57 {approx = true} : vector<8x1xf32> -> vector<8x1xf32>
    %59 = vector.broadcast %58 : vector<8x1xf32> to vector<8x8xf32>
    %60 = arith.mulf %55, %59 : vector<8x8xf32>
    %61 = arith.truncf %60 : vector<8x8xf32> to vector<8x8xbf16>
    %cst_19 = arith.constant dense<0.000000e+00> : vector<8x32xf32>
    %62 = tpu.matmul %61, %48, %cst_19 {dimension_numbers = #tpu.dot_dimension_numbers<[1], [0], [0], [1], [0, 0, 1, 1], [], []>} : vector<8x8xbf16>, vector<8x32xbf16>, vector<8x32xf32> -> vector<8x32xf32>
    %63 = vector.extract_strided_slice %7 {offsets = [0, 96], sizes = [8, 32], strides = [1, 1]} : vector<8x384xbf16> to vector<8x32xbf16>
    %64 = vector.extract_strided_slice %7 {offsets = [0, 224], sizes = [8, 32], strides = [1, 1]} : vector<8x384xbf16> to vector<8x32xbf16>
    %65 = vector.extract_strided_slice %7 {offsets = [0, 352], sizes = [8, 32], strides = [1, 1]} : vector<8x384xbf16> to vector<8x32xbf16>
    %cst_20 = arith.constant dense<0.000000e+00> : vector<8x8xf32>
    %66 = tpu.matmul %63, %64, %cst_20 {dimension_numbers = #tpu.dot_dimension_numbers<[1], [1], [0], [0], [0, 0, 1, 0], [], []>} : vector<8x32xbf16>, vector<8x32xbf16>, vector<8x8xf32> -> vector<8x8xf32>
    %67 = arith.addf %66, %11 : vector<8x8xf32>
    %cst_21 = arith.constant dense<0xFF800000> : vector<8xf32>
    %68 = vector.multi_reduction <maximumf>, %67, %cst_21 [1] : vector<8x8xf32> to vector<8xf32>
    %69 = vector.shape_cast %68 : vector<8xf32> to vector<8x1xf32>
    %70 = vector.broadcast %69 : vector<8x1xf32> to vector<8x8xf32>
    %71 = arith.subf %67, %70 : vector<8x8xf32>
    %72 = math.exp %71 : vector<8x8xf32>
    %cst_22 = arith.constant dense<0.000000e+00> : vector<8xf32>
    %73 = vector.multi_reduction <add>, %72, %cst_22 [1] : vector<8x8xf32> to vector<8xf32>
    %74 = vector.shape_cast %73 : vector<8xf32> to vector<8x1xf32>
    %75 = tpu.reciprocal %74 {approx = true} : vector<8x1xf32> -> vector<8x1xf32>
    %76 = vector.broadcast %75 : vector<8x1xf32> to vector<8x8xf32>
    %77 = arith.mulf %72, %76 : vector<8x8xf32>
    %78 = arith.truncf %77 : vector<8x8xf32> to vector<8x8xbf16>
    %cst_23 = arith.constant dense<0.000000e+00> : vector<8x32xf32>
    %79 = tpu.matmul %78, %65, %cst_23 {dimension_numbers = #tpu.dot_dimension_numbers<[1], [0], [0], [1], [0, 0, 1, 1], [], []>} : vector<8x8xbf16>, vector<8x32xbf16>, vector<8x32xf32> -> vector<8x32xf32>
    %80 = tpu.concatenate %28, %45, %62, %79 in 1 : vector<8x32xf32>, vector<8x32xf32>, vector<8x32xf32>, vector<8x32xf32> -> vector<8x128xf32>
    %81 = arith.truncf %80 : vector<8x128xf32> to vector<8x128xbf16>
    %c0_24 = arith.constant 0 : index
    %c0_25 = arith.constant 0 : index
    %82 = vector.load %arg5[%c0_24, %c0_25] : memref<128x128xbf16, #tpu.memory_space<vmem>>, vector<128x128xbf16>
    %cst_26 = arith.constant dense<0.000000e+00> : vector<8x128xf32>
    %83 = tpu.matmul %81, %82, %cst_26 {dimension_numbers = #tpu.dot_dimension_numbers<[1], [0], [0], [1], [0, 0, 1, 1], [], []>} : vector<8x128xbf16>, vector<128x128xbf16>, vector<8x128xf32> -> vector<8x128xf32>
    %c0_27 = arith.constant 0 : index
    %c0_28 = arith.constant 0 : index
    %84 = vector.load %arg6[%c0_27, %c0_28] : memref<1x128xf32, #tpu.memory_space<vmem>>, vector<1x128xf32>
    %85 = vector.broadcast %84 : vector<1x128xf32> to vector<8x128xf32>
    %86 = arith.addf %83, %85 : vector<8x128xf32>
    %87 = arith.addf %1, %86 : vector<8x128xf32>
    %cst_29 = arith.constant dense<0.000000e+00> : vector<8xf32>
    %88 = vector.multi_reduction <add>, %87, %cst_29 [1] : vector<8x128xf32> to vector<8xf32>
    %89 = vector.shape_cast %88 : vector<8xf32> to vector<8x1xf32>
    %cst_30 = arith.constant 1.280000e+02 : f32
    %90 = vector.broadcast %cst_30 : f32 to vector<8x1xf32>
    %91 = arith.divf %89, %90 : vector<8x1xf32>
    %92 = vector.broadcast %91 : vector<8x1xf32> to vector<8x128xf32>
    %93 = arith.subf %87, %92 : vector<8x128xf32>
    %94 = vector.broadcast %91 : vector<8x1xf32> to vector<8x128xf32>
    %95 = arith.subf %87, %94 : vector<8x128xf32>
    %96 = arith.mulf %93, %95 : vector<8x128xf32>
    %cst_31 = arith.constant dense<0.000000e+00> : vector<8xf32>
    %97 = vector.multi_reduction <add>, %96, %cst_31 [1] : vector<8x128xf32> to vector<8xf32>
    %98 = vector.shape_cast %97 : vector<8xf32> to vector<8x1xf32>
    %cst_32 = arith.constant 1.280000e+02 : f32
    %99 = vector.broadcast %cst_32 : f32 to vector<8x1xf32>
    %100 = arith.divf %98, %99 : vector<8x1xf32>
    %101 = vector.broadcast %91 : vector<8x1xf32> to vector<8x128xf32>
    %102 = arith.subf %87, %101 : vector<8x128xf32>
    %cst_33 = arith.constant 9.99999974E-6 : f32
    %103 = vector.broadcast %cst_33 : f32 to vector<8x1xf32>
    %104 = arith.addf %100, %103 : vector<8x1xf32>
    %105 = math.rsqrt %104 : vector<8x1xf32>
    %106 = vector.broadcast %105 : vector<8x1xf32> to vector<8x128xf32>
    %107 = arith.mulf %102, %106 : vector<8x128xf32>
    %c0_34 = arith.constant 0 : index
    %c0_35 = arith.constant 0 : index
    %108 = vector.load %arg7[%c0_34, %c0_35] : memref<1x128xf32, #tpu.memory_space<vmem>>, vector<1x128xf32>
    %109 = vector.broadcast %108 : vector<1x128xf32> to vector<8x128xf32>
    %110 = arith.mulf %107, %109 : vector<8x128xf32>
    %c0_36 = arith.constant 0 : index
    %c0_37 = arith.constant 0 : index
    %111 = vector.load %arg8[%c0_36, %c0_37] : memref<1x128xf32, #tpu.memory_space<vmem>>, vector<1x128xf32>
    %112 = vector.broadcast %111 : vector<1x128xf32> to vector<8x128xf32>
    %113 = arith.addf %110, %112 : vector<8x128xf32>
    %114 = arith.truncf %113 : vector<8x128xf32> to vector<8x128xbf16>
    %c0_38 = arith.constant 0 : index
    %c0_39 = arith.constant 0 : index
    %115 = vector.load %arg9[%c0_38, %c0_39] : memref<128x512xbf16, #tpu.memory_space<vmem>>, vector<128x512xbf16>
    %cst_40 = arith.constant dense<0.000000e+00> : vector<8x512xf32>
    %116 = tpu.matmul %114, %115, %cst_40 {dimension_numbers = #tpu.dot_dimension_numbers<[1], [0], [0], [1], [0, 0, 1, 1], [], []>} : vector<8x128xbf16>, vector<128x512xbf16>, vector<8x512xf32> -> vector<8x512xf32>
    %c0_41 = arith.constant 0 : index
    %c0_42 = arith.constant 0 : index
    %117 = vector.load %arg10[%c0_41, %c0_42] : memref<1x512xf32, #tpu.memory_space<vmem>>, vector<1x512xf32>
    %118 = vector.broadcast %117 : vector<1x512xf32> to vector<8x512xf32>
    %119 = arith.addf %116, %118 : vector<8x512xf32>
    %cst_43 = arith.constant 5.000000e-01 : f32
    %120 = vector.broadcast %cst_43 : f32 to vector<8x512xf32>
    %121 = arith.mulf %120, %119 : vector<8x512xf32>
    %cst_44 = arith.constant 4.471500e-02 : f32
    %122 = vector.broadcast %cst_44 : f32 to vector<8x512xf32>
    %123 = arith.mulf %122, %119 : vector<8x512xf32>
    %124 = arith.mulf %123, %119 : vector<8x512xf32>
    %125 = arith.mulf %124, %119 : vector<8x512xf32>
    %126 = arith.addf %119, %125 : vector<8x512xf32>
    %cst_45 = arith.constant 0.797884583 : f32
    %127 = vector.broadcast %cst_45 : f32 to vector<8x512xf32>
    %128 = arith.mulf %127, %126 : vector<8x512xf32>
    %129 = math.tanh %128 : vector<8x512xf32>
    %cst_46 = arith.constant 1.000000e+00 : f32
    %130 = vector.broadcast %cst_46 : f32 to vector<8x512xf32>
    %131 = arith.addf %130, %129 : vector<8x512xf32>
    %132 = arith.mulf %121, %131 : vector<8x512xf32>
    %133 = arith.truncf %132 : vector<8x512xf32> to vector<8x512xbf16>
    %c0_47 = arith.constant 0 : index
    %c0_48 = arith.constant 0 : index
    %134 = vector.load %arg11[%c0_47, %c0_48] : memref<512x128xbf16, #tpu.memory_space<vmem>>, vector<512x128xbf16>
    %cst_49 = arith.constant dense<0.000000e+00> : vector<8x128xf32>
    %135 = tpu.matmul %133, %134, %cst_49 {dimension_numbers = #tpu.dot_dimension_numbers<[1], [0], [0], [1], [0, 0, 1, 1], [], []>} : vector<8x512xbf16>, vector<512x128xbf16>, vector<8x128xf32> -> vector<8x128xf32>
    %c0_50 = arith.constant 0 : index
    %c0_51 = arith.constant 0 : index
    %136 = vector.load %arg12[%c0_50, %c0_51] : memref<1x128xf32, #tpu.memory_space<vmem>>, vector<1x128xf32>
    %137 = vector.broadcast %136 : vector<1x128xf32> to vector<8x128xf32>
    %138 = arith.addf %135, %137 : vector<8x128xf32>
    %139 = arith.addf %138, %113 : vector<8x128xf32>
    %cst_52 = arith.constant dense<0.000000e+00> : vector<8xf32>
    %140 = vector.multi_reduction <add>, %139, %cst_52 [1] : vector<8x128xf32> to vector<8xf32>
    %141 = vector.shape_cast %140 : vector<8xf32> to vector<8x1xf32>
    %cst_53 = arith.constant 1.280000e+02 : f32
    %142 = vector.broadcast %cst_53 : f32 to vector<8x1xf32>
    %143 = arith.divf %141, %142 : vector<8x1xf32>
    %144 = vector.broadcast %143 : vector<8x1xf32> to vector<8x128xf32>
    %145 = arith.subf %139, %144 : vector<8x128xf32>
    %146 = vector.broadcast %143 : vector<8x1xf32> to vector<8x128xf32>
    %147 = arith.subf %139, %146 : vector<8x128xf32>
    %148 = arith.mulf %145, %147 : vector<8x128xf32>
    %cst_54 = arith.constant dense<0.000000e+00> : vector<8xf32>
    %149 = vector.multi_reduction <add>, %148, %cst_54 [1] : vector<8x128xf32> to vector<8xf32>
    %150 = vector.shape_cast %149 : vector<8xf32> to vector<8x1xf32>
    %cst_55 = arith.constant 1.280000e+02 : f32
    %151 = vector.broadcast %cst_55 : f32 to vector<8x1xf32>
    %152 = arith.divf %150, %151 : vector<8x1xf32>
    %153 = vector.broadcast %143 : vector<8x1xf32> to vector<8x128xf32>
    %154 = arith.subf %139, %153 : vector<8x128xf32>
    %cst_56 = arith.constant 9.99999974E-6 : f32
    %155 = vector.broadcast %cst_56 : f32 to vector<8x1xf32>
    %156 = arith.addf %152, %155 : vector<8x1xf32>
    %157 = math.rsqrt %156 : vector<8x1xf32>
    %158 = vector.broadcast %157 : vector<8x1xf32> to vector<8x128xf32>
    %159 = arith.mulf %154, %158 : vector<8x128xf32>
    %c0_57 = arith.constant 0 : index
    %c0_58 = arith.constant 0 : index
    %160 = vector.load %arg13[%c0_57, %c0_58] : memref<1x128xf32, #tpu.memory_space<vmem>>, vector<1x128xf32>
    %161 = vector.broadcast %160 : vector<1x128xf32> to vector<8x128xf32>
    %162 = arith.mulf %159, %161 : vector<8x128xf32>
    %c0_59 = arith.constant 0 : index
    %c0_60 = arith.constant 0 : index
    %163 = vector.load %arg14[%c0_59, %c0_60] : memref<1x128xf32, #tpu.memory_space<vmem>>, vector<1x128xf32>
    %164 = vector.broadcast %163 : vector<1x128xf32> to vector<8x128xf32>
    %165 = arith.addf %162, %164 : vector<8x128xf32>
    %166 = arith.truncf %165 : vector<8x128xf32> to vector<8x128xbf16>
    %c0_61 = arith.constant 0 : index
    %c0_62 = arith.constant 0 : index
    %167 = vector.load %arg15[%c0_61, %c0_62] : memref<8x128xbf16, #tpu.memory_space<vmem>>, vector<8x128xbf16>
    tpu.vector_store %arg15[%c0_61, %c0_62], %166 {strides = array<i32>} : memref<8x128xbf16, #tpu.memory_space<vmem>>, vector<8x128xbf16>,
    return
  }
  func.func @transform_0(%arg0: i32) -> (i32, i32) {
    %c0_i32 = arith.constant 0 : i32
    %c0_i32_0 = arith.constant 0 : i32
    return %arg0, %c0_i32 : i32, i32
  }
  func.func @transform_1(%arg0: i32) -> (i32, i32, i32) {
    %c0_i32 = arith.constant 0 : i32
    %c0_i32_0 = arith.constant 0 : i32
    %c0_i32_1 = arith.constant 0 : i32
    return %arg0, %c0_i32, %c0_i32_0 : i32, i32, i32
  }
  func.func @transform_2(%arg0: i32) -> (i32, i32) {
    %c0_i32 = arith.constant 0 : i32
    %c0_i32_0 = arith.constant 0 : i32
    %c0_i32_1 = arith.constant 0 : i32
    return %c0_i32, %c0_i32_0 : i32, i32
  }
  func.func @transform_3(%arg0: i32) -> (i32, i32) {
    %c0_i32 = arith.constant 0 : i32
    %c0_i32_0 = arith.constant 0 : i32
    %c0_i32_1 = arith.constant 0 : i32
    return %c0_i32, %c0_i32_0 : i32, i32
  }
  func.func @transform_4(%arg0: i32) -> (i32, i32) {
    %c0_i32 = arith.constant 0 : i32
    %c0_i32_0 = arith.constant 0 : i32
    %c0_i32_1 = arith.constant 0 : i32
    return %c0_i32, %c0_i32_0 : i32, i32
  }
  func.func @transform_5(%arg0: i32) -> (i32, i32) {
    %c0_i32 = arith.constant 0 : i32
    %c0_i32_0 = arith.constant 0 : i32
    %c0_i32_1 = arith.constant 0 : i32
    return %c0_i32, %c0_i32_0 : i32, i32
  }
  func.func @transform_6(%arg0: i32) -> (i32, i32) {
    %c0_i32 = arith.constant 0 : i32
    %c0_i32_0 = arith.constant 0 : i32
    %c0_i32_1 = arith.constant 0 : i32
    return %c0_i32, %c0_i32_0 : i32, i32
  }
  func.func @transform_7(%arg0: i32) -> (i32, i32) {
    %c0_i32 = arith.constant 0 : i32
    %c0_i32_0 = arith.constant 0 : i32
    %c0_i32_1 = arith.constant 0 : i32
    return %c0_i32, %c0_i32_0 : i32, i32
  }
  func.func @transform_8(%arg0: i32) -> (i32, i32) {
    %c0_i32 = arith.constant 0 : i32
    %c0_i32_0 = arith.constant 0 : i32
    %c0_i32_1 = arith.constant 0 : i32
    return %c0_i32, %c0_i32_0 : i32, i32
  }
  func.func @transform_9(%arg0: i32) -> (i32, i32) {
    %c0_i32 = arith.constant 0 : i32
    %c0_i32_0 = arith.constant 0 : i32
    %c0_i32_1 = arith.constant 0 : i32
    return %c0_i32, %c0_i32_0 : i32, i32
  }
  func.func @transform_10(%arg0: i32) -> (i32, i32) {
    %c0_i32 = arith.constant 0 : i32
    %c0_i32_0 = arith.constant 0 : i32
    %c0_i32_1 = arith.constant 0 : i32
    return %c0_i32, %c0_i32_0 : i32, i32
  }
  func.func @transform_11(%arg0: i32) -> (i32, i32) {
    %c0_i32 = arith.constant 0 : i32
    %c0_i32_0 = arith.constant 0 : i32
    %c0_i32_1 = arith.constant 0 : i32
    return %c0_i32, %c0_i32_0 : i32, i32
  }
  func.func @transform_12(%arg0: i32) -> (i32, i32) {
    %c0_i32 = arith.constant 0 : i32
    %c0_i32_0 = arith.constant 0 : i32
    %c0_i32_1 = arith.constant 0 : i32
    return %c0_i32, %c0_i32_0 : i32, i32
  }
  func.func @transform_13(%arg0: i32) -> (i32, i32) {
    %c0_i32 = arith.constant 0 : i32
    %c0_i32_0 = arith.constant 0 : i32
    %c0_i32_1 = arith.constant 0 : i32
    return %c0_i32, %c0_i32_0 : i32, i32
  }
  func.func @transform_14(%arg0: i32) -> (i32, i32) {
    %c0_i32 = arith.constant 0 : i32
    %c0_i32_0 = arith.constant 0 : i32
    return %arg0, %c0_i32 : i32, i32
  }
}

</mosaic_0001>

<bundles_post_ra>
// kernel: regression_model_forward.3
= control target key start
LH: loop header
LB: loop body
LE: loop exit
PB: predicated region body
PF: predicated region fallthrough
CT: control target
= control target key end

     0   :  { %v97_v2 = vmov 128.0   ;;  %s133_s0 = inlined_call_operand.vmem [shape: f32[16,128], index: 0, kind: input, shape index: {}]   ;;  %s134_s1 = inlined_call_operand.vmem [shape: f32[1,128], index: 1, kind: input, shape index: {}]   ;;  %s135_s2 = inlined_call_operand.vmem [shape: f32[1,128], index: 2, kind: input, shape index: {}]   ;;  %s136_s3 = inlined_call_operand.vmem [shape: bf16[16,128], index: 3, kind: output, shape index: {}]  }
   0x1   :  { %v14_v0 = vld [vmem:[%s133_s0] sm:$0xff]  ;;  %v15_v1 = vld [vmem:[%s133_s0 + $0x8] sm:$0xff]  ;;  %91 = vrcp.f32 %v97_v2 }
   0x2   :  { %16 = vadd.xlane.f32.xlu0 %v14_v0  ;;  %v89_v35 = vld [vmem:[%s134_s1] ss:$0 sm:$0xff] }
   0x3   :  { %v90_v39 = vld [vmem:[%s135_s2] ss:$0 sm:$0xff] }
   0x7   :  { %v92_v3 = vpop.eup %91 }
   0x8   :  { %v21_v4 = vmul.f32 128.0, %v92_v3  ;;  %vm25_vm0 = vweird.f32 %v92_v3 }
   0xa   :  { %18 = vadd.xlane.f32.xlu0 %v15_v1  ;;  %v22_v5 = vsub.f32 1.0, %v21_v4 }
   0xc   :  { %v23_v6 = vmul.f32 %v92_v3, %v22_v5 }
   0xe   :  { %v24_v7 = vadd.f32 %v92_v3, %v23_v6 }
  0x10   :  { %v26_v8 = vsel %vm25_vm0, %v92_v3, %v24_v7 }
  0x75   :  { %v17_v9 = vpop.xlane.xlu0 %16 }
  0x76   :  { %v27_v10 = vmul.f32 %v26_v8, %v17_v9 }
  0x78   :  { %v29_v11 = vsub.f32 %v14_v0, %v27_v10 }
  0x7a   :  { %v31_v12 = vmul.f32 %v29_v11, %v29_v11 }
  0x7c   :  { %33 = vadd.xlane.f32.xlu1 %v31_v12 }
  0x7d   :  { %v19_v13 = vpop.xlane.xlu0 %18 }
  0x7e   :  { %v28_v14 = vmul.f32 %v26_v8, %v19_v13 }
  0x80   :  { %v30_v15 = vsub.f32 %v15_v1, %v28_v14 }
  0x82   :  { %v32_v16 = vmul.f32 %v30_v15, %v30_v15 }
  0x84   :  { %35 = vadd.xlane.f32.xlu1 %v32_v16 }
  0xef   :  { %v34_v17 = vpop.xlane.xlu1 %33 }
  0xf0   :  { %v37_v18 = vmul.f32 %v34_v17, %v26_v8 }
  0xf2   :  { %v39_v19 = vadd.f32 1e-05, %v37_v18 }
  0xf4   :  { %93 = vrsqrt.f32 %v39_v19  ;;  %vm47_vm2 = vweird.f32 %v39_v19 }
  0xf7   :  { %v36_v20 = vpop.xlane.xlu1 %35 }
  0xf8   :  { %v38_v21 = vmul.f32 %v36_v20, %v26_v8 }
  0xfa   :  { %v94_v22 = vpop.eup %93  ;;  %v40_v23 = vadd.f32 1e-05, %v38_v21 }
  0xfb   :  { %v42_v24 = vmul.f32 %v94_v22, %v39_v19  ;;  %vm48_vm1 = vweird.f32 %v94_v22 }
  0xfc   :  { %95 = vrsqrt.f32 %v40_v23  ;;  %vm49_vm3 = vmor %vm47_vm2, %vm48_vm1  ;;  %vm57_vm5 = vweird.f32 %v40_v23 }
  0xfd   :  { %v43_v25 = vmul.f32 %v94_v22, %v42_v24 }
  0xff   :  { %v44_v26 = vmul.f32 0.5, %v43_v25 }
 0x101   :  { %v45_v27 = vsub.f32 1.5, %v44_v26 }
 0x102   :  { %v96_v28 = vpop.eup %95 }
 0x103   :  { %v46_v29 = vmul.f32 %v94_v22, %v45_v27  ;;  %v52_v30 = vmul.f32 %v96_v28, %v40_v23  ;;  %vm58_vm4 = vweird.f32 %v96_v28 }
 0x104   :  { %vm59_vm6 = vmor %vm57_vm5, %vm58_vm4 }
 0x105   :  { %v53_v31 = vmul.f32 %v96_v28, %v52_v30  ;;  %v50_v32 = vsel %vm49_vm3, %v94_v22, %v46_v29 }
 0x106   :  { %v61_v36 = vmul.f32 %v50_v32, %v29_v11 }
 0x107   :  { %v54_v33 = vmul.f32 0.5, %v53_v31 }
 0x108   :  { %v67_v40 = vmul.f32 %v89_v35, %v61_v36 }
 0x109   :  { %v55_v34 = vsub.f32 1.5, %v54_v33 }
 0x10a   :  { %v73_v43 = vadd.f32 %v90_v39, %v67_v40 }
 0x10b   :  { %v56_v37 = vmul.f32 %v96_v28, %v55_v34 }
 0x10d   :  { %v60_v38 = vsel %vm59_vm6, %v96_v28, %v56_v37 }
 0x10e   :  { %v62_v41 = vmul.f32 %v60_v38, %v30_v15 }
 0x110   :  { %v68_v42 = vmul.f32 %v89_v35, %v62_v41 }
 0x112   :  { %v74_v44 = vadd.f32 %v90_v39, %v68_v42 }
 0x114   :  { %v86_v45 = vpack.c.bf16 %v74_v44, %v73_v43 }
 0x116   :  { %87 = vst [vmem:[%s136_s3] sm:$0xff] %v86_v45  }

// kernel: regression_model_forward.5
= control target key start
LH: loop header
LB: loop body
LE: loop exit
PB: predicated region body
PF: predicated region fallthrough
CT: control target
= control target key end

     0   :  { %s2871_s0 = inlined_call_operand.vmem [shape: bf16[16,128], index: 0, kind: input, shape index: {}]   ;;  %s2872_s1 = inlined_call_operand.vmem [shape: f32[2,1,8], index: 1, kind: input, shape index: {}]   ;;  %s2873_s2 = inlined_call_operand.hbm [shape: bf16[128,384], index: 2, kind: input, shape index: {}]   ;;  %s2874_s3 = inlined_call_operand.vmem [shape: f32[1,384], index: 3, kind: input, shape index: {}]   ;;  %s2875_s4 = inlined_call_operand.hbm [shape: bf16[128,128], index: 4, kind: input, shape index: {}]   ;;  %s2876_s5 = inlined_call_operand.vmem [shape: f32[1,128], index: 5, kind: input, shape index: {}]   ;;  %s2877_s6 = inlined_call_operand.vmem [shape: f32[1,128], index: 6, kind: input, shape index: {}]   ;;  %s2878_s7 = inlined_call_operand.vmem [shape: f32[1,128], index: 7, kind: input, shape index: {}]   ;;  %s2879_s8 = inlined_call_operand.hbm [shape: bf16[128,512], index: 8, kind: input, shape index: {}]   ;;  %s2880_s9 = inlined_call_operand.vmem [shape: f32[1,512], index: 9, kind: input, shape index: {}]   ;;  %s2881_s10 = inlined_call_operand.hbm [shape: bf16[512,128], index: 10, kind: input, shape index: {}]   ;;  %s2882_s11 = inlined_call_operand.vmem [shape: f32[1,128], index: 11, kind: input, shape index: {}]   ;;  %s2883_s12 = inlined_call_operand.vmem [shape: f32[1,128], index: 12, kind: input, shape index: {}]   ;;  %s2884_s13 = inlined_call_operand.vmem [shape: f32[1,128], index: 13, kind: input, shape index: {}]   ;;  %s2885_s14 = inlined_call_operand.vmem [shape: bf16[16,128], index: 14, kind: output, shape index: {}]  }
   0x1   :  { %2887 = sst [smem:[#allocation13_spill]] %s2873_s2 }
   0x2   :  { %2888 = sst [smem:[#allocation14_spill]] %s2875_s4 }
   0x3   :  { %2889 = sst [smem:[#allocation15_spill]] %s2884_s13 }
   0x4   :  { %2890 = sst [smem:[#allocation16_spill]] %s2885_s14 }
   0x5   :  { %19 = vsyncpa [#allocation3], 0 }
   0x6   :  { %20 = vsyncpa [#allocation5], 0 }
   0x7   :  { %21 = vsyncpa [#allocation8], 0  ;;  %s2699_s29 = smov 0  }
   0x8 LB: > { %2891 = sst [smem:[#allocation12_spill]] %s2608_s29  ;;  %s2708_s17 = sadd.s32 4294967295, %s2608_s29   ;;  %s2608_s29 = sphi %s2699_s29, %s27_s29  }
   0x9   : > { %s2892_s4 = sld [smem:[#allocation14_spill]]  ;;  %p1871_p0 = scmp.ge.s32.totalorder %s2608_s29, 1 }
   0xa   : > { %p362_p1 = scmp.lt.s32.totalorder %s2608_s29, 3  ;;  %p2403_p2 = scmp.eq.s32.totalorder %s2708_s17, 0 }
   0xb   : > { %s2610_s19 = smov [#allocation4]   ;;  %s2894_s2 = sld [smem:[#allocation13_spill]] }
   0xc   : > { %p2713_p3 = pnand %p1871_p0, %p362_p1  ;;  %s392_s20 = sshll.u32 %s2610_s19, 4  ;;  %s393_s20 = int_to_ptr.vmem [resolvable:$true] %s392_s20 }
   0xd   : > { %s2611_s25 = smov [#allocation2]   ;;  %s2612_s27 = smov 64  }
   0xe   : > { %p2390_p4 = pneg %p2713_p3  ;;  %s375_s26 = sshll.u32 %s2611_s25, 4  ;;  %s376_s26 = int_to_ptr.vmem [resolvable:$true] %s375_s26 }
   0xf   : > { %s390_s16 = sshll.u32 %s2892_s4, 4  ;;  %s2613_s28 = smov 4   ;;  %s391_s16 = int_to_ptr.hbm [resolvable:$true] %s390_s16 }
  0x10   : > { %p2724_p5 = pnand %p2403_p2, %p2390_p4  ;;  %s413_s19 = sshll.u32 %s2879_s8, 4  ;;  %s414_s19 = int_to_ptr.hbm [resolvable:$true] %s413_s19 }
  0x11   : > { %s373_s23 = sshll.u32 %s2894_s2, 4  ;;  %s2614_s21 = smov 192   ;;  %s374_s23 = int_to_ptr.hbm [resolvable:$true] %s373_s23 }
  0x12   : > { %2396 = dma.hbm_to_vmem [thread:$0]  (!%p2724_p5), %s391_s16, 1024, %s393_s20, [#allocation5], %s2612_s27, %s2612_s27, %s2613_s28  }
  0x13   : > { %s2615_s22 = smov 12   ;;  %s2616_s2 = smov [#allocation6]  }
  0x14   : > { %2393 = dma.hbm_to_vmem [thread:$0]  (!%p2724_p5), %s374_s23, 3072, %s376_s26, [#allocation3], %s2614_s21, %s2614_s21, %s2615_s22  }
  0x15   : > { %s415_s4 = sshll.u32 %s2616_s2, 4  ;;  %s2617_s29 = smov 256   ;;  %s416_s4 = int_to_ptr.vmem [resolvable:$true] %s415_s4 }
  0x16   : > { %s2618_s25 = smov 16   ;;  %s430_s16 = sshll.u32 %s2881_s10, 4  ;;  %s431_s16 = int_to_ptr.hbm [resolvable:$true] %s430_s16 }
  0x17   : > { %2399 = dma.hbm_to_vmem [thread:$0]  (!%p2724_p5), %s414_s19, 4096, %s416_s4, [#allocation5], %s2617_s29, %s2617_s29, %s2618_s25  }
  0x18   : > { %s2619_s20 = smov [#allocation7]   ;;  %470 = sbr.rel (%p2713_p3) target bundleno = 2251 (0x8cb), region = 76 }
  0x19   : > { %s432_s30 = sshll.u32 %s2619_s20, 4  ;;  %s433_s30 = int_to_ptr.vmem [resolvable:$true] %s432_s30 }
  0x1a   : > { %2402 = dma.hbm_to_vmem [thread:$0]  (!%p2724_p5), %s431_s16, 4096, %s433_s30, [#allocation8], %s2612_s27, %s2612_s27, %s2613_s28  }
  0x1d   : > { %2595 = dma.done.wait (%p2403_p2), [#allocation3], 3072  }
  0x1e   : > { %2597 = vsyncadd (%p2403_p2), [#allocation3], 4294964224 }
  0x1f   : > { %2599 = dma.done.wait (%p2403_p2), [#allocation5], 5120  }
  0x20   : > { %2601 = vsyncadd (%p2403_p2), [#allocation5], 4294962176 }
  0x21   : > { %2603 = dma.done.wait (%p2403_p2), [#allocation8], 4096  }
  0x22   : > { %2605 = vsyncadd (%p2403_p2), [#allocation8], 4294963200  ;;  %v1970_v0 = vld [vmem:[#allocation2 + $0xa8] sm:$0xf]  ;;  %v2300_v1 = vld [vmem:[#allocation2 + $0xb0] sm:$0xf0] }
  0x23   : > { %v2299_v2 = vld [vmem:[#allocation2 + $0xac] sm:$0xf]  ;;  %v1971_v3 = vor.u32 %v2300_v1, %v1970_v0  ;;  %v1972_v4 = vld [vmem:[#allocation2 + $0xb4] sm:$0xf0]  ;;  %v1958_v5 = vld [vmem:[#allocation2 + $0x90] sm:$0xf] }
  0x24   : > { %v2297_v6 = vld [vmem:[#allocation2 + $0x98] sm:$0xf0]  ;;  %v1975_v7 = vor.u32 %v2299_v2, %v1972_v4  ;;  %v2296_v8 = vld [vmem:[#allocation2 + $0x94] sm:$0xf]  ;;  %v1960_v9 = vld [vmem:[#allocation2 + $0x9c] sm:$0xf0] }
  0x25   : > { %715 = vmatpush.bf16.msra.mxu0 %v1971_v3  ;;  %v1959_v10 = vor.u32 %v2297_v6, %v1958_v5  ;;  %v1963_v11 = vor.u32 %v2296_v8, %v1960_v9  ;;  %v1946_v12 = vld [vmem:[#allocation2 + $0x78] sm:$0xf]  ;;  %v2294_v13 = vld [vmem:[#allocation2 + $0x80] sm:$0xf0]  ;;  %v2293_v14 = vld [vmem:[#allocation2 + $0x7c] sm:$0xf] }
  0x26   : > { %728 = vmatpush.bf16.msra.mxu1 %v1975_v7  ;;  %v1948_v15 = vld [vmem:[#allocation2 + $0x84] sm:$0xf0]  ;;  %v1947_v16 = vor.u32 %v2294_v13, %v1946_v12  ;;  %v1934_v18 = vld [vmem:[#allocation2 + $0x60] sm:$0xf]  ;;  %v2291_v19 = vld [vmem:[#allocation2 + $0x68] sm:$0xf0] }
  0x27   : > { %v1951_v17 = vor.u32 %v2293_v14, %v1948_v15  ;;  %v2290_v20 = vld [vmem:[#allocation2 + $0x64] sm:$0xf]  ;;  %v1936_v21 = vld [vmem:[#allocation2 + $0x6c] sm:$0xf0]  ;;  %p533_p6 = scmp.lt.s32.totalorder %s2708_s17, 1  ;;  %v1935_v22 = vor.u32 %v2291_v19, %v1934_v18  ;;  %vm763_vm0 = vcmask 261120  }
  0x28   : > { %v1978_v23 = vld [vmem:[#allocation2 + $0xb0] sm:$0xf]  ;;  %v2301_v24 = vld [vmem:[#allocation2 + $0xb8] sm:$0xf0]  ;;  %v1966_v25 = vld [vmem:[#allocation2 + $0x98] sm:$0xf]  ;;  %v1939_v26 = vor.u32 %v2290_v20, %v1936_v21 }
  0x29   : > { %716 = vmatpush.bf16.msra.mxu0 %v1959_v10  ;;  %v1922_v27 = vld [vmem:[#allocation2 + $0x48] sm:$0xf]  ;;  %v2288_v28 = vld [vmem:[#allocation2 + $0x50] sm:$0xf0]  ;;  %v1979_v29 = vor.u32 %v2301_v24, %v1978_v23  ;;  %v2298_v30 = vld [vmem:[#allocation2 + $0xa0] sm:$0xf0] }
  0x2a   : > { %729 = vmatpush.bf16.msra.mxu1 %v1963_v11  ;;  %v2287_v31 = vld [vmem:[#allocation2 + $0x4c] sm:$0xf]  ;;  %v1924_v32 = vld [vmem:[#allocation2 + $0x54] sm:$0xf0]  ;;  %s2900_s17 = smov (!%p533_p6, %s2708_s17), 1  ;;  %v1967_v33 = vor.u32 %v2298_v30, %v1966_v25  ;;  %v1923_v34 = vor.u32 %v2288_v28, %v1922_v27  ;;  %s2620_s27 = smov 64  }
  0x2b   : > { %741 = vmatpush.bf16.msra.mxu2 %v1979_v29  ;;  %v1910_v35 = vld [vmem:[#allocation2 + $0x30] sm:$0xf]  ;;  %s539_s13 = scalar_lea.vmem %s2872_s1, %s2900_s17  ;;  %v1954_v36 = vld [vmem:[#allocation2 + $0x80] sm:$0xf]  ;;  %v2295_v37 = vld [vmem:[#allocation2 + $0x88] sm:$0xf0]  ;;  %v1927_v38 = vor.u32 %v2287_v31, %v1924_v32 }
  0x2c   : > { %v2285_v39 = vld [vmem:[#allocation2 + $0x38] sm:$0xf0]  ;;  %v2284_v40 = vld [vmem:[#allocation2 + $0x34] sm:$0xf]  ;;  %v1912_v41 = vld [vmem:[#allocation2 + $0x3c] sm:$0xf0]  ;;  %v1955_v42 = vor.u32 %v2295_v37, %v1954_v36 }
  0x2d   : > { %717 = vmatpush.bf16.msra.mxu0 %v1947_v16  ;;  %v1911_v43 = vor.u32 %v2285_v39, %v1910_v35  ;;  %v1942_v44 = vld [vmem:[#allocation2 + $0x68] sm:$0xf]  ;;  %v2292_v45 = vld [vmem:[#allocation2 + $0x70] sm:$0xf0]  ;;  %v1915_v46 = vor.u32 %v2284_v40, %v1912_v41  ;;  %v1898_v47 = vld [vmem:[#allocation2 + $0x18] sm:$0xf] }
  0x2e   : > { %730 = vmatpush.bf16.msra.mxu1 %v1951_v17  ;;  %v2282_v48 = vld [vmem:[#allocation2 + $0x20] sm:$0xf0]  ;;  %v2281_v49 = vld [vmem:[#allocation2 + $0x1c] sm:$0xf]  ;;  %v1900_v50 = vld [vmem:[#allocation2 + $0x24] sm:$0xf0]  ;;  %v1943_v51 = vor.u32 %v2292_v45, %v1942_v44 }
  0x2f   : > { %742 = vmatpush.bf16.msra.mxu2 %v1967_v33  ;;  %v1899_v52 = vor.u32 %v2282_v48, %v1898_v47  ;;  %v1930_v53 = vld [vmem:[#allocation2 + $0x50] sm:$0xf]  ;;  %v2289_v54 = vld [vmem:[#allocation2 + $0x58] sm:$0xf0]  ;;  %v1903_v55 = vor.u32 %v2281_v49, %v1900_v50  ;;  %v1886_v56 = vld [vmem:[#allocation2] sm:$0xf] }
  0x30   : > { %v2279_v57 = vld [vmem:[#allocation2 + $0x8] sm:$0xf0]  ;;  %v2278_v58 = vld [vmem:[#allocation2 + $0x4] sm:$0xf]  ;;  %v1888_v59 = vld [vmem:[#allocation2 + $0xc] sm:$0xf0]  ;;  %v1931_v60 = vor.u32 %v2289_v54, %v1930_v53 }
  0x31   : > { %718 = vmatpush.bf16.msra.mxu0 %v1935_v22  ;;  %s1882_s14 = sshll.u32 %s2900_s17, 2  ;;  %v1887_v61 = vor.u32 %v2279_v57, %v1886_v56  ;;  %v1918_v62 = vld [vmem:[#allocation2 + $0x38] sm:$0xf]  ;;  %v2286_v63 = vld [vmem:[#allocation2 + $0x40] sm:$0xf0]  ;;  %v1891_v0 = vor.u32 %v2278_v58, %v1888_v59  ;;  %s2621_s28 = smov 96  }
  0x32   : > { %731 = vmatpush.bf16.msra.mxu1 %v1939_v26  ;;  %s536_s23 = scalar_lea.vmem %s2871_s0, %s1882_s14  ;;  %v1919_v1 = vor.u32 %v2286_v63, %v1918_v62  ;;  %v1906_v3 = vld [vmem:[#allocation2 + $0x20] sm:$0xf]  ;;  %v2283_v4 = vld [vmem:[#allocation2 + $0x28] sm:$0xf0]  ;;  %v1894_v6 = vld [vmem:[#allocation2 + $0x8] sm:$0xf] }
  0x33   : > { %743 = vmatpush.bf16.msra.mxu2 %v1955_v42  ;;  %v2772_v2 = vld [vmem:[%s536_s23] sm:$0xf]  ;;  %v1907_v5 = vor.u32 %v2283_v4, %v1906_v3  ;;  %v2280_v7 = vld [vmem:[#allocation2 + $0x10] sm:$0xf0]  ;;  %s2622_s15 = smov 32   ;;  %vm799_vm1 = vcmask 1043456  }
  0x34   : > { %v1895_v8 = vor.u32 %v2280_v7, %v1894_v6  ;;  %v579_v9 = vld [vmem:[%s2874_s3] sm:$0x7]  ;;  %vm783_vm2 = vcmask 64512   ;;  %vm1002_vm3 = vcmask 523264   ;;  %vm1004_vm4 = vcmask 785408   ;;  %s2897_s21 = sld [smem:[#allocation16_spill]] }
  0x35   : > { %719 = vmatpush.bf16.msra.mxu0 %v1923_v34  ;;  %v581_v10 = vperm.slane %v579_v9, 0  ;;  %v582_v11 = vperm.slane %v579_v9, 1  ;;  %v583_v25 = vperm.slane %v579_v9, 2  ;;  %v2433_v34 = vld [vmem:[%s539_s13] ss:$0 sm:$0xff] }
  0x36   : > { %732 = vmatpush.bf16.msra.mxu1 %v1927_v38 }
  0x37   : > { %744 = vmatpush.bf16.msra.mxu2 %v1943_v51 }
  0x39   : > { %720 = vmatpush.bf16.msra.mxu0 %v1911_v43 }
  0x3a   : > { %733 = vmatpush.bf16.msra.mxu1 %v1915_v46  ;;  %s543_s22 = scalar_lea.vmem %s2897_s21, %s1882_s14 }
  0x3b   : > { %745 = vmatpush.bf16.msra.mxu2 %v1931_v60 }
  0x3d   : > { %721 = vmatpush.bf16.msra.mxu0 %v1899_v52 }
  0x3e   : > { %734 = vmatpush.bf16.msra.mxu1 %v1903_v55 }
  0x3f   : > { %746 = vmatpush.bf16.msra.mxu2 %v1919_v1 }
  0x41   : > { %722 = vmatpush.bf16.msra.mxu0 %v1887_v61 }
  0x42   : > { %735 = vmatpush.bf16.msra.mxu1 %v1891_v0 }
  0x43   : > { %747 = vmatpush.bf16.msra.mxu2 %v1907_v5 }
  0x44   : > { %723 = vmatmul.bf16.vlgmr.msra.gmra.mxu0 %v2772_v2 }
  0x45   : > { %736 = vmatmul.bf16.vlgmr.msra.gmra.mxu1 %v2772_v2 }
  0x47   : > { %748 = vmatpush.bf16.msra.mxu2 %v1895_v8 }
  0x4a   : > { %749 = vmatmul.bf16.vlgmr.msra.gmra.mxu2 %v2772_v2 }
  0xc1   : > { %v724_v12 = vpop.f32.mrf.mxu0 }
  0xc2   : > { %v725_v13 = vadd.f32 %v724_v12, %v581_v10  ;;  %v737_v14 = vpop.f32.mrf.mxu1 }
  0xc3   : > { %v738_v15 = vadd.f32 %v737_v14, %v582_v11 }
  0xc5   : > { %v754_v16 = vpack.c.bf16 %v738_v15, %v725_v13 }
  0xc7   : > { %v761_v17 = vunpack.c.h.b16 %v754_v16  ;;  %v816_v22 = vunpack.c.l.b16 %v754_v16 }
  0xc9   : > { %v726_v18 = vpop.f32.mrf.mxu0  ;;  %v762_v19 = vpack.c.b16 %v761_v17, %v761_v17  ;;  %v817_v23 = vpack.c.b16 %v816_v22, %v816_v22 }
  0xca   : > { %v739_v20 = vpop.f32.mrf.mxu1 }
  0xcb   : > { %879 = vrot.lane.b32.xlu2 %v762_v19, %s2620_s27  ;;  %820 = vrot.lane.b32.xlu1 %v762_v19, %s2621_s28  ;;  %v768_v21 = vsel %vm763_vm0, %v762_v19, 0 }
  0xcc   : > { %777 = vmatpush.bf16.xpose.msra.mxu3 %v768_v21 }
  0xcd   : > { %v750_v24 = vpop.f32.mrf.mxu2 }
  0xce   : > { %v751_v26 = vadd.f32 %v750_v24, %v583_v25 }
  0xd0   : > { %v755_v28 = vpack.c.bf16 %v751_v26, %v751_v26 }
  0xd2   : > { %v801_v29 = vsel %vm799_vm1, %v755_v28, 0  ;;  %v854_v4 = vunpack.c.l.b16 %v755_v28 }
  0xd3   : > { %935 = vrot.lane.b32.xlu2 %v762_v19, %s2622_s15  ;;  %818 = vrot.lane.b32.xlu1 %v817_v23, %s2621_s28 }
  0xd4   : > { %1980 = vmatmul.msk.bf16.vlgmr.msra.gmra.mxu3 %vm763_vm0, %v754_v16  ;;  %v855_v5 = vpack.c.b16 %v854_v4, %v854_v4  ;;  %v2623_v4 = vmov 128.0  }
  0xd5   : > { %v752_v27 = vpop.f32.mrf.mxu2  ;;  %810 = vmatpush.bf16.msrb.mxu3 %v801_v29 }
  0xdb   : > { %933 = vrot.lane.b32.xlu1 %v817_v23, %s2622_s15 }
 0x125   : > { %v880_v30 = vpop.permute.xlu2 %879 }
 0x126   : > { %v885_v31 = vsel %vm763_vm0, %v880_v30, 0 }
 0x127   : > { %894 = vmatpush.bf16.xpose.msrb.mxu2 %v885_v31 }
 0x12d   : > { %v936_v47 = vpop.permute.xlu2 %935 }
 0x12e   : > { %v941_v49 = vsel %vm763_vm0, %v936_v47, 0  ;;  %v2307_v47 = vld [vmem:[#allocation4 + $0x28] sm:$0xff] }
 0x13d   : > { %v821_v32 = vpop.permute.xlu1 %820 }
 0x13e   : > { %v826_v33 = vsel %vm763_vm0, %v821_v32, 0 }
 0x13f   : > { %835 = vmatpush.bf16.xpose.msra.mxu3 %v826_v33 }
 0x145   : > { %v819_v51 = vpop.permute.xlu1 %818 }
 0x14d   : > { %v934_v52 = vpop.permute.xlu1 %933 }
 0x157   : > { %v779_v35 = vpop.f32.mrf.mxu3 }
 0x158   : > { %v780_v36 = vadd.f32 %v2433_v34, %v779_v35 }
 0x15a   : > { %v784_v37 = vsel %vm783_vm2, %v780_v36, -inf }
 0x15b   : > { %785 = vmax.xlane.f32.xlu0 %v784_v37 }
 0x15f   : > { %v781_v38 = vpop.f32.mrf.mxu3 }
 0x1ce   : > { %v786_v39 = vpop.xlane.xlu0 %785 }
 0x1cf   : > { %v787_v40 = vsub.f32 %v780_v36, %v786_v39 }
 0x1d1   : > { %v788_v41 = vmul.f32 1.442695, %v787_v40 }
 0x1d3   : > { %2440 = vpow2.f32 %v788_v41 }
 0x1d9   : > { %v2441_v42 = vpop.eup %2440 }
 0x1da   : > { %v790_v43 = vsel %vm783_vm2, %v2441_v42, 0.0 }
 0x1db   : > { %791 = vadd.xlane.f32.xlu0 %v790_v43 }
 0x1ef   : > { %877 = vrot.lane.b32.xlu0 %v817_v23, %s2620_s27 }
 0x24e   : > { %v792_v44 = vpop.xlane.xlu0 %791 }
 0x24f   : > { %2442 = vrcp.f32 %v792_v44 }
 0x255   : > { %v2443_v45 = vpop.eup %2442 }
 0x256   : > { %v794_v46 = vmul.f32 %v2443_v45, %v2441_v42  ;;  %v2309_v45 = vld [vmem:[#allocation4 + $0x38] sm:$0xff] }
 0x257   : > { %1075 = vmatpush.bf16.msrb.mxu1 %v2309_v45 }
 0x258   : > { %v795_v48 = vpack.c.bf16 %v794_v46, %v794_v46  ;;  %v2308_v46 = vld [vmem:[#allocation4 + $0x30] sm:$0xff] }
 0x25a   : > { %1981 = vmatmul.msk.bf16.vlgmr.msrb.gmra.mxu3 %vm783_vm2, %v795_v48  ;;  %v2306_v48 = vld [vmem:[#allocation4 + $0x20] sm:$0xff] }
 0x25b   : > { %950 = vmatpush.bf16.xpose.msrb.mxu3 %v941_v49  ;;  %1076 = vmatpush.bf16.msrb.mxu1 %v2308_v46  ;;  %v2305_v49 = vld [vmem:[#allocation4 + $0x18] sm:$0xff]  ;;  %v2331_v46 = vld [vmem:[#allocation6 + $0xac] sm:$0xf] }
 0x25f   : > { %1077 = vmatpush.bf16.msrb.mxu1 %v2307_v47  ;;  %v2112_v47 = vld [vmem:[#allocation6 + $0xb8] sm:$0xf0] }
 0x261   : > { %v878_v50 = vpop.permute.xlu0 %877 }
 0x262   : > { %1984 = vmatmul.msk.bf16.vlgmr.msrb.gmra.mxu2 %vm763_vm0, %v878_v50  ;;  %v2304_v50 = vld [vmem:[#allocation4 + $0x10] sm:$0xff] }
 0x263   : > { %1078 = vmatpush.bf16.msrb.mxu1 %v2306_v48  ;;  %v2115_v48 = vor.u32 %v2331_v46, %v2112_v47 }
 0x267   : > { %1079 = vmatpush.bf16.msrb.mxu1 %v2305_v49  ;;  %v2086_v49 = vld [vmem:[#allocation6 + $0x80] sm:$0xf] }
 0x26a   : > { %1982 = vmatmul.msk.bf16.vlgmr.msra.gmra.mxu3 %vm763_vm0, %v819_v51  ;;  %v2303_v51 = vld [vmem:[#allocation4 + $0x8] sm:$0xff] }
 0x26b   : > { %1080 = vmatpush.bf16.msrb.mxu1 %v2304_v50  ;;  %v2328_v50 = vld [vmem:[#allocation6 + $0x8c] sm:$0xf0] }
 0x26f   : > { %1081 = vmatpush.bf16.msrb.mxu1 %v2303_v51  ;;  %v2326_v51 = vld [vmem:[#allocation6 + $0x84] sm:$0xf] }
 0x27a   : > { %1986 = vmatmul.msk.bf16.vlgmr.msrb.gmra.mxu3 %vm763_vm0, %v934_v52  ;;  %v2302_v52 = vld [vmem:[#allocation4] sm:$0xff] }
 0x27b   : > { %1082 = vmatpush.bf16.msrb.mxu1 %v2302_v52  ;;  %v2087_v52 = vor.u32 %v2328_v50, %v2086_v49  ;;  %v2373_v49 = vld [vmem:[#allocation7 + $0xf8] sm:$0xff] }
 0x2dd   : > { %v2803_v53 = vpop.f32.mrf.mxu3 }
 0x2e5   : > { %v814_v54 = vpop.f32.mrf.mxu3  ;;  %v896_v55 = vpop.f32.mrf.mxu2 }
 0x2e6   : > { %v897_v56 = vadd.f32 %v2433_v34, %v896_v55 }
 0x2e8   : > { %v900_v57 = vsel %vm783_vm2, %v897_v56, -inf }
 0x2e9   : > { %901 = vmax.xlane.f32.xlu1 %v900_v57 }
 0x2ed   : > { %v837_v58 = vpop.f32.mrf.mxu3  ;;  %v898_v59 = vpop.f32.mrf.mxu2 }
 0x2ee   : > { %v838_v60 = vadd.f32 %v2433_v34, %v837_v58 }
 0x2f0   : > { %v841_v61 = vsel %vm783_vm2, %v838_v60, -inf }
 0x2f1   : > { %842 = vmax.xlane.f32.xlu2 %v841_v61  ;;  %v2434_v61 = vld [vmem:[%s2876_s5] ss:$0 sm:$0xff] }
 0x2f5   : > { %v839_v62 = vpop.f32.mrf.mxu3 }
 0x2f6   : > { %v546_v62 = vunpack.c.l.bf16 %v2772_v2 }
 0x2fd   : > { %v952_v63 = vpop.f32.mrf.mxu3 }
 0x2fe   : > { %v953_v0 = vadd.f32 %v2433_v34, %v952_v63 }
 0x300   : > { %v956_v1 = vsel %vm783_vm2, %v953_v0, -inf }
 0x301   : > { %957 = vmax.xlane.f32.xlu0 %v956_v1 }
 0x305   : > { %v954_v3 = vpop.f32.mrf.mxu3 }
 0x315   : > { %912 = vrot.lane.b32.xlu0 %v855_v5, %s2620_s27 }
 0x35c   : > { %v902_v6 = vpop.xlane.xlu1 %901 }
 0x35d   : > { %v903_v7 = vsub.f32 %v897_v56, %v902_v6  ;;  %v2338_v6 = vld [vmem:[#allocation6 + $0xe4] sm:$0xf] }
 0x35f   : > { %v904_v8 = vmul.f32 1.442695, %v903_v7 }
 0x361   : > { %2444 = vpow2.f32 %v904_v8  ;;  %v2136_v8 = vld [vmem:[#allocation6 + $0xf0] sm:$0xf0] }
 0x364   : > { %v843_v9 = vpop.xlane.xlu2 %842 }
 0x365   : > { %v844_v10 = vsub.f32 %v838_v60, %v843_v9  ;;  %v2142_v9 = vld [vmem:[#allocation6 + $0xe8] sm:$0xf] }
 0x367   : > { %v2445_v11 = vpop.eup %2444  ;;  %v845_v12 = vmul.f32 1.442695, %v844_v10  ;;  %v2341_v10 = vld [vmem:[#allocation6 + $0xf4] sm:$0xf0] }
 0x368   : > { %v906_v13 = vsel %vm783_vm2, %v2445_v11, 0.0 }
 0x369   : > { %2446 = vpow2.f32 %v845_v12  ;;  %907 = vadd.xlane.f32.xlu1 %v906_v13  ;;  %v2143_v12 = vor.u32 %v2341_v10, %v2142_v9  ;;  %v2339_v13 = vld [vmem:[#allocation6 + $0xec] sm:$0xf]  ;;  %v2054_v10 = vld [vmem:[#allocation6 + $0x40] sm:$0xf] }
 0x36f   : > { %v2447_v14 = vpop.eup %2446 }
 0x370   : > { %v847_v15 = vsel %vm783_vm2, %v2447_v14, 0.0 }
 0x371   : > { %848 = vadd.xlane.f32.xlu2 %v847_v15 }
 0x374   : > { %v958_v16 = vpop.xlane.xlu0 %957 }
 0x375   : > { %v959_v17 = vsub.f32 %v953_v0, %v958_v16 }
 0x377   : > { %v960_v18 = vmul.f32 1.442695, %v959_v17 }
 0x379   : > { %2448 = vpow2.f32 %v960_v18 }
 0x37f   : > { %v2449_v19 = vpop.eup %2448 }
 0x380   : > { %v962_v20 = vsel %vm783_vm2, %v2449_v19, 0.0 }
 0x381   : > { %963 = vadd.xlane.f32.xlu1 %v962_v20 }
 0x387   : > { %v913_v21 = vpop.permute.xlu0 %912 }
 0x388   : > { %v918_v22 = vsel %vm799_vm1, %v913_v21, 0 }
 0x389   : > { %856 = vrot.lane.b32.xlu2 %v855_v5, %s2621_s28  ;;  %927 = vmatpush.bf16.msra.mxu2 %v918_v22 }
 0x39a   : > { %968 = vrot.lane.b32.xlu1 %v855_v5, %s2622_s15  ;;  %v2134_v5 = vld [vmem:[#allocation6 + $0xe0] sm:$0xf] }
 0x3dc   : > { %v908_v23 = vpop.xlane.xlu1 %907 }
 0x3dd   : > { %2450 = vrcp.f32 %v908_v23 }
 0x3e3   : > { %v2451_v24 = vpop.eup %2450 }
 0x3e4   : > { %v910_v25 = vmul.f32 %v2451_v24, %v2445_v11  ;;  %v849_v26 = vpop.xlane.xlu2 %848  ;;  %v2139_v11 = vor.u32 %v2338_v6, %v2136_v8  ;;  %v2080_v8 = vld [vmem:[#allocation6 + $0x78] sm:$0xf0] }
 0x3e5   : > { %2452 = vrcp.f32 %v849_v26  ;;  %v2336_v26 = vld [vmem:[#allocation6 + $0xcc] sm:$0xf0] }
 0x3e6   : > { %v911_v27 = vpack.c.bf16 %v910_v25, %v910_v25  ;;  %1342 = vmatpush.bf16.msra.mxu3 %v2139_v11  ;;  %v2118_v25 = vld [vmem:[#allocation6 + $0xc0] sm:$0xf]  ;;  %v2320_v11 = vld [vmem:[#allocation6 + $0x4c] sm:$0xf0] }
 0x3e8   : > { %1985 = vmatmul.msk.bf16.vlgmr.msra.gmra.mxu2 %vm783_vm2, %v911_v27  ;;  %v2334_v27 = vld [vmem:[#allocation6 + $0xc4] sm:$0xf] }
 0x3eb   : > { %v2453_v28 = vpop.eup %2452 }
 0x3ec   : > { %v851_v29 = vmul.f32 %v2453_v28, %v2447_v14  ;;  %v857_v30 = vpop.permute.xlu2 %856  ;;  %v2144_v14 = vld [vmem:[#allocation6 + $0xf8] sm:$0xf0]  ;;  %v2119_v28 = vor.u32 %v2336_v26, %v2118_v25  ;;  %v2314_v25 = vld [vmem:[#allocation6 + $0x24] sm:$0xf] }
 0x3ed   : > { %v862_v31 = vsel %vm799_vm1, %v857_v30, 0  ;;  %v2147_v2 = vor.u32 %v2339_v13, %v2144_v14  ;;  %v2126_v30 = vld [vmem:[#allocation6 + $0xc8] sm:$0xf]  ;;  %v2055_v13 = vor.u32 %v2320_v11, %v2054_v10  ;;  %v2056_v14 = vld [vmem:[#allocation6 + $0x50] sm:$0xf0]  ;;  %v2370_v10 = vld [vmem:[#allocation7 + $0xe0] sm:$0xff] }
 0x3ee   : > { %871 = vmatpush.bf16.msrb.mxu0 %v862_v31  ;;  %v852_v32 = vpack.c.bf16 %v851_v29, %v851_v29  ;;  %v2120_v29 = vld [vmem:[#allocation6 + $0xd0] sm:$0xf0]  ;;  %v2337_v31 = vld [vmem:[#allocation6 + $0xd4] sm:$0xf0]  ;;  %v2347_v11 = vld [vmem:[#allocation7 + $0x28] sm:$0xff] }
 0x3ef   : > { %1368 = vmatpush.bf16.msra.mxu1 %v2147_v2  ;;  %v2062_v2 = vld [vmem:[#allocation6 + $0x48] sm:$0xf] }
 0x3f1   : > { %1983 = vmatmul.msk.bf16.vlgmr.msrb.gmra.mxu0 %vm783_vm2, %v852_v32  ;;  %v2123_v32 = vor.u32 %v2334_v27, %v2120_v29  ;;  %v2040_v27 = vld [vmem:[#allocation6 + $0x30] sm:$0xf0]  ;;  %v2317_v29 = vld [vmem:[#allocation6 + $0x34] sm:$0xf0] }
 0x3f3   : > { %1343 = vmatpush.bf16.msra.mxu3 %v2123_v32  ;;  %v2315_v32 = vld [vmem:[#allocation6 + $0x2c] sm:$0xf] }
 0x3f4   : > { %v964_v33 = vpop.xlane.xlu1 %963 }
 0x3f5   : > { %2454 = vrcp.f32 %v964_v33  ;;  %v2127_v33 = vor.u32 %v2337_v31, %v2126_v30  ;;  %v2043_v30 = vor.u32 %v2314_v25, %v2040_v27  ;;  %v2352_v25 = vld [vmem:[#allocation7 + $0x50] sm:$0xff]  ;;  %v2366_v27 = vld [vmem:[#allocation7 + $0xc0] sm:$0xff] }
 0x3f6   : > { %2456 = vrcp.f32 %v2623_v4  ;;  %v2078_v4 = vld [vmem:[#allocation6 + $0x68] sm:$0xf] }
 0x3fb   : > { %v2455_v34 = vpop.eup %2454 }
 0x3fc   : > { %v966_v35 = vmul.f32 %v2455_v34, %v2449_v19  ;;  %v2457_v15 = vpop.eup %2456  ;;  %v2335_v34 = vld [vmem:[#allocation6 + $0xcc] sm:$0xf] }
 0x3fd   : > { %v1092_v16 = vmul.f32 128.0, %v2457_v15  ;;  %vm1096_vm5 = vweird.f32 %v2457_v15 }
 0x3fe   : > { %v967_v38 = vpack.c.bf16 %v966_v35, %v966_v35  ;;  %v2128_v35 = vld [vmem:[#allocation6 + $0xd8] sm:$0xf0] }
 0x3ff   : > { %v1093_v17 = vsub.f32 1.0, %v1092_v16 }
 0x401   : > { %v1094_v18 = vmul.f32 %v2457_v15, %v1093_v17 }
 0x403   : > { %v1095_v19 = vadd.f32 %v2457_v15, %v1094_v18  ;;  %v2319_v18 = vld [vmem:[#allocation6 + $0x4c] sm:$0xf] }
 0x405   : > { %v2829_v20 = vsel %vm1096_vm5, %v2457_v15, %v1095_v19  ;;  %v2321_v15 = vld [vmem:[#allocation6 + $0x54] sm:$0xf0]  ;;  %v2064_v19 = vld [vmem:[#allocation6 + $0x58] sm:$0xf0] }
 0x406   : > { %v2063_v17 = vor.u32 %v2321_v15, %v2062_v2  ;;  %v2346_v2 = vld [vmem:[#allocation7 + $0x20] sm:$0xff] }
 0x407   : > { %v2354_v15 = vld [vmem:[#allocation7 + $0x60] sm:$0xff] }
 0x40c   : > { %v969_v36 = vpop.permute.xlu1 %968 }
 0x40d   : > { %v974_v37 = vsel %vm799_vm1, %v969_v36, 0  ;;  %v2131_v36 = vor.u32 %v2335_v34, %v2128_v35  ;;  %v2022_v34 = vld [vmem:[#allocation6] sm:$0xf] }
 0x40e   : > { %983 = vmatpush.bf16.msra.mxu0 %v974_v37  ;;  %v2102_v37 = vld [vmem:[#allocation6 + $0xa0] sm:$0xf] }
 0x40f   : > { %1369 = vmatpush.bf16.msra.mxu1 %v2131_v36  ;;  %v2312_v36 = vld [vmem:[#allocation6 + $0xc] sm:$0xf0] }
 0x411   : > { %1987 = vmatmul.msk.bf16.vlgmr.msra.gmra.mxu0 %vm783_vm2, %v967_v38  ;;  %v2332_v38 = vld [vmem:[#allocation6 + $0xac] sm:$0xf0] }
 0x412   : > { %1355 = vmatpush.bf16.msrb.mxu0 %v2143_v12  ;;  %v2318_v12 = vld [vmem:[#allocation6 + $0x44] sm:$0xf] }
 0x413   : > { %1370 = vmatpush.bf16.msra.mxu1 %v2115_v48  ;;  %v2059_v16 = vor.u32 %v2318_v12, %v2056_v14  ;;  %v2365_v48 = vld [vmem:[#allocation7 + $0xb8] sm:$0xff]  ;;  %v2355_v12 = vld [vmem:[#allocation7 + $0x68] sm:$0xff] }
 0x414   : > { %v2369_v14 = vld [vmem:[#allocation7 + $0xd8] sm:$0xff] }
 0x416   : > { %1356 = vmatpush.bf16.msrb.mxu0 %v2127_v33  ;;  %v2048_v33 = vld [vmem:[#allocation6 + $0x38] sm:$0xf0] }
 0x417   : > { %v2051_v35 = vor.u32 %v2315_v32, %v2048_v33  ;;  %v2350_v32 = vld [vmem:[#allocation7 + $0x40] sm:$0xff] }
 0x46b   : > { %v929_v39 = vpop.f32.mrf.mxu2 }
 0x46e   : > { %v873_v40 = vpop.f32.mrf.mxu0 }
 0x46f   : > { %990 = vrot.lane.b32.xlu2 %v873_v40, %s2622_s15  ;;  %v2103_v40 = vor.u32 %v2332_v38, %v2102_v37  ;;  %v2310_v37 = vld [vmem:[#allocation6 + $0x4] sm:$0xf]  ;;  %v2024_v38 = vld [vmem:[#allocation6 + $0x10] sm:$0xf0] }
 0x473   : > { %v931_v41 = vpop.f32.mrf.mxu2 }
 0x474   : > { %v2104_v41 = vld [vmem:[#allocation6 + $0xb0] sm:$0xf0] }
 0x476   : > { %v875_v42 = vpop.f32.mrf.mxu0 }
 0x477   : > { %994 = vrot.lane.b32.xlu2 %v929_v39, %s2620_s27  ;;  %v2330_v39 = vld [vmem:[#allocation6 + $0xa4] sm:$0xf]  ;;  %v2110_v42 = vld [vmem:[#allocation6 + $0xa8] sm:$0xf] }
 0x48e   : > { %v985_v43 = vpop.f32.mrf.mxu0 }
 0x48f   : > { %998 = vrot.lane.b32.xlu0 %v985_v43, %s2621_s28  ;;  %v2333_v43 = vld [vmem:[#allocation6 + $0xb4] sm:$0xf0]  ;;  %s2896_s28 = sld [smem:[#allocation15_spill]] }
 0x490   : > { %v2111_v45 = vor.u32 %v2333_v43, %v2110_v42  ;;  %v2313_v42 = vld [vmem:[#allocation6 + $0x14] sm:$0xf0]  ;;  %v2311_v43 = vld [vmem:[#allocation6 + $0xc] sm:$0xf] }
 0x492   : > { %1357 = vmatpush.bf16.msrb.mxu0 %v2111_v45  ;;  %v2032_v45 = vld [vmem:[#allocation6 + $0x18] sm:$0xf0] }
 0x493   : > { %v2035_v46 = vor.u32 %v2311_v43, %v2032_v45 }
 0x496   : > { %v987_v44 = vpop.f32.mrf.mxu0 }
 0x497   : > { %v2107_v44 = vor.u32 %v2330_v39, %v2104_v41  ;;  %v2023_v39 = vor.u32 %v2312_v36, %v2022_v34  ;;  %v2030_v41 = vld [vmem:[#allocation6 + $0x8] sm:$0xf] }
 0x499   : > { %1344 = vmatpush.bf16.msra.mxu3 %v2107_v44  ;;  %v2031_v44 = vor.u32 %v2313_v42, %v2030_v41 }
 0x4c9   : > { %v991_v54 = vpop.permute.xlu2 %990 }
 0x4ca   : > { %v1001_v56 = vsel %vm763_vm0, %v2803_v53, %v991_v54  ;;  %v2340_v53 = vld [vmem:[#allocation6 + $0xec] sm:$0xf0]  ;;  %v2088_v54 = vld [vmem:[#allocation6 + $0x90] sm:$0xf0] }
 0x4cb   : > { %v2135_v7 = vor.u32 %v2340_v53, %v2134_v5  ;;  %v2325_v5 = vld [vmem:[#allocation6 + $0x74] sm:$0xf0] }
 0x4cc   : > { %v2079_v6 = vor.u32 %v2325_v5, %v2078_v4  ;;  %v2349_v5 = vld [vmem:[#allocation7 + $0x38] sm:$0xff] }
 0x4cd   : > { %1329 = vmatpush.bf16.msrb.mxu2 %v2135_v7  ;;  %v2323_v7 = vld [vmem:[#allocation6 + $0x6c] sm:$0xf] }
 0x4ce   : > { %v2083_v9 = vor.u32 %v2323_v7, %v2080_v8  ;;  %v2348_v7 = vld [vmem:[#allocation7 + $0x30] sm:$0xff] }
 0x4cf   : > { %v2356_v8 = vld [vmem:[#allocation7 + $0x70] sm:$0xff] }
 0x4d1   : > { %v995_v55 = vpop.permute.xlu2 %994  ;;  %1330 = vmatpush.bf16.msrb.mxu2 %v2119_v28  ;;  %v2046_v28 = vld [vmem:[#allocation6 + $0x28] sm:$0xf] }
 0x4d2   : > { %v1003_v57 = vsel %vm1002_vm3, %v1001_v56, %v995_v55  ;;  %v2094_v55 = vld [vmem:[#allocation6 + $0x88] sm:$0xf]  ;;  %v2329_v56 = vld [vmem:[#allocation6 + $0x94] sm:$0xf0]  ;;  %v2047_v31 = vor.u32 %v2317_v29, %v2046_v28 }
 0x4d3   : > { %v2343_v28 = vld [vmem:[#allocation7 + $0x8] sm:$0xff] }
 0x4d4   : > { %v2351_v29 = vld [vmem:[#allocation7 + $0x48] sm:$0xff] }
 0x4d5   : > { %1331 = vmatpush.bf16.msrb.mxu2 %v2103_v40  ;;  %v2027_v40 = vor.u32 %v2310_v37, %v2024_v38 }
 0x4d9   : > { %1332 = vmatpush.bf16.msrb.mxu2 %v2087_v52  ;;  %v2372_v52 = vld [vmem:[#allocation7 + $0xf0] sm:$0xff] }
 0x501   : > { %v999_v58 = vpop.permute.xlu0 %998 }
 0x502   : > { %v1005_v59 = vsel %vm1004_vm4, %v1003_v57, %v999_v58  ;;  %v2091_v57 = vor.u32 %v2326_v51, %v2088_v54  ;;  %v2095_v58 = vor.u32 %v2329_v56, %v2094_v55  ;;  %v2364_v51 = vld [vmem:[#allocation7 + $0xb0] sm:$0xff] }
 0x503   : > { %v1006_v60 = vpack.c.bf16 %v1005_v59, %v1005_v59  ;;  %v2327_v59 = vld [vmem:[#allocation6 + $0x8c] sm:$0xf] }
 0x504   : > { %1345 = vmatpush.bf16.msra.mxu3 %v2091_v57  ;;  %1358 = vmatpush.bf16.msrb.mxu0 %v2095_v58 }
 0x505   : > { %1083 = vmatmul.bf16.vlgmr.msrb.gmra.mxu1 %v1006_v60  ;;  %v2096_v60 = vld [vmem:[#allocation6 + $0x98] sm:$0xf0] }
 0x508   : > { %1359 = vmatpush.bf16.msrb.mxu0 %v2079_v6  ;;  %v2363_v6 = vld [vmem:[#allocation7 + $0xa8] sm:$0xff] }
 0x50c   : > { %1360 = vmatpush.bf16.msrb.mxu0 %v2063_v17  ;;  %v2368_v17 = vld [vmem:[#allocation7 + $0xd0] sm:$0xff] }
 0x510   : > { %1361 = vmatpush.bf16.msrb.mxu0 %v2047_v31  ;;  %v2342_v31 = vld [vmem:[#allocation7] sm:$0xff] }
 0x514   : > { %1362 = vmatpush.bf16.msrb.mxu0 %v2031_v44 }
 0x518   : > { %1707 = vmatpush.bf16.msra.mxu0 %v2365_v48 }
 0x51c   : > { %1708 = vmatpush.bf16.msra.mxu0 %v2364_v51 }
 0x520   : > { %1709 = vmatpush.bf16.msra.mxu0 %v2363_v6 }
 0x582   : > { %v1084_v63 = vpop.f32.mrf.mxu1 }
 0x583   : > { %v1085_v0 = vadd.f32 %v2434_v61, %v1084_v63  ;;  %v2099_v61 = vor.u32 %v2327_v59, %v2096_v60  ;;  %v2324_v63 = vld [vmem:[#allocation6 + $0x6c] sm:$0xf0] }
 0x585   : > { %v1088_v1 = vadd.f32 %v1085_v0, %v546_v62  ;;  %v2070_v62 = vld [vmem:[#allocation6 + $0x60] sm:$0xf]  ;;  %v2322_v0 = vld [vmem:[#allocation6 + $0x64] sm:$0xf]  ;;  %1371 = vmatpush.bf16.msra.mxu1 %v2099_v61 }
 0x586   : > { %v2435_v61 = vld [vmem:[%s2877_s6] ss:$0 sm:$0xff] }
 0x587   : > { %1089 = vadd.xlane.f32.xlu2 %v1088_v1 }
 0x589   : > { %1372 = vmatpush.bf16.msra.mxu1 %v2083_v9  ;;  %v2362_v9 = vld [vmem:[#allocation7 + $0xa0] sm:$0xff] }
 0x58a   : > { %v1086_v3 = vpop.f32.mrf.mxu1  ;;  %1710 = vmatpush.bf16.msra.mxu0 %v2362_v9 }
 0x58b   : > { %v2072_v3 = vld [vmem:[#allocation6 + $0x70] sm:$0xf0] }
 0x58c   : > { %v2075_v53 = vor.u32 %v2322_v0, %v2072_v3  ;;  %v2436_v0 = vld [vmem:[%s2878_s7] ss:$0 sm:$0xff] }
 0x58e   : > { %1346 = vmatpush.bf16.msra.mxu3 %v2075_v53  ;;  %v2357_v53 = vld [vmem:[#allocation7 + $0x78] sm:$0xff] }
 0x592   : > { %1347 = vmatpush.bf16.msra.mxu3 %v2059_v16  ;;  %v2360_v16 = vld [vmem:[#allocation7 + $0x90] sm:$0xff] }
 0x596   : > { %1348 = vmatpush.bf16.msra.mxu3 %v2043_v30  ;;  %v1159_v30 = vld [vmem:[%s2880_s9] sm:$0xf] }
 0x597   : > { %v1163_v33 = vperm.slane %v1159_v30, 2  ;;  %v1164_v34 = vperm.slane %v1159_v30, 3 }
 0x59a   : > { %1349 = vmatpush.bf16.msra.mxu3 %v2027_v40  ;;  %v1162_v40 = vperm.slane %v1159_v30, 1 }
 0x59e   : > { %1694 = vmatpush.bf16.msrb.mxu3 %v2357_v53 }
 0x5a2   : > { %1695 = vmatpush.bf16.msrb.mxu3 %v2356_v8 }
 0x5a6   : > { %1696 = vmatpush.bf16.msrb.mxu3 %v2355_v12 }
 0x5aa   : > { %1697 = vmatpush.bf16.msrb.mxu3 %v2354_v15 }
 0x5fa   : > { %v1090_v21 = vpop.xlane.xlu2 %1089 }
 0x5fb   : > { %v1098_v22 = vmul.f32 %v2829_v20, %v1090_v21  ;;  %v2067_v21 = vor.u32 %v2319_v18, %v2064_v19  ;;  %v2345_v18 = vld [vmem:[#allocation7 + $0x18] sm:$0xff] }
 0x5fc   : > { %v2353_v19 = vld [vmem:[#allocation7 + $0x58] sm:$0xff] }
 0x5fd   : > { %v2832_v23 = vsub.f32 %v1088_v1, %v1098_v22  ;;  %v2071_v1 = vor.u32 %v2324_v63, %v2070_v62  ;;  %v2038_v22 = vld [vmem:[#allocation6 + $0x20] sm:$0xf]  ;;  %1373 = vmatpush.bf16.msra.mxu1 %v2067_v21  ;;  %v2359_v21 = vld [vmem:[#allocation7 + $0x88] sm:$0xff]  ;;  %1698 = vmatpush.bf16.msrb.mxu3 %v2353_v19 }
 0x5ff   : > { %v1100_v24 = vmul.f32 %v2832_v23, %v2832_v23  ;;  %1333 = vmatpush.bf16.msrb.mxu2 %v2071_v1 }
 0x601   : > { %1101 = vadd.xlane.f32.xlu0 %v1100_v24  ;;  %v2316_v24 = vld [vmem:[#allocation6 + $0x2c] sm:$0xf0]  ;;  %1374 = vmatpush.bf16.msra.mxu1 %v2051_v35 }
 0x602   : > { %v2039_v26 = vor.u32 %v2316_v24, %v2038_v22  ;;  %v2367_v22 = vld [vmem:[#allocation7 + $0xc8] sm:$0xff]  ;;  %v2344_v24 = vld [vmem:[#allocation7 + $0x10] sm:$0xff]  ;;  %1699 = vmatpush.bf16.msrb.mxu3 %v2352_v25 }
 0x603   : > { %1334 = vmatpush.bf16.msrb.mxu2 %v2055_v13  ;;  %v2361_v13 = vld [vmem:[#allocation7 + $0x98] sm:$0xff] }
 0x604   : > { %1711 = vmatpush.bf16.msra.mxu0 %v2361_v13 }
 0x605   : > { %1375 = vmatpush.bf16.msra.mxu1 %v2035_v46 }
 0x606   : > { %1700 = vmatpush.bf16.msrb.mxu3 %v2351_v29 }
 0x607   : > { %1335 = vmatpush.bf16.msrb.mxu2 %v2039_v26  ;;  %v2358_v26 = vld [vmem:[#allocation7 + $0x80] sm:$0xff] }
 0x608   : > { %1712 = vmatpush.bf16.msra.mxu0 %v2360_v16 }
 0x609   : > { %1720 = vmatpush.bf16.msrb.mxu1 %v2373_v49 }
 0x60a   : > { %1701 = vmatpush.bf16.msrb.mxu3 %v2350_v32 }
 0x60b   : > { %1336 = vmatpush.bf16.msrb.mxu2 %v2023_v39  ;;  %v1161_v39 = vperm.slane %v1159_v30, 0  ;;  %v2437_v30 = vld [vmem:[%s2882_s11] ss:$0 sm:$0xff] }
 0x60c   : > { %1713 = vmatpush.bf16.msra.mxu0 %v2359_v21 }
 0x60d   : > { %1721 = vmatpush.bf16.msrb.mxu1 %v2372_v52 }
 0x60f   : > { %1681 = vmatpush.bf16.msra.mxu2 %v2349_v5 }
 0x610   : > { %1714 = vmatpush.bf16.msra.mxu0 %v2358_v26 }
 0x613   : > { %1682 = vmatpush.bf16.msra.mxu2 %v2348_v7 }
 0x617   : > { %1683 = vmatpush.bf16.msra.mxu2 %v2347_v11 }
 0x61b   : > { %1684 = vmatpush.bf16.msra.mxu2 %v2346_v2 }
 0x61f   : > { %1685 = vmatpush.bf16.msra.mxu2 %v2345_v18 }
 0x623   : > { %1686 = vmatpush.bf16.msra.mxu2 %v2344_v24 }
 0x627   : > { %1687 = vmatpush.bf16.msra.mxu2 %v2343_v28 }
 0x62b   : > { %1688 = vmatpush.bf16.msra.mxu2 %v2342_v31 }
 0x674   : > { %v1102_v47 = vpop.xlane.xlu0 %1101 }
 0x675   : > { %v1103_v50 = vmul.f32 %v1102_v47, %v2829_v20 }
 0x677   : > { %v1104_v54 = vadd.f32 1e-05, %v1103_v50 }
 0x679   : > { %2458 = vrsqrt.f32 %v1104_v54  ;;  %vm1111_vm7 = vweird.f32 %v1104_v54 }
 0x67f   : > { %v2459_v55 = vpop.eup %2458 }
 0x680   : > { %v1106_v56 = vmul.f32 %v2459_v55, %v1104_v54  ;;  %vm1112_vm6 = vweird.f32 %v2459_v55 }
 0x681   : > { %vm1113_vm8 = vmor %vm1111_vm7, %vm1112_vm6 }
 0x682   : > { %v1107_v57 = vmul.f32 %v2459_v55, %v1106_v56 }
 0x684   : > { %v1108_v58 = vmul.f32 0.5, %v1107_v57 }
 0x686   : > { %v1109_v59 = vsub.f32 1.5, %v1108_v58 }
 0x688   : > { %v1110_v60 = vmul.f32 %v2459_v55, %v1109_v59 }
 0x68a   : > { %v1114_v62 = vsel %vm1113_vm8, %v2459_v55, %v1110_v60 }
 0x68b   : > { %v1115_v63 = vmul.f32 %v1114_v62, %v2832_v23  ;;  %v2371_v23 = vld [vmem:[#allocation7 + $0xe8] sm:$0xff] }
 0x68c   : > { %1722 = vmatpush.bf16.msrb.mxu1 %v2371_v23 }
 0x68d   : > { %v1120_v1 = vmul.f32 %v2435_v61, %v1115_v63 }
 0x68f   : > { %v2844_v3 = vadd.f32 %v2436_v0, %v1120_v1 }
 0x690   : > { %1723 = vmatpush.bf16.msrb.mxu1 %v2370_v10 }
 0x691   : > { %v1126_v4 = vpack.c.bf16 %v2844_v3, %v2844_v3 }
 0x693   : > { %1337 = vmatmul.bf16.vlgmr.msrb.gmra.mxu2 %v1126_v4  ;;  %1350 = vmatmul.bf16.vlgmr.msra.gmra.mxu3 %v1126_v4 }
 0x694   : > { %1363 = vmatmul.bf16.vlgmr.msrb.gmra.mxu0 %v1126_v4  ;;  %1376 = vmatmul.bf16.vlgmr.msra.gmra.mxu1 %v1126_v4 }
 0x695   : > { %1724 = vmatpush.bf16.msrb.mxu1 %v2369_v14 }
 0x699   : > { %1725 = vmatpush.bf16.msrb.mxu1 %v2368_v17 }
 0x69d   : > { %1726 = vmatpush.bf16.msrb.mxu1 %v2367_v22 }
 0x6a1   : > { %1727 = vmatpush.bf16.msrb.mxu1 %v2366_v27 }
 0x711   : > { %v1364_v35 = vpop.f32.mrf.mxu0  ;;  %v1377_v36 = vpop.f32.mrf.mxu1 }
 0x712   : > { %v1365_v37 = vadd.f32 %v1364_v35, %v1163_v33  ;;  %v1378_v38 = vadd.f32 %v1377_v36, %v1164_v34 }
 0x714   : > { %v1387_v41 = vmul.f32 0.044715, %v1365_v37  ;;  %v1388_v42 = vmul.f32 0.044715, %v1378_v38  ;;  %v1383_v8 = vmul.f32 0.5, %v1365_v37  ;;  %v1384_v10 = vmul.f32 0.5, %v1378_v38 }
 0x716   : > { %v1391_v43 = vmul.f32 %v1387_v41, %v1365_v37  ;;  %v1392_v44 = vmul.f32 %v1388_v42, %v1378_v38  ;;  %v1338_v45 = vpop.f32.mrf.mxu2  ;;  %v1351_v46 = vpop.f32.mrf.mxu3 }
 0x717   : > { %v1339_v47 = vadd.f32 %v1338_v45, %v1161_v39  ;;  %v1352_v48 = vadd.f32 %v1351_v46, %v1162_v40 }
 0x718   : > { %v1395_v49 = vmul.f32 %v1391_v43, %v1365_v37  ;;  %v1396_v50 = vmul.f32 %v1392_v44, %v1378_v38 }
 0x719   : > { %v1385_v51 = vmul.f32 0.044715, %v1339_v47  ;;  %v1386_v52 = vmul.f32 0.044715, %v1352_v48  ;;  %v1366_v54 = vpop.f32.mrf.mxu0  ;;  %v1379_v55 = vpop.f32.mrf.mxu1  ;;  %v1381_v17 = vmul.f32 0.5, %v1339_v47  ;;  %v1382_v19 = vmul.f32 0.5, %v1352_v48 }
 0x71a   : > { %v1399_v56 = vadd.f32 %v1395_v49, %v1365_v37  ;;  %v1400_v57 = vadd.f32 %v1396_v50, %v1378_v38  ;;  %v2438_v54 = vld [vmem:[%s2883_s12] ss:$0 sm:$0xff] }
 0x71b   : > { %v1389_v58 = vmul.f32 %v1385_v51, %v1339_v47  ;;  %v1390_v59 = vmul.f32 %v1386_v52, %v1352_v48 }
 0x71c   : > { %v1403_v60 = vmul.f32 0.7978846, %v1399_v56  ;;  %v1404_v61 = vmul.f32 0.7978846, %v1400_v57 }
 0x71d   : > { %v1393_v62 = vmul.f32 %v1389_v58, %v1339_v47  ;;  %v1394_v63 = vmul.f32 %v1390_v59, %v1352_v48 }
 0x71e   : > { %v1340_v0 = vpop.f32.mrf.mxu2  ;;  %v1353_v1 = vpop.f32.mrf.mxu3  ;;  %2460 = vtanh.f32 %v1403_v60 }
 0x71f   : > { %2462 = vtanh.f32 %v1404_v61  ;;  %v1397_v4 = vadd.f32 %v1393_v62, %v1339_v47  ;;  %v1398_v5 = vadd.f32 %v1394_v63, %v1352_v48 }
 0x721   : > { %v1401_v53 = vmul.f32 0.7978846, %v1397_v4  ;;  %v1402_v6 = vmul.f32 0.7978846, %v1398_v5 }
 0x723   : > { %2464 = vtanh.f32 %v1401_v53 }
 0x724   : > { %v2461_v23 = vpop.eup %2460  ;;  %2466 = vtanh.f32 %v1402_v6 }
 0x725   : > { %v2463_v7 = vpop.eup %2462  ;;  %v1411_v9 = vadd.f32 1.0, %v2461_v23 }
 0x726   : > { %v1412_v11 = vadd.f32 1.0, %v2463_v7 }
 0x727   : > { %v1415_v12 = vmul.f32 %v1411_v9, %v1383_v8 }
 0x728   : > { %v1416_v13 = vmul.f32 %v1412_v11, %v1384_v10 }
 0x729   : > { %v2465_v14 = vpop.eup %2464  ;;  %v1419_v2 = vpack.c.bf16 %v1415_v12, %v1415_v12 }
 0x72a   : > { %v2467_v15 = vpop.eup %2466  ;;  %v1420_v16 = vpack.c.bf16 %v1416_v13, %v1416_v13  ;;  %v1409_v18 = vadd.f32 1.0, %v2465_v14 }
 0x72b   : > { %1715 = vmatmul.bf16.vlgmr.msra.gmra.mxu0 %v1419_v2  ;;  %v1410_v21 = vadd.f32 1.0, %v2467_v15 }
 0x72c   : > { %1728 = vmatmul.bf16.vlgmr.msrb.gmra.mxu1 %v1420_v16  ;;  %v1413_v22 = vmul.f32 %v1409_v18, %v1381_v17 }
 0x72d   : > { %v1414_v24 = vmul.f32 %v1410_v21, %v1382_v19 }
 0x72e   : > { %v1417_v25 = vpack.c.bf16 %v1413_v22, %v1413_v22 }
 0x72f   : > { %v1418_v26 = vpack.c.bf16 %v1414_v24, %v1414_v24 }
 0x730   : > { %1689 = vmatmul.bf16.vlgmr.msra.gmra.mxu2 %v1417_v25 }
 0x731   : > { %1702 = vmatmul.bf16.vlgmr.msrb.gmra.mxu3 %v1418_v26 }
 0x7a8   : > { %v1716_v27 = vpop.f32.mrf.mxu0 }
 0x7a9   : > { %v1729_v28 = vpop.f32.mrf.mxu1 }
 0x7b0   : > { %v1718_v29 = vpop.f32.mrf.mxu0 }
 0x7b1   : > { %v1731_v31 = vpop.f32.mrf.mxu1 }
 0x7b3   : > { %v1690_v32 = vpop.f32.mrf.mxu2 }
 0x7b4   : > { %v1691_v33 = vadd.f32 %v2437_v30, %v1690_v32  ;;  %v1703_v34 = vpop.f32.mrf.mxu3 }
 0x7b6   : > { %v1704_v35 = vadd.f32 %v1703_v34, %v1691_v33 }
 0x7b8   : > { %v1717_v36 = vadd.f32 %v1716_v27, %v1704_v35 }
 0x7ba   : > { %v1730_v37 = vadd.f32 %v1729_v28, %v1717_v36 }
 0x7bb   : > { %v1692_v38 = vpop.f32.mrf.mxu2 }
 0x7bc   : > { %v1705_v39 = vpop.f32.mrf.mxu3  ;;  %v1733_v40 = vadd.f32 %v1730_v37, %v2844_v3 }
 0x7be   : > { %1734 = vadd.xlane.f32.xlu1 %v1733_v40 }
 0x831   : > { %v1735_v41 = vpop.xlane.xlu1 %1734 }
 0x832   : > { %v1736_v42 = vmul.f32 %v1735_v41, %v2829_v20 }
 0x834   : > { %v1737_v43 = vsub.f32 %v1733_v40, %v1736_v42 }
 0x836   : > { %v1738_v44 = vmul.f32 %v1737_v43, %v1737_v43 }
 0x838   : > { %1739 = vadd.xlane.f32.xlu2 %v1738_v44 }
 0x8ab   : > { %v1740_v45 = vpop.xlane.xlu2 %1739 }
 0x8ac   : > { %v1741_v46 = vmul.f32 %v1740_v45, %v2829_v20  ;;  %v2439_v20 = vld [vmem:[%s2896_s28] ss:$0 sm:$0xff] }
 0x8ae   : > { %v1742_v47 = vadd.f32 1e-05, %v1741_v46 }
 0x8b0   : > { %2468 = vrsqrt.f32 %v1742_v47  ;;  %vm1749_vm10 = vweird.f32 %v1742_v47 }
 0x8b6   : > { %v2469_v48 = vpop.eup %2468 }
 0x8b7   : > { %v1744_v49 = vmul.f32 %v2469_v48, %v1742_v47  ;;  %vm1750_vm9 = vweird.f32 %v2469_v48 }
 0x8b8   : > { %vm1751_vm11 = vmor %vm1749_vm10, %vm1750_vm9 }
 0x8b9   : > { %v1745_v50 = vmul.f32 %v2469_v48, %v1744_v49 }
 0x8bb   : > { %v1746_v51 = vmul.f32 0.5, %v1745_v50 }
 0x8bd   : > { %v1747_v52 = vsub.f32 1.5, %v1746_v51 }
 0x8bf   : > { %v1748_v3 = vmul.f32 %v2469_v48, %v1747_v52 }
 0x8c1   : > { %v1752_v55 = vsel %vm1751_vm11, %v2469_v48, %v1748_v3 }
 0x8c2   : > { %v1753_v56 = vmul.f32 %v1752_v55, %v1737_v43 }
 0x8c4   : > { %v1758_v57 = vmul.f32 %v2438_v54, %v1753_v56 }
 0x8c6   : > { %v1763_v58 = vadd.f32 %v2439_v20, %v1758_v57 }
 0x8c8   : > { %v1764_v59 = vpack.c.bf16 %v1763_v58, %v1763_v58 }
 0x8ca   : > { %1765 = vst [vmem:[%s543_s22] sm:$0xf] %v1764_v59 }
 0x8cb PF: > { %s2898_s25 = sld [smem:[#allocation12_spill]] }
 0x8d1   : > { %s27_s29 = sadd.s32 1, %s2898_s25  }
 0x8d2   : > { %p24_p7 = scmp.ge.s32.totalorder %s27_s29, 4  }
 0x8d4   :  { %26 = sbr.rel (!%p24_p7) target bundleno = 8 (0x8), region = 126 }
 0x8d9   :  { %1785 = vsyncpa [#allocation3], 1 }
 0x8da   :  { %1787 = vsyncpa [#allocation3 + $0x1], 1 }
 0x8db   :  { %1788 = vsyncpa [#allocation5], 1 }
 0x8dc   :  { %1789 = vsyncpa [#allocation8], 1 }

// kernel: regression_model_forward.4
= control target key start
LH: loop header
LB: loop body
LE: loop exit
PB: predicated region body
PF: predicated region fallthrough
CT: control target
= control target key end

     0   :  { %19 = vsyncpa [#allocation3], 0  ;;  %s2871_s0 = inlined_call_operand.vmem [shape: bf16[16,128], index: 0, kind: input, shape index: {}]   ;;  %s2872_s1 = inlined_call_operand.vmem [shape: f32[2,1,8], index: 1, kind: input, shape index: {}]   ;;  %s2873_s2 = inlined_call_operand.vmem [shape: bf16[128,384], index: 2, kind: input, shape index: {}]   ;;  %s2874_s3 = inlined_call_operand.vmem [shape: f32[1,384], index: 3, kind: input, shape index: {}]   ;;  %s2875_s4 = inlined_call_operand.vmem [shape: bf16[128,128], index: 4, kind: input, shape index: {}]   ;;  %s2876_s5 = inlined_call_operand.vmem [shape: f32[1,128], index: 5, kind: input, shape index: {}]   ;;  %s2877_s6 = inlined_call_operand.vmem [shape: f32[1,128], index: 6, kind: input, shape index: {}]   ;;  %s2878_s7 = inlined_call_operand.vmem [shape: f32[1,128], index: 7, kind: input, shape index: {}]   ;;  %s2879_s8 = inlined_call_operand.hbm [shape: bf16[128,512], index: 8, kind: input, shape index: {}]   ;;  %s2880_s9 = inlined_call_operand.vmem [shape: f32[1,512], index: 9, kind: input, shape index: {}]   ;;  %s2881_s10 = inlined_call_operand.hbm [shape: bf16[512,128], index: 10, kind: input, shape index: {}]   ;;  %s2882_s11 = inlined_call_operand.vmem [shape: f32[1,128], index: 11, kind: input, shape index: {}]   ;;  %s2883_s12 = inlined_call_operand.vmem [shape: f32[1,128], index: 12, kind: input, shape index: {}]   ;;  %s2884_s13 = inlined_call_operand.vmem [shape: f32[1,128], index: 13, kind: input, shape index: {}]   ;;  %s2885_s14 = inlined_call_operand.vmem [shape: bf16[16,128], index: 14, kind: output, shape index: {}]  }
   0x1   :  { %20 = vsyncpa [#allocation5], 0  ;;  %s2553_s29 = smov 0  }
   0x2 LB: > { %s390_s16 = sshll.u32 %s2879_s8, 4  ;;  %s2562_s17 = sadd.s32 4294967295, %s2466_s29   ;;  %s2466_s29 = sphi %s2553_s29, %s26_s29   ;;  %s391_s16 = int_to_ptr.hbm [resolvable:$true] %s390_s16 }
   0x3   : > { %p1819_p0 = scmp.ge.s32.totalorder %s2466_s29, 1  ;;  %p361_p1 = scmp.lt.s32.totalorder %s2466_s29, 3 }
   0x4   : > { %p2333_p2 = scmp.eq.s32.totalorder %s2562_s17, 0  ;;  %s2468_s19 = smov [#allocation2]  }
   0x5   : > { %p2567_p3 = pnand %p1819_p0, %p361_p1  ;;  %s392_s20 = sshll.u32 %s2468_s19, 4  ;;  %s393_s20 = int_to_ptr.vmem [resolvable:$true] %s392_s20 }
   0x6   : > { %s407_s23 = sshll.u32 %s2881_s10, 4  ;;  %s2469_s24 = smov [#allocation4]   ;;  %s408_s23 = int_to_ptr.hbm [resolvable:$true] %s407_s23 }
   0x7   : > { %p2326_p4 = pneg %p2567_p3  ;;  %s409_s25 = sshll.u32 %s2469_s24, 4  ;;  %s410_s25 = int_to_ptr.vmem [resolvable:$true] %s409_s25 }
   0x8   : > { %s2470_s26 = smov 256   ;;  %s2471_s27 = smov 16  }
   0x9   : > { %p2327_p5 = pnand %p2333_p2, %p2326_p4  ;;  %s2472_s28 = smov 64  }
   0xa   : > { %s2473_s30 = smov 4   ;;  %447 = sbr.rel (%p2567_p3) target bundleno = 2235 (0x8bb), region = 76 }
   0xb   : > { %2329 = dma.hbm_to_vmem [thread:$0]  (!%p2327_p5), %s391_s16, 4096, %s393_s20, [#allocation3], %s2470_s26, %s2470_s26, %s2471_s27  }
   0xc   : > { %2332 = dma.hbm_to_vmem [thread:$0]  (!%p2327_p5), %s408_s23, 4096, %s410_s25, [#allocation5], %s2472_s28, %s2472_s28, %s2473_s30  }
   0xf   : > { %2457 = dma.done.wait (%p2333_p2), [#allocation3], 4096  }
  0x10   : > { %2459 = vsyncadd (%p2333_p2), [#allocation3], 4294963200 }
  0x11   : > { %2461 = dma.done.wait (%p2333_p2), [#allocation5], 4096  }
  0x12   : > { %2463 = vsyncadd (%p2333_p2), [#allocation5], 4294963200  ;;  %v1914_v0 = vld [vmem:[%s2873_s2 + $0xa8] sm:$0xf]  ;;  %v2244_v1 = vld [vmem:[%s2873_s2 + $0xb0] sm:$0xf0] }
  0x13   : > { %v2243_v2 = vld [vmem:[%s2873_s2 + $0xac] sm:$0xf]  ;;  %v1915_v3 = vor.u32 %v2244_v1, %v1914_v0  ;;  %v1916_v4 = vld [vmem:[%s2873_s2 + $0xb4] sm:$0xf0]  ;;  %v1902_v5 = vld [vmem:[%s2873_s2 + $0x90] sm:$0xf] }
  0x14   : > { %v2241_v6 = vld [vmem:[%s2873_s2 + $0x98] sm:$0xf0]  ;;  %v1919_v7 = vor.u32 %v2243_v2, %v1916_v4  ;;  %v2240_v8 = vld [vmem:[%s2873_s2 + $0x94] sm:$0xf]  ;;  %v1904_v9 = vld [vmem:[%s2873_s2 + $0x9c] sm:$0xf0] }
  0x15   : > { %682 = vmatpush.bf16.msra.mxu0 %v1915_v3  ;;  %v1903_v10 = vor.u32 %v2241_v6, %v1902_v5  ;;  %v1907_v11 = vor.u32 %v2240_v8, %v1904_v9  ;;  %v1890_v12 = vld [vmem:[%s2873_s2 + $0x78] sm:$0xf]  ;;  %v2238_v13 = vld [vmem:[%s2873_s2 + $0x80] sm:$0xf0]  ;;  %v2237_v14 = vld [vmem:[%s2873_s2 + $0x7c] sm:$0xf] }
  0x16   : > { %695 = vmatpush.bf16.msra.mxu1 %v1919_v7  ;;  %v1892_v15 = vld [vmem:[%s2873_s2 + $0x84] sm:$0xf0]  ;;  %v1891_v16 = vor.u32 %v2238_v13, %v1890_v12  ;;  %v1878_v18 = vld [vmem:[%s2873_s2 + $0x60] sm:$0xf]  ;;  %v2235_v19 = vld [vmem:[%s2873_s2 + $0x68] sm:$0xf0] }
  0x17   : > { %v1895_v17 = vor.u32 %v2237_v14, %v1892_v15  ;;  %v2234_v20 = vld [vmem:[%s2873_s2 + $0x64] sm:$0xf]  ;;  %v1880_v21 = vld [vmem:[%s2873_s2 + $0x6c] sm:$0xf0]  ;;  %p500_p6 = scmp.lt.s32.totalorder %s2562_s17, 1  ;;  %v1879_v22 = vor.u32 %v2235_v19, %v1878_v18  ;;  %vm730_vm0 = vcmask 261120  }
  0x18   : > { %v1922_v23 = vld [vmem:[%s2873_s2 + $0xb0] sm:$0xf]  ;;  %v2245_v24 = vld [vmem:[%s2873_s2 + $0xb8] sm:$0xf0]  ;;  %v1910_v25 = vld [vmem:[%s2873_s2 + $0x98] sm:$0xf]  ;;  %v1883_v26 = vor.u32 %v2234_v20, %v1880_v21 }
  0x19   : > { %683 = vmatpush.bf16.msra.mxu0 %v1903_v10  ;;  %v1866_v27 = vld [vmem:[%s2873_s2 + $0x48] sm:$0xf]  ;;  %v2232_v28 = vld [vmem:[%s2873_s2 + $0x50] sm:$0xf0]  ;;  %v1923_v29 = vor.u32 %v2245_v24, %v1922_v23  ;;  %v2242_v30 = vld [vmem:[%s2873_s2 + $0xa0] sm:$0xf0] }
  0x1a   : > { %696 = vmatpush.bf16.msra.mxu1 %v1907_v11  ;;  %v2231_v31 = vld [vmem:[%s2873_s2 + $0x4c] sm:$0xf]  ;;  %v1868_v32 = vld [vmem:[%s2873_s2 + $0x54] sm:$0xf0]  ;;  %s2888_s17 = smov (!%p500_p6, %s2562_s17), 1  ;;  %v1911_v33 = vor.u32 %v2242_v30, %v1910_v25  ;;  %v1867_v34 = vor.u32 %v2232_v28, %v1866_v27  ;;  %s2474_s28 = smov 64  }
  0x1b   : > { %708 = vmatpush.bf16.msra.mxu2 %v1923_v29  ;;  %v1854_v35 = vld [vmem:[%s2873_s2 + $0x30] sm:$0xf]  ;;  %s506_s26 = scalar_lea.vmem %s2872_s1, %s2888_s17  ;;  %v1898_v36 = vld [vmem:[%s2873_s2 + $0x80] sm:$0xf]  ;;  %v2239_v37 = vld [vmem:[%s2873_s2 + $0x88] sm:$0xf0]  ;;  %v1871_v38 = vor.u32 %v2231_v31, %v1868_v32 }
  0x1c   : > { %v2229_v39 = vld [vmem:[%s2873_s2 + $0x38] sm:$0xf0]  ;;  %v2228_v40 = vld [vmem:[%s2873_s2 + $0x34] sm:$0xf]  ;;  %v1856_v41 = vld [vmem:[%s2873_s2 + $0x3c] sm:$0xf0]  ;;  %v1899_v42 = vor.u32 %v2239_v37, %v1898_v36 }
  0x1d   : > { %684 = vmatpush.bf16.msra.mxu0 %v1891_v16  ;;  %v1855_v43 = vor.u32 %v2229_v39, %v1854_v35  ;;  %v1886_v44 = vld [vmem:[%s2873_s2 + $0x68] sm:$0xf]  ;;  %v2236_v45 = vld [vmem:[%s2873_s2 + $0x70] sm:$0xf0]  ;;  %v1859_v46 = vor.u32 %v2228_v40, %v1856_v41  ;;  %v1842_v47 = vld [vmem:[%s2873_s2 + $0x18] sm:$0xf] }
  0x1e   : > { %697 = vmatpush.bf16.msra.mxu1 %v1895_v17  ;;  %v2226_v48 = vld [vmem:[%s2873_s2 + $0x20] sm:$0xf0]  ;;  %v2225_v49 = vld [vmem:[%s2873_s2 + $0x1c] sm:$0xf]  ;;  %v1844_v50 = vld [vmem:[%s2873_s2 + $0x24] sm:$0xf0]  ;;  %v1887_v51 = vor.u32 %v2236_v45, %v1886_v44 }
  0x1f   : > { %709 = vmatpush.bf16.msra.mxu2 %v1911_v33  ;;  %v1843_v52 = vor.u32 %v2226_v48, %v1842_v47  ;;  %v1874_v53 = vld [vmem:[%s2873_s2 + $0x50] sm:$0xf]  ;;  %v2233_v54 = vld [vmem:[%s2873_s2 + $0x58] sm:$0xf0]  ;;  %v1847_v55 = vor.u32 %v2225_v49, %v1844_v50  ;;  %v1830_v56 = vld [vmem:[%s2873_s2] sm:$0xf] }
  0x20   : > { %v2223_v57 = vld [vmem:[%s2873_s2 + $0x8] sm:$0xf0]  ;;  %v2222_v58 = vld [vmem:[%s2873_s2 + $0x4] sm:$0xf]  ;;  %v1832_v59 = vld [vmem:[%s2873_s2 + $0xc] sm:$0xf0]  ;;  %v1875_v60 = vor.u32 %v2233_v54, %v1874_v53 }
  0x21   : > { %685 = vmatpush.bf16.msra.mxu0 %v1879_v22  ;;  %s1826_s21 = sshll.u32 %s2888_s17, 2  ;;  %v1831_v61 = vor.u32 %v2223_v57, %v1830_v56  ;;  %v1862_v62 = vld [vmem:[%s2873_s2 + $0x38] sm:$0xf]  ;;  %v2230_v63 = vld [vmem:[%s2873_s2 + $0x40] sm:$0xf0]  ;;  %v1835_v0 = vor.u32 %v2222_v58, %v1832_v59  ;;  %s2476_s15 = smov 32  }
  0x22   : > { %698 = vmatpush.bf16.msra.mxu1 %v1883_v26  ;;  %s503_s30 = scalar_lea.vmem %s2871_s0, %s1826_s21  ;;  %v1863_v1 = vor.u32 %v2230_v63, %v1862_v62  ;;  %v1850_v3 = vld [vmem:[%s2873_s2 + $0x20] sm:$0xf]  ;;  %v2227_v4 = vld [vmem:[%s2873_s2 + $0x28] sm:$0xf0]  ;;  %v1838_v6 = vld [vmem:[%s2873_s2 + $0x8] sm:$0xf]  ;;  %s510_s25 = scalar_lea.vmem %s2885_s14, %s1826_s21 }
  0x23   : > { %710 = vmatpush.bf16.msra.mxu2 %v1899_v42  ;;  %v2736_v2 = vld [vmem:[%s503_s30] sm:$0xf]  ;;  %v1851_v5 = vor.u32 %v2227_v4, %v1850_v3  ;;  %v2224_v7 = vld [vmem:[%s2873_s2 + $0x10] sm:$0xf0]  ;;  %s2475_s30 = smov 96   ;;  %vm766_vm1 = vcmask 1043456  }
  0x24   : > { %v1839_v8 = vor.u32 %v2224_v7, %v1838_v6  ;;  %v546_v9 = vld [vmem:[%s2874_s3] sm:$0x7]  ;;  %vm750_vm2 = vcmask 64512   ;;  %vm969_vm3 = vcmask 523264   ;;  %vm971_vm4 = vcmask 785408  }
  0x25   : > { %686 = vmatpush.bf16.msra.mxu0 %v1867_v34  ;;  %v548_v10 = vperm.slane %v546_v9, 0  ;;  %v549_v11 = vperm.slane %v546_v9, 1  ;;  %v550_v25 = vperm.slane %v546_v9, 2  ;;  %v2355_v34 = vld [vmem:[%s506_s26] ss:$0 sm:$0xff] }
  0x26   : > { %699 = vmatpush.bf16.msra.mxu1 %v1871_v38 }
  0x27   : > { %711 = vmatpush.bf16.msra.mxu2 %v1887_v51 }
  0x29   : > { %687 = vmatpush.bf16.msra.mxu0 %v1855_v43 }
  0x2a   : > { %700 = vmatpush.bf16.msra.mxu1 %v1859_v46 }
  0x2b   : > { %712 = vmatpush.bf16.msra.mxu2 %v1875_v60 }
  0x2d   : > { %688 = vmatpush.bf16.msra.mxu0 %v1843_v52 }
  0x2e   : > { %701 = vmatpush.bf16.msra.mxu1 %v1847_v55 }
  0x2f   : > { %713 = vmatpush.bf16.msra.mxu2 %v1863_v1 }
  0x31   : > { %689 = vmatpush.bf16.msra.mxu0 %v1831_v61 }
  0x32   : > { %702 = vmatpush.bf16.msra.mxu1 %v1835_v0 }
  0x33   : > { %714 = vmatpush.bf16.msra.mxu2 %v1851_v5 }
  0x34   : > { %690 = vmatmul.bf16.vlgmr.msra.gmra.mxu0 %v2736_v2 }
  0x35   : > { %703 = vmatmul.bf16.vlgmr.msra.gmra.mxu1 %v2736_v2 }
  0x37   : > { %715 = vmatpush.bf16.msra.mxu2 %v1839_v8 }
  0x3a   : > { %716 = vmatmul.bf16.vlgmr.msra.gmra.mxu2 %v2736_v2 }
  0xb1   : > { %v691_v12 = vpop.f32.mrf.mxu0 }
  0xb2   : > { %v692_v13 = vadd.f32 %v691_v12, %v548_v10  ;;  %v704_v14 = vpop.f32.mrf.mxu1 }
  0xb3   : > { %v705_v15 = vadd.f32 %v704_v14, %v549_v11 }
  0xb5   : > { %v721_v16 = vpack.c.bf16 %v705_v15, %v692_v13 }
  0xb7   : > { %v728_v17 = vunpack.c.h.b16 %v721_v16  ;;  %v783_v22 = vunpack.c.l.b16 %v721_v16 }
  0xb9   : > { %v693_v18 = vpop.f32.mrf.mxu0  ;;  %v729_v19 = vpack.c.b16 %v728_v17, %v728_v17  ;;  %v784_v23 = vpack.c.b16 %v783_v22, %v783_v22 }
  0xba   : > { %v706_v20 = vpop.f32.mrf.mxu1 }
  0xbb   : > { %846 = vrot.lane.b32.xlu2 %v729_v19, %s2474_s28  ;;  %787 = vrot.lane.b32.xlu1 %v729_v19, %s2475_s30  ;;  %v735_v21 = vsel %vm730_vm0, %v729_v19, 0 }
  0xbc   : > { %744 = vmatpush.bf16.xpose.msra.mxu3 %v735_v21 }
  0xbd   : > { %v717_v24 = vpop.f32.mrf.mxu2 }
  0xbe   : > { %v718_v26 = vadd.f32 %v717_v24, %v550_v25 }
  0xc0   : > { %v722_v28 = vpack.c.bf16 %v718_v26, %v718_v26 }
  0xc2   : > { %v768_v29 = vsel %vm766_vm1, %v722_v28, 0  ;;  %v821_v4 = vunpack.c.l.b16 %v722_v28 }
  0xc3   : > { %902 = vrot.lane.b32.xlu2 %v729_v19, %s2476_s15  ;;  %785 = vrot.lane.b32.xlu1 %v784_v23, %s2475_s30 }
  0xc4   : > { %1924 = vmatmul.msk.bf16.vlgmr.msra.gmra.mxu3 %vm730_vm0, %v721_v16  ;;  %v822_v5 = vpack.c.b16 %v821_v4, %v821_v4  ;;  %v2477_v4 = vmov 128.0  }
  0xc5   : > { %v719_v27 = vpop.f32.mrf.mxu2  ;;  %777 = vmatpush.bf16.msrb.mxu3 %v768_v29 }
  0xcb   : > { %900 = vrot.lane.b32.xlu1 %v784_v23, %s2476_s15 }
 0x115   : > { %v847_v30 = vpop.permute.xlu2 %846 }
 0x116   : > { %v852_v31 = vsel %vm730_vm0, %v847_v30, 0 }
 0x117   : > { %861 = vmatpush.bf16.xpose.msrb.mxu2 %v852_v31 }
 0x11d   : > { %v903_v47 = vpop.permute.xlu2 %902 }
 0x11e   : > { %v908_v49 = vsel %vm730_vm0, %v903_v47, 0  ;;  %v2251_v47 = vld [vmem:[%s2875_s4 + $0x28] sm:$0xff] }
 0x12d   : > { %v788_v32 = vpop.permute.xlu1 %787 }
 0x12e   : > { %v793_v33 = vsel %vm730_vm0, %v788_v32, 0 }
 0x12f   : > { %802 = vmatpush.bf16.xpose.msra.mxu3 %v793_v33 }
 0x135   : > { %v786_v51 = vpop.permute.xlu1 %785 }
 0x13d   : > { %v901_v52 = vpop.permute.xlu1 %900 }
 0x147   : > { %v746_v35 = vpop.f32.mrf.mxu3 }
 0x148   : > { %v747_v36 = vadd.f32 %v2355_v34, %v746_v35 }
 0x14a   : > { %v751_v37 = vsel %vm750_vm2, %v747_v36, -inf }
 0x14b   : > { %752 = vmax.xlane.f32.xlu0 %v751_v37 }
 0x14f   : > { %v748_v38 = vpop.f32.mrf.mxu3 }
 0x1be   : > { %v753_v39 = vpop.xlane.xlu0 %752 }
 0x1bf   : > { %v754_v40 = vsub.f32 %v747_v36, %v753_v39 }
 0x1c1   : > { %v755_v41 = vmul.f32 1.442695, %v754_v40 }
 0x1c3   : > { %2362 = vpow2.f32 %v755_v41 }
 0x1c9   : > { %v2363_v42 = vpop.eup %2362 }
 0x1ca   : > { %v757_v43 = vsel %vm750_vm2, %v2363_v42, 0.0 }
 0x1cb   : > { %758 = vadd.xlane.f32.xlu0 %v757_v43 }
 0x1df   : > { %844 = vrot.lane.b32.xlu0 %v784_v23, %s2474_s28 }
 0x23e   : > { %v759_v44 = vpop.xlane.xlu0 %758 }
 0x23f   : > { %2364 = vrcp.f32 %v759_v44 }
 0x245   : > { %v2365_v45 = vpop.eup %2364 }
 0x246   : > { %v761_v46 = vmul.f32 %v2365_v45, %v2363_v42  ;;  %v2253_v45 = vld [vmem:[%s2875_s4 + $0x38] sm:$0xff] }
 0x247   : > { %1042 = vmatpush.bf16.msrb.mxu1 %v2253_v45 }
 0x248   : > { %v762_v48 = vpack.c.bf16 %v761_v46, %v761_v46  ;;  %v2252_v46 = vld [vmem:[%s2875_s4 + $0x30] sm:$0xff] }
 0x24a   : > { %1925 = vmatmul.msk.bf16.vlgmr.msrb.gmra.mxu3 %vm750_vm2, %v762_v48  ;;  %v2250_v48 = vld [vmem:[%s2875_s4 + $0x20] sm:$0xff] }
 0x24b   : > { %917 = vmatpush.bf16.xpose.msrb.mxu3 %v908_v49  ;;  %1043 = vmatpush.bf16.msrb.mxu1 %v2252_v46  ;;  %v2249_v49 = vld [vmem:[%s2875_s4 + $0x18] sm:$0xff]  ;;  %v2275_v46 = vld [vmem:[#allocation2 + $0xac] sm:$0xf] }
 0x24f   : > { %1044 = vmatpush.bf16.msrb.mxu1 %v2251_v47  ;;  %v2056_v47 = vld [vmem:[#allocation2 + $0xb8] sm:$0xf0] }
 0x251   : > { %v845_v50 = vpop.permute.xlu0 %844 }
 0x252   : > { %1928 = vmatmul.msk.bf16.vlgmr.msrb.gmra.mxu2 %vm730_vm0, %v845_v50  ;;  %v2248_v50 = vld [vmem:[%s2875_s4 + $0x10] sm:$0xff] }
 0x253   : > { %1045 = vmatpush.bf16.msrb.mxu1 %v2250_v48  ;;  %v2059_v48 = vor.u32 %v2275_v46, %v2056_v47 }
 0x257   : > { %1046 = vmatpush.bf16.msrb.mxu1 %v2249_v49  ;;  %v2030_v49 = vld [vmem:[#allocation2 + $0x80] sm:$0xf] }
 0x25a   : > { %1926 = vmatmul.msk.bf16.vlgmr.msra.gmra.mxu3 %vm730_vm0, %v786_v51  ;;  %v2247_v51 = vld [vmem:[%s2875_s4 + $0x8] sm:$0xff] }
 0x25b   : > { %1047 = vmatpush.bf16.msrb.mxu1 %v2248_v50  ;;  %v2272_v50 = vld [vmem:[#allocation2 + $0x8c] sm:$0xf0] }
 0x25f   : > { %1048 = vmatpush.bf16.msrb.mxu1 %v2247_v51  ;;  %v2270_v51 = vld [vmem:[#allocation2 + $0x84] sm:$0xf] }
 0x26a   : > { %1930 = vmatmul.msk.bf16.vlgmr.msrb.gmra.mxu3 %vm730_vm0, %v901_v52  ;;  %v2246_v52 = vld [vmem:[%s2875_s4] sm:$0xff] }
 0x26b   : > { %1049 = vmatpush.bf16.msrb.mxu1 %v2246_v52  ;;  %v2031_v52 = vor.u32 %v2272_v50, %v2030_v49  ;;  %v2317_v49 = vld [vmem:[#allocation4 + $0xf8] sm:$0xff] }
 0x2cd   : > { %v2779_v53 = vpop.f32.mrf.mxu3 }
 0x2d5   : > { %v781_v54 = vpop.f32.mrf.mxu3  ;;  %v863_v55 = vpop.f32.mrf.mxu2 }
 0x2d6   : > { %v864_v56 = vadd.f32 %v2355_v34, %v863_v55 }
 0x2d8   : > { %v867_v57 = vsel %vm750_vm2, %v864_v56, -inf }
 0x2d9   : > { %868 = vmax.xlane.f32.xlu1 %v867_v57 }
 0x2dd   : > { %v804_v58 = vpop.f32.mrf.mxu3  ;;  %v865_v59 = vpop.f32.mrf.mxu2 }
 0x2de   : > { %v805_v60 = vadd.f32 %v2355_v34, %v804_v58 }
 0x2e0   : > { %v808_v61 = vsel %vm750_vm2, %v805_v60, -inf }
 0x2e1   : > { %809 = vmax.xlane.f32.xlu2 %v808_v61  ;;  %v2356_v61 = vld [vmem:[%s2876_s5] ss:$0 sm:$0xff] }
 0x2e5   : > { %v806_v62 = vpop.f32.mrf.mxu3 }
 0x2e6   : > { %v513_v62 = vunpack.c.l.bf16 %v2736_v2 }
 0x2ed   : > { %v919_v63 = vpop.f32.mrf.mxu3 }
 0x2ee   : > { %v920_v0 = vadd.f32 %v2355_v34, %v919_v63 }
 0x2f0   : > { %v923_v1 = vsel %vm750_vm2, %v920_v0, -inf }
 0x2f1   : > { %924 = vmax.xlane.f32.xlu0 %v923_v1 }
 0x2f5   : > { %v921_v3 = vpop.f32.mrf.mxu3 }
 0x305   : > { %879 = vrot.lane.b32.xlu0 %v822_v5, %s2474_s28 }
 0x34c   : > { %v869_v6 = vpop.xlane.xlu1 %868 }
 0x34d   : > { %v870_v7 = vsub.f32 %v864_v56, %v869_v6  ;;  %v2282_v6 = vld [vmem:[#allocation2 + $0xe4] sm:$0xf] }
 0x34f   : > { %v871_v8 = vmul.f32 1.442695, %v870_v7 }
 0x351   : > { %2366 = vpow2.f32 %v871_v8  ;;  %v2080_v8 = vld [vmem:[#allocation2 + $0xf0] sm:$0xf0] }
 0x354   : > { %v810_v9 = vpop.xlane.xlu2 %809 }
 0x355   : > { %v811_v10 = vsub.f32 %v805_v60, %v810_v9  ;;  %v2086_v9 = vld [vmem:[#allocation2 + $0xe8] sm:$0xf] }
 0x357   : > { %v2367_v11 = vpop.eup %2366  ;;  %v812_v12 = vmul.f32 1.442695, %v811_v10  ;;  %v2285_v10 = vld [vmem:[#allocation2 + $0xf4] sm:$0xf0] }
 0x358   : > { %v873_v13 = vsel %vm750_vm2, %v2367_v11, 0.0 }
 0x359   : > { %2368 = vpow2.f32 %v812_v12  ;;  %874 = vadd.xlane.f32.xlu1 %v873_v13  ;;  %v2087_v12 = vor.u32 %v2285_v10, %v2086_v9  ;;  %v2283_v13 = vld [vmem:[#allocation2 + $0xec] sm:$0xf]  ;;  %v1998_v10 = vld [vmem:[#allocation2 + $0x40] sm:$0xf] }
 0x35f   : > { %v2369_v14 = vpop.eup %2368 }
 0x360   : > { %v814_v15 = vsel %vm750_vm2, %v2369_v14, 0.0 }
 0x361   : > { %815 = vadd.xlane.f32.xlu2 %v814_v15 }
 0x364   : > { %v925_v16 = vpop.xlane.xlu0 %924 }
 0x365   : > { %v926_v17 = vsub.f32 %v920_v0, %v925_v16 }
 0x367   : > { %v927_v18 = vmul.f32 1.442695, %v926_v17 }
 0x369   : > { %2370 = vpow2.f32 %v927_v18 }
 0x36f   : > { %v2371_v19 = vpop.eup %2370 }
 0x370   : > { %v929_v20 = vsel %vm750_vm2, %v2371_v19, 0.0 }
 0x371   : > { %930 = vadd.xlane.f32.xlu1 %v929_v20 }
 0x377   : > { %v880_v21 = vpop.permute.xlu0 %879 }
 0x378   : > { %v885_v22 = vsel %vm766_vm1, %v880_v21, 0 }
 0x379   : > { %823 = vrot.lane.b32.xlu2 %v822_v5, %s2475_s30  ;;  %894 = vmatpush.bf16.msra.mxu2 %v885_v22 }
 0x38a   : > { %935 = vrot.lane.b32.xlu1 %v822_v5, %s2476_s15  ;;  %v2078_v5 = vld [vmem:[#allocation2 + $0xe0] sm:$0xf] }
 0x3cc   : > { %v875_v23 = vpop.xlane.xlu1 %874 }
 0x3cd   : > { %2372 = vrcp.f32 %v875_v23 }
 0x3d3   : > { %v2373_v24 = vpop.eup %2372 }
 0x3d4   : > { %v877_v25 = vmul.f32 %v2373_v24, %v2367_v11  ;;  %v816_v26 = vpop.xlane.xlu2 %815  ;;  %v2083_v11 = vor.u32 %v2282_v6, %v2080_v8  ;;  %v2024_v8 = vld [vmem:[#allocation2 + $0x78] sm:$0xf0] }
 0x3d5   : > { %2374 = vrcp.f32 %v816_v26  ;;  %v2280_v26 = vld [vmem:[#allocation2 + $0xcc] sm:$0xf0] }
 0x3d6   : > { %v878_v27 = vpack.c.bf16 %v877_v25, %v877_v25  ;;  %1309 = vmatpush.bf16.msra.mxu3 %v2083_v11  ;;  %v2062_v25 = vld [vmem:[#allocation2 + $0xc0] sm:$0xf]  ;;  %v2264_v11 = vld [vmem:[#allocation2 + $0x4c] sm:$0xf0] }
 0x3d8   : > { %1929 = vmatmul.msk.bf16.vlgmr.msra.gmra.mxu2 %vm750_vm2, %v878_v27  ;;  %v2278_v27 = vld [vmem:[#allocation2 + $0xc4] sm:$0xf] }
 0x3db   : > { %v2375_v28 = vpop.eup %2374 }
 0x3dc   : > { %v818_v29 = vmul.f32 %v2375_v28, %v2369_v14  ;;  %v824_v30 = vpop.permute.xlu2 %823  ;;  %v2088_v14 = vld [vmem:[#allocation2 + $0xf8] sm:$0xf0]  ;;  %v2063_v28 = vor.u32 %v2280_v26, %v2062_v25  ;;  %v2258_v25 = vld [vmem:[#allocation2 + $0x24] sm:$0xf] }
 0x3dd   : > { %v829_v31 = vsel %vm766_vm1, %v824_v30, 0  ;;  %v2091_v2 = vor.u32 %v2283_v13, %v2088_v14  ;;  %v2070_v30 = vld [vmem:[#allocation2 + $0xc8] sm:$0xf]  ;;  %v1999_v13 = vor.u32 %v2264_v11, %v1998_v10  ;;  %v2000_v14 = vld [vmem:[#allocation2 + $0x50] sm:$0xf0]  ;;  %v2314_v10 = vld [vmem:[#allocation4 + $0xe0] sm:$0xff] }
 0x3de   : > { %838 = vmatpush.bf16.msrb.mxu0 %v829_v31  ;;  %v819_v32 = vpack.c.bf16 %v818_v29, %v818_v29  ;;  %v2064_v29 = vld [vmem:[#allocation2 + $0xd0] sm:$0xf0]  ;;  %v2281_v31 = vld [vmem:[#allocation2 + $0xd4] sm:$0xf0]  ;;  %v2291_v11 = vld [vmem:[#allocation4 + $0x28] sm:$0xff] }
 0x3df   : > { %1335 = vmatpush.bf16.msra.mxu1 %v2091_v2  ;;  %v2006_v2 = vld [vmem:[#allocation2 + $0x48] sm:$0xf] }
 0x3e1   : > { %1927 = vmatmul.msk.bf16.vlgmr.msrb.gmra.mxu0 %vm750_vm2, %v819_v32  ;;  %v2067_v32 = vor.u32 %v2278_v27, %v2064_v29  ;;  %v1984_v27 = vld [vmem:[#allocation2 + $0x30] sm:$0xf0]  ;;  %v2261_v29 = vld [vmem:[#allocation2 + $0x34] sm:$0xf0] }
 0x3e3   : > { %1310 = vmatpush.bf16.msra.mxu3 %v2067_v32  ;;  %v2259_v32 = vld [vmem:[#allocation2 + $0x2c] sm:$0xf] }
 0x3e4   : > { %v931_v33 = vpop.xlane.xlu1 %930 }
 0x3e5   : > { %2376 = vrcp.f32 %v931_v33  ;;  %v2071_v33 = vor.u32 %v2281_v31, %v2070_v30  ;;  %v1987_v30 = vor.u32 %v2258_v25, %v1984_v27  ;;  %v2296_v25 = vld [vmem:[#allocation4 + $0x50] sm:$0xff]  ;;  %v2310_v27 = vld [vmem:[#allocation4 + $0xc0] sm:$0xff] }
 0x3e6   : > { %2378 = vrcp.f32 %v2477_v4  ;;  %v2022_v4 = vld [vmem:[#allocation2 + $0x68] sm:$0xf] }
 0x3eb   : > { %v2377_v34 = vpop.eup %2376 }
 0x3ec   : > { %v933_v35 = vmul.f32 %v2377_v34, %v2371_v19  ;;  %v2379_v15 = vpop.eup %2378  ;;  %v2279_v34 = vld [vmem:[#allocation2 + $0xcc] sm:$0xf] }
 0x3ed   : > { %v1059_v16 = vmul.f32 128.0, %v2379_v15  ;;  %vm1063_vm5 = vweird.f32 %v2379_v15 }
 0x3ee   : > { %v934_v38 = vpack.c.bf16 %v933_v35, %v933_v35  ;;  %v2072_v35 = vld [vmem:[#allocation2 + $0xd8] sm:$0xf0] }
 0x3ef   : > { %v1060_v17 = vsub.f32 1.0, %v1059_v16 }
 0x3f1   : > { %v1061_v18 = vmul.f32 %v2379_v15, %v1060_v17 }
 0x3f3   : > { %v1062_v19 = vadd.f32 %v2379_v15, %v1061_v18  ;;  %v2263_v18 = vld [vmem:[#allocation2 + $0x4c] sm:$0xf] }
 0x3f5   : > { %v2829_v20 = vsel %vm1063_vm5, %v2379_v15, %v1062_v19  ;;  %v2265_v15 = vld [vmem:[#allocation2 + $0x54] sm:$0xf0]  ;;  %v2008_v19 = vld [vmem:[#allocation2 + $0x58] sm:$0xf0] }
 0x3f6   : > { %v2007_v17 = vor.u32 %v2265_v15, %v2006_v2  ;;  %v2290_v2 = vld [vmem:[#allocation4 + $0x20] sm:$0xff] }
 0x3f7   : > { %v2298_v15 = vld [vmem:[#allocation4 + $0x60] sm:$0xff] }
 0x3fc   : > { %v936_v36 = vpop.permute.xlu1 %935 }
 0x3fd   : > { %v941_v37 = vsel %vm766_vm1, %v936_v36, 0  ;;  %v2075_v36 = vor.u32 %v2279_v34, %v2072_v35  ;;  %v1966_v34 = vld [vmem:[#allocation2] sm:$0xf] }
 0x3fe   : > { %950 = vmatpush.bf16.msra.mxu0 %v941_v37  ;;  %v2046_v37 = vld [vmem:[#allocation2 + $0xa0] sm:$0xf] }
 0x3ff   : > { %1336 = vmatpush.bf16.msra.mxu1 %v2075_v36  ;;  %v2256_v36 = vld [vmem:[#allocation2 + $0xc] sm:$0xf0] }
 0x401   : > { %1931 = vmatmul.msk.bf16.vlgmr.msra.gmra.mxu0 %vm750_vm2, %v934_v38  ;;  %v2276_v38 = vld [vmem:[#allocation2 + $0xac] sm:$0xf0] }
 0x402   : > { %1322 = vmatpush.bf16.msrb.mxu0 %v2087_v12  ;;  %v2262_v12 = vld [vmem:[#allocation2 + $0x44] sm:$0xf] }
 0x403   : > { %1337 = vmatpush.bf16.msra.mxu1 %v2059_v48  ;;  %v2003_v16 = vor.u32 %v2262_v12, %v2000_v14  ;;  %v2309_v48 = vld [vmem:[#allocation4 + $0xb8] sm:$0xff]  ;;  %v2299_v12 = vld [vmem:[#allocation4 + $0x68] sm:$0xff] }
 0x404   : > { %v2313_v14 = vld [vmem:[#allocation4 + $0xd8] sm:$0xff] }
 0x406   : > { %1323 = vmatpush.bf16.msrb.mxu0 %v2071_v33  ;;  %v1992_v33 = vld [vmem:[#allocation2 + $0x38] sm:$0xf0] }
 0x407   : > { %v1995_v35 = vor.u32 %v2259_v32, %v1992_v33  ;;  %v2294_v32 = vld [vmem:[#allocation4 + $0x40] sm:$0xff] }
 0x45b   : > { %v896_v39 = vpop.f32.mrf.mxu2 }
 0x45e   : > { %v840_v40 = vpop.f32.mrf.mxu0 }
 0x45f   : > { %957 = vrot.lane.b32.xlu2 %v840_v40, %s2476_s15  ;;  %v2047_v40 = vor.u32 %v2276_v38, %v2046_v37  ;;  %v2254_v37 = vld [vmem:[#allocation2 + $0x4] sm:$0xf]  ;;  %v1968_v38 = vld [vmem:[#allocation2 + $0x10] sm:$0xf0] }
 0x463   : > { %v898_v41 = vpop.f32.mrf.mxu2 }
 0x464   : > { %v2048_v41 = vld [vmem:[#allocation2 + $0xb0] sm:$0xf0] }
 0x466   : > { %v842_v42 = vpop.f32.mrf.mxu0 }
 0x467   : > { %961 = vrot.lane.b32.xlu2 %v896_v39, %s2474_s28  ;;  %v2274_v39 = vld [vmem:[#allocation2 + $0xa4] sm:$0xf]  ;;  %v2054_v42 = vld [vmem:[#allocation2 + $0xa8] sm:$0xf] }
 0x47e   : > { %v952_v43 = vpop.f32.mrf.mxu0 }
 0x47f   : > { %965 = vrot.lane.b32.xlu0 %v952_v43, %s2475_s30  ;;  %v2277_v43 = vld [vmem:[#allocation2 + $0xb4] sm:$0xf0] }
 0x480   : > { %v2055_v45 = vor.u32 %v2277_v43, %v2054_v42  ;;  %v2257_v42 = vld [vmem:[#allocation2 + $0x14] sm:$0xf0]  ;;  %v2255_v43 = vld [vmem:[#allocation2 + $0xc] sm:$0xf] }
 0x482   : > { %1324 = vmatpush.bf16.msrb.mxu0 %v2055_v45  ;;  %v1976_v45 = vld [vmem:[#allocation2 + $0x18] sm:$0xf0] }
 0x483   : > { %v1979_v46 = vor.u32 %v2255_v43, %v1976_v45 }
 0x486   : > { %v954_v44 = vpop.f32.mrf.mxu0 }
 0x487   : > { %v2051_v44 = vor.u32 %v2274_v39, %v2048_v41  ;;  %v1967_v39 = vor.u32 %v2256_v36, %v1966_v34  ;;  %v1974_v41 = vld [vmem:[#allocation2 + $0x8] sm:$0xf] }
 0x489   : > { %1311 = vmatpush.bf16.msra.mxu3 %v2051_v44  ;;  %v1975_v44 = vor.u32 %v2257_v42, %v1974_v41 }
 0x4b9   : > { %v958_v54 = vpop.permute.xlu2 %957 }
 0x4ba   : > { %v968_v56 = vsel %vm730_vm0, %v2779_v53, %v958_v54  ;;  %v2284_v53 = vld [vmem:[#allocation2 + $0xec] sm:$0xf0]  ;;  %v2032_v54 = vld [vmem:[#allocation2 + $0x90] sm:$0xf0] }
 0x4bb   : > { %v2079_v7 = vor.u32 %v2284_v53, %v2078_v5  ;;  %v2269_v5 = vld [vmem:[#allocation2 + $0x74] sm:$0xf0] }
 0x4bc   : > { %v2023_v6 = vor.u32 %v2269_v5, %v2022_v4  ;;  %v2293_v5 = vld [vmem:[#allocation4 + $0x38] sm:$0xff] }
 0x4bd   : > { %1296 = vmatpush.bf16.msrb.mxu2 %v2079_v7  ;;  %v2267_v7 = vld [vmem:[#allocation2 + $0x6c] sm:$0xf] }
 0x4be   : > { %v2027_v9 = vor.u32 %v2267_v7, %v2024_v8  ;;  %v2292_v7 = vld [vmem:[#allocation4 + $0x30] sm:$0xff] }
 0x4bf   : > { %v2300_v8 = vld [vmem:[#allocation4 + $0x70] sm:$0xff] }
 0x4c1   : > { %v962_v55 = vpop.permute.xlu2 %961  ;;  %1297 = vmatpush.bf16.msrb.mxu2 %v2063_v28  ;;  %v1990_v28 = vld [vmem:[#allocation2 + $0x28] sm:$0xf] }
 0x4c2   : > { %v970_v57 = vsel %vm969_vm3, %v968_v56, %v962_v55  ;;  %v2038_v55 = vld [vmem:[#allocation2 + $0x88] sm:$0xf]  ;;  %v2273_v56 = vld [vmem:[#allocation2 + $0x94] sm:$0xf0]  ;;  %v1991_v31 = vor.u32 %v2261_v29, %v1990_v28 }
 0x4c3   : > { %v2287_v28 = vld [vmem:[#allocation4 + $0x8] sm:$0xff] }
 0x4c4   : > { %v2295_v29 = vld [vmem:[#allocation4 + $0x48] sm:$0xff] }
 0x4c5   : > { %1298 = vmatpush.bf16.msrb.mxu2 %v2047_v40  ;;  %v1971_v40 = vor.u32 %v2254_v37, %v1968_v38 }
 0x4c9   : > { %1299 = vmatpush.bf16.msrb.mxu2 %v2031_v52  ;;  %v2316_v52 = vld [vmem:[#allocation4 + $0xf0] sm:$0xff] }
 0x4f1   : > { %v966_v58 = vpop.permute.xlu0 %965 }
 0x4f2   : > { %v972_v59 = vsel %vm971_vm4, %v970_v57, %v966_v58  ;;  %v2035_v57 = vor.u32 %v2270_v51, %v2032_v54  ;;  %v2039_v58 = vor.u32 %v2273_v56, %v2038_v55  ;;  %v2308_v51 = vld [vmem:[#allocation4 + $0xb0] sm:$0xff] }
 0x4f3   : > { %v973_v60 = vpack.c.bf16 %v972_v59, %v972_v59  ;;  %v2271_v59 = vld [vmem:[#allocation2 + $0x8c] sm:$0xf] }
 0x4f4   : > { %1312 = vmatpush.bf16.msra.mxu3 %v2035_v57  ;;  %1325 = vmatpush.bf16.msrb.mxu0 %v2039_v58 }
 0x4f5   : > { %1050 = vmatmul.bf16.vlgmr.msrb.gmra.mxu1 %v973_v60  ;;  %v2040_v60 = vld [vmem:[#allocation2 + $0x98] sm:$0xf0] }
 0x4f8   : > { %1326 = vmatpush.bf16.msrb.mxu0 %v2023_v6  ;;  %v2307_v6 = vld [vmem:[#allocation4 + $0xa8] sm:$0xff] }
 0x4fc   : > { %1327 = vmatpush.bf16.msrb.mxu0 %v2007_v17  ;;  %v2312_v17 = vld [vmem:[#allocation4 + $0xd0] sm:$0xff] }
 0x500   : > { %1328 = vmatpush.bf16.msrb.mxu0 %v1991_v31  ;;  %v2286_v31 = vld [vmem:[#allocation4] sm:$0xff] }
 0x504   : > { %1329 = vmatpush.bf16.msrb.mxu0 %v1975_v44 }
 0x508   : > { %1674 = vmatpush.bf16.msra.mxu0 %v2309_v48 }
 0x50c   : > { %1675 = vmatpush.bf16.msra.mxu0 %v2308_v51 }
 0x510   : > { %1676 = vmatpush.bf16.msra.mxu0 %v2307_v6 }
 0x572   : > { %v1051_v63 = vpop.f32.mrf.mxu1 }
 0x573   : > { %v1052_v0 = vadd.f32 %v2356_v61, %v1051_v63  ;;  %v2043_v61 = vor.u32 %v2271_v59, %v2040_v60  ;;  %v2268_v63 = vld [vmem:[#allocation2 + $0x6c] sm:$0xf0] }
 0x575   : > { %v1055_v1 = vadd.f32 %v1052_v0, %v513_v62  ;;  %v2014_v62 = vld [vmem:[#allocation2 + $0x60] sm:$0xf]  ;;  %v2266_v0 = vld [vmem:[#allocation2 + $0x64] sm:$0xf]  ;;  %1338 = vmatpush.bf16.msra.mxu1 %v2043_v61 }
 0x576   : > { %v2357_v61 = vld [vmem:[%s2877_s6] ss:$0 sm:$0xff] }
 0x577   : > { %1056 = vadd.xlane.f32.xlu2 %v1055_v1 }
 0x579   : > { %1339 = vmatpush.bf16.msra.mxu1 %v2027_v9  ;;  %v2306_v9 = vld [vmem:[#allocation4 + $0xa0] sm:$0xff] }
 0x57a   : > { %v1053_v3 = vpop.f32.mrf.mxu1  ;;  %1677 = vmatpush.bf16.msra.mxu0 %v2306_v9 }
 0x57b   : > { %v2016_v3 = vld [vmem:[#allocation2 + $0x70] sm:$0xf0] }
 0x57c   : > { %v2019_v53 = vor.u32 %v2266_v0, %v2016_v3  ;;  %v2358_v0 = vld [vmem:[%s2878_s7] ss:$0 sm:$0xff] }
 0x57e   : > { %1313 = vmatpush.bf16.msra.mxu3 %v2019_v53  ;;  %v2301_v53 = vld [vmem:[#allocation4 + $0x78] sm:$0xff] }
 0x582   : > { %1314 = vmatpush.bf16.msra.mxu3 %v2003_v16  ;;  %v2304_v16 = vld [vmem:[#allocation4 + $0x90] sm:$0xff] }
 0x586   : > { %1315 = vmatpush.bf16.msra.mxu3 %v1987_v30  ;;  %v1126_v30 = vld [vmem:[%s2880_s9] sm:$0xf] }
 0x587   : > { %v1130_v33 = vperm.slane %v1126_v30, 2  ;;  %v1131_v34 = vperm.slane %v1126_v30, 3 }
 0x58a   : > { %1316 = vmatpush.bf16.msra.mxu3 %v1971_v40  ;;  %v1129_v40 = vperm.slane %v1126_v30, 1 }
 0x58e   : > { %1661 = vmatpush.bf16.msrb.mxu3 %v2301_v53 }
 0x592   : > { %1662 = vmatpush.bf16.msrb.mxu3 %v2300_v8 }
 0x596   : > { %1663 = vmatpush.bf16.msrb.mxu3 %v2299_v12 }
 0x59a   : > { %1664 = vmatpush.bf16.msrb.mxu3 %v2298_v15 }
 0x5ea   : > { %v1057_v21 = vpop.xlane.xlu2 %1056 }
 0x5eb   : > { %v1065_v22 = vmul.f32 %v2829_v20, %v1057_v21  ;;  %v2011_v21 = vor.u32 %v2263_v18, %v2008_v19  ;;  %v2289_v18 = vld [vmem:[#allocation4 + $0x18] sm:$0xff] }
 0x5ec   : > { %v2297_v19 = vld [vmem:[#allocation4 + $0x58] sm:$0xff] }
 0x5ed   : > { %v2832_v23 = vsub.f32 %v1055_v1, %v1065_v22  ;;  %v2015_v1 = vor.u32 %v2268_v63, %v2014_v62  ;;  %v1982_v22 = vld [vmem:[#allocation2 + $0x20] sm:$0xf]  ;;  %1340 = vmatpush.bf16.msra.mxu1 %v2011_v21  ;;  %v2303_v21 = vld [vmem:[#allocation4 + $0x88] sm:$0xff]  ;;  %1665 = vmatpush.bf16.msrb.mxu3 %v2297_v19 }
 0x5ef   : > { %v1067_v24 = vmul.f32 %v2832_v23, %v2832_v23  ;;  %1300 = vmatpush.bf16.msrb.mxu2 %v2015_v1 }
 0x5f1   : > { %1068 = vadd.xlane.f32.xlu0 %v1067_v24  ;;  %v2260_v24 = vld [vmem:[#allocation2 + $0x2c] sm:$0xf0]  ;;  %1341 = vmatpush.bf16.msra.mxu1 %v1995_v35 }
 0x5f2   : > { %v1983_v26 = vor.u32 %v2260_v24, %v1982_v22  ;;  %v2311_v22 = vld [vmem:[#allocation4 + $0xc8] sm:$0xff]  ;;  %v2288_v24 = vld [vmem:[#allocation4 + $0x10] sm:$0xff]  ;;  %1666 = vmatpush.bf16.msrb.mxu3 %v2296_v25 }
 0x5f3   : > { %1301 = vmatpush.bf16.msrb.mxu2 %v1999_v13  ;;  %v2305_v13 = vld [vmem:[#allocation4 + $0x98] sm:$0xff] }
 0x5f4   : > { %1678 = vmatpush.bf16.msra.mxu0 %v2305_v13 }
 0x5f5   : > { %1342 = vmatpush.bf16.msra.mxu1 %v1979_v46 }
 0x5f6   : > { %1667 = vmatpush.bf16.msrb.mxu3 %v2295_v29 }
 0x5f7   : > { %1302 = vmatpush.bf16.msrb.mxu2 %v1983_v26  ;;  %v2302_v26 = vld [vmem:[#allocation4 + $0x80] sm:$0xff] }
 0x5f8   : > { %1679 = vmatpush.bf16.msra.mxu0 %v2304_v16 }
 0x5f9   : > { %1687 = vmatpush.bf16.msrb.mxu1 %v2317_v49 }
 0x5fa   : > { %1668 = vmatpush.bf16.msrb.mxu3 %v2294_v32 }
 0x5fb   : > { %1303 = vmatpush.bf16.msrb.mxu2 %v1967_v39  ;;  %v1128_v39 = vperm.slane %v1126_v30, 0  ;;  %v2359_v30 = vld [vmem:[%s2882_s11] ss:$0 sm:$0xff] }
 0x5fc   : > { %1680 = vmatpush.bf16.msra.mxu0 %v2303_v21 }
 0x5fd   : > { %1688 = vmatpush.bf16.msrb.mxu1 %v2316_v52 }
 0x5ff   : > { %1648 = vmatpush.bf16.msra.mxu2 %v2293_v5 }
 0x600   : > { %1681 = vmatpush.bf16.msra.mxu0 %v2302_v26 }
 0x603   : > { %1649 = vmatpush.bf16.msra.mxu2 %v2292_v7 }
 0x607   : > { %1650 = vmatpush.bf16.msra.mxu2 %v2291_v11 }
 0x60b   : > { %1651 = vmatpush.bf16.msra.mxu2 %v2290_v2 }
 0x60f   : > { %1652 = vmatpush.bf16.msra.mxu2 %v2289_v18 }
 0x613   : > { %1653 = vmatpush.bf16.msra.mxu2 %v2288_v24 }
 0x617   : > { %1654 = vmatpush.bf16.msra.mxu2 %v2287_v28 }
 0x61b   : > { %1655 = vmatpush.bf16.msra.mxu2 %v2286_v31 }
 0x664   : > { %v1069_v47 = vpop.xlane.xlu0 %1068 }
 0x665   : > { %v1070_v50 = vmul.f32 %v1069_v47, %v2829_v20 }
 0x667   : > { %v1071_v54 = vadd.f32 1e-05, %v1070_v50 }
 0x669   : > { %2380 = vrsqrt.f32 %v1071_v54  ;;  %vm1078_vm7 = vweird.f32 %v1071_v54 }
 0x66f   : > { %v2381_v55 = vpop.eup %2380 }
 0x670   : > { %v1073_v56 = vmul.f32 %v2381_v55, %v1071_v54  ;;  %vm1079_vm6 = vweird.f32 %v2381_v55 }
 0x671   : > { %vm1080_vm8 = vmor %vm1078_vm7, %vm1079_vm6 }
 0x672   : > { %v1074_v57 = vmul.f32 %v2381_v55, %v1073_v56 }
 0x674   : > { %v1075_v58 = vmul.f32 0.5, %v1074_v57 }
 0x676   : > { %v1076_v59 = vsub.f32 1.5, %v1075_v58 }
 0x678   : > { %v1077_v60 = vmul.f32 %v2381_v55, %v1076_v59 }
 0x67a   : > { %v1081_v62 = vsel %vm1080_vm8, %v2381_v55, %v1077_v60 }
 0x67b   : > { %v1082_v63 = vmul.f32 %v1081_v62, %v2832_v23  ;;  %v2315_v23 = vld [vmem:[#allocation4 + $0xe8] sm:$0xff] }
 0x67c   : > { %1689 = vmatpush.bf16.msrb.mxu1 %v2315_v23 }
 0x67d   : > { %v1087_v1 = vmul.f32 %v2357_v61, %v1082_v63 }
 0x67f   : > { %v2844_v3 = vadd.f32 %v2358_v0, %v1087_v1 }
 0x680   : > { %1690 = vmatpush.bf16.msrb.mxu1 %v2314_v10 }
 0x681   : > { %v1093_v4 = vpack.c.bf16 %v2844_v3, %v2844_v3 }
 0x683   : > { %1304 = vmatmul.bf16.vlgmr.msrb.gmra.mxu2 %v1093_v4  ;;  %1317 = vmatmul.bf16.vlgmr.msra.gmra.mxu3 %v1093_v4 }
 0x684   : > { %1330 = vmatmul.bf16.vlgmr.msrb.gmra.mxu0 %v1093_v4  ;;  %1343 = vmatmul.bf16.vlgmr.msra.gmra.mxu1 %v1093_v4 }
 0x685   : > { %1691 = vmatpush.bf16.msrb.mxu1 %v2313_v14 }
 0x689   : > { %1692 = vmatpush.bf16.msrb.mxu1 %v2312_v17 }
 0x68d   : > { %1693 = vmatpush.bf16.msrb.mxu1 %v2311_v22 }
 0x691   : > { %1694 = vmatpush.bf16.msrb.mxu1 %v2310_v27 }
 0x701   : > { %v1331_v35 = vpop.f32.mrf.mxu0  ;;  %v1344_v36 = vpop.f32.mrf.mxu1 }
 0x702   : > { %v1332_v37 = vadd.f32 %v1331_v35, %v1130_v33  ;;  %v1345_v38 = vadd.f32 %v1344_v36, %v1131_v34 }
 0x704   : > { %v1354_v41 = vmul.f32 0.044715, %v1332_v37  ;;  %v1355_v42 = vmul.f32 0.044715, %v1345_v38  ;;  %v1350_v8 = vmul.f32 0.5, %v1332_v37  ;;  %v1351_v10 = vmul.f32 0.5, %v1345_v38 }
 0x706   : > { %v1358_v43 = vmul.f32 %v1354_v41, %v1332_v37  ;;  %v1359_v44 = vmul.f32 %v1355_v42, %v1345_v38  ;;  %v1305_v45 = vpop.f32.mrf.mxu2  ;;  %v1318_v46 = vpop.f32.mrf.mxu3 }
 0x707   : > { %v1306_v47 = vadd.f32 %v1305_v45, %v1128_v39  ;;  %v1319_v48 = vadd.f32 %v1318_v46, %v1129_v40 }
 0x708   : > { %v1362_v49 = vmul.f32 %v1358_v43, %v1332_v37  ;;  %v1363_v50 = vmul.f32 %v1359_v44, %v1345_v38 }
 0x709   : > { %v1352_v51 = vmul.f32 0.044715, %v1306_v47  ;;  %v1353_v52 = vmul.f32 0.044715, %v1319_v48  ;;  %v1333_v54 = vpop.f32.mrf.mxu0  ;;  %v1346_v55 = vpop.f32.mrf.mxu1  ;;  %v1348_v17 = vmul.f32 0.5, %v1306_v47  ;;  %v1349_v19 = vmul.f32 0.5, %v1319_v48 }
 0x70a   : > { %v1366_v56 = vadd.f32 %v1362_v49, %v1332_v37  ;;  %v1367_v57 = vadd.f32 %v1363_v50, %v1345_v38  ;;  %v2360_v54 = vld [vmem:[%s2883_s12] ss:$0 sm:$0xff] }
 0x70b   : > { %v1356_v58 = vmul.f32 %v1352_v51, %v1306_v47  ;;  %v1357_v59 = vmul.f32 %v1353_v52, %v1319_v48 }
 0x70c   : > { %v1370_v60 = vmul.f32 0.7978846, %v1366_v56  ;;  %v1371_v61 = vmul.f32 0.7978846, %v1367_v57 }
 0x70d   : > { %v1360_v62 = vmul.f32 %v1356_v58, %v1306_v47  ;;  %v1361_v63 = vmul.f32 %v1357_v59, %v1319_v48 }
 0x70e   : > { %v1307_v0 = vpop.f32.mrf.mxu2  ;;  %v1320_v1 = vpop.f32.mrf.mxu3  ;;  %2382 = vtanh.f32 %v1370_v60 }
 0x70f   : > { %2384 = vtanh.f32 %v1371_v61  ;;  %v1364_v4 = vadd.f32 %v1360_v62, %v1306_v47  ;;  %v1365_v5 = vadd.f32 %v1361_v63, %v1319_v48 }
 0x711   : > { %v1368_v53 = vmul.f32 0.7978846, %v1364_v4  ;;  %v1369_v6 = vmul.f32 0.7978846, %v1365_v5 }
 0x713   : > { %2386 = vtanh.f32 %v1368_v53 }
 0x714   : > { %v2383_v23 = vpop.eup %2382  ;;  %2388 = vtanh.f32 %v1369_v6 }
 0x715   : > { %v2385_v7 = vpop.eup %2384  ;;  %v1378_v9 = vadd.f32 1.0, %v2383_v23 }
 0x716   : > { %v1379_v11 = vadd.f32 1.0, %v2385_v7 }
 0x717   : > { %v1382_v12 = vmul.f32 %v1378_v9, %v1350_v8 }
 0x718   : > { %v1383_v13 = vmul.f32 %v1379_v11, %v1351_v10 }
 0x719   : > { %v2387_v14 = vpop.eup %2386  ;;  %v1386_v2 = vpack.c.bf16 %v1382_v12, %v1382_v12 }
 0x71a   : > { %v2389_v15 = vpop.eup %2388  ;;  %v1387_v16 = vpack.c.bf16 %v1383_v13, %v1383_v13  ;;  %v1376_v18 = vadd.f32 1.0, %v2387_v14 }
 0x71b   : > { %1682 = vmatmul.bf16.vlgmr.msra.gmra.mxu0 %v1386_v2  ;;  %v1377_v21 = vadd.f32 1.0, %v2389_v15 }
 0x71c   : > { %1695 = vmatmul.bf16.vlgmr.msrb.gmra.mxu1 %v1387_v16  ;;  %v1380_v22 = vmul.f32 %v1376_v18, %v1348_v17 }
 0x71d   : > { %v1381_v24 = vmul.f32 %v1377_v21, %v1349_v19 }
 0x71e   : > { %v1384_v25 = vpack.c.bf16 %v1380_v22, %v1380_v22 }
 0x71f   : > { %v1385_v26 = vpack.c.bf16 %v1381_v24, %v1381_v24 }
 0x720   : > { %1656 = vmatmul.bf16.vlgmr.msra.gmra.mxu2 %v1384_v25 }
 0x721   : > { %1669 = vmatmul.bf16.vlgmr.msrb.gmra.mxu3 %v1385_v26 }
 0x798   : > { %v1683_v27 = vpop.f32.mrf.mxu0 }
 0x799   : > { %v1696_v28 = vpop.f32.mrf.mxu1 }
 0x7a0   : > { %v1685_v29 = vpop.f32.mrf.mxu0 }
 0x7a1   : > { %v1698_v31 = vpop.f32.mrf.mxu1 }
 0x7a3   : > { %v1657_v32 = vpop.f32.mrf.mxu2 }
 0x7a4   : > { %v1658_v33 = vadd.f32 %v2359_v30, %v1657_v32  ;;  %v1670_v34 = vpop.f32.mrf.mxu3 }
 0x7a6   : > { %v1671_v35 = vadd.f32 %v1670_v34, %v1658_v33 }
 0x7a8   : > { %v1684_v36 = vadd.f32 %v1683_v27, %v1671_v35 }
 0x7aa   : > { %v1697_v37 = vadd.f32 %v1696_v28, %v1684_v36 }
 0x7ab   : > { %v1659_v38 = vpop.f32.mrf.mxu2 }
 0x7ac   : > { %v1672_v39 = vpop.f32.mrf.mxu3  ;;  %v1700_v40 = vadd.f32 %v1697_v37, %v2844_v3 }
 0x7ae   : > { %1701 = vadd.xlane.f32.xlu1 %v1700_v40 }
 0x821   : > { %v1702_v41 = vpop.xlane.xlu1 %1701 }
 0x822   : > { %v1703_v42 = vmul.f32 %v1702_v41, %v2829_v20 }
 0x824   : > { %v1704_v43 = vsub.f32 %v1700_v40, %v1703_v42 }
 0x826   : > { %v1705_v44 = vmul.f32 %v1704_v43, %v1704_v43 }
 0x828   : > { %1706 = vadd.xlane.f32.xlu2 %v1705_v44 }
 0x89b   : > { %v1707_v45 = vpop.xlane.xlu2 %1706 }
 0x89c   : > { %v1708_v46 = vmul.f32 %v1707_v45, %v2829_v20  ;;  %v2361_v20 = vld [vmem:[%s2884_s13] ss:$0 sm:$0xff] }
 0x89e   : > { %v1709_v47 = vadd.f32 1e-05, %v1708_v46 }
 0x8a0   : > { %2390 = vrsqrt.f32 %v1709_v47  ;;  %vm1716_vm10 = vweird.f32 %v1709_v47 }
 0x8a6   : > { %v2391_v48 = vpop.eup %2390 }
 0x8a7   : > { %v1711_v49 = vmul.f32 %v2391_v48, %v1709_v47  ;;  %vm1717_vm9 = vweird.f32 %v2391_v48 }
 0x8a8   : > { %vm1718_vm11 = vmor %vm1716_vm10, %vm1717_vm9 }
 0x8a9   : > { %v1712_v50 = vmul.f32 %v2391_v48, %v1711_v49 }
 0x8ab   : > { %v1713_v51 = vmul.f32 0.5, %v1712_v50 }
 0x8ad   : > { %v1714_v52 = vsub.f32 1.5, %v1713_v51 }
 0x8af   : > { %v1715_v3 = vmul.f32 %v2391_v48, %v1714_v52 }
 0x8b1   : > { %v1719_v55 = vsel %vm1718_vm11, %v2391_v48, %v1715_v3 }
 0x8b2   : > { %v1720_v56 = vmul.f32 %v1719_v55, %v1704_v43 }
 0x8b4   : > { %v1725_v57 = vmul.f32 %v2360_v54, %v1720_v56 }
 0x8b6   : > { %v1730_v58 = vadd.f32 %v2361_v20, %v1725_v57 }
 0x8b8   : > { %v1731_v59 = vpack.c.bf16 %v1730_v58, %v1730_v58 }
 0x8ba   : > { %1732 = vst [vmem:[%s510_s25] sm:$0xf] %v1731_v59 }
 0x8bb PF: > { %s26_s29 = sadd.s32 1, %s2466_s29  }
 0x8bc   : > { %p23_p7 = scmp.ge.s32.totalorder %s26_s29, 4  }
 0x8be   :  { %25 = sbr.rel (!%p23_p7) target bundleno = 2 (0x2), region = 118 }
 0x8c3   :  { %1752 = vsyncpa [#allocation3], 1 }
 0x8c4   :  { %1754 = vsyncpa [#allocation3 + $0x1], 1 }
 0x8c5   :  { %1755 = vsyncpa [#allocation5], 1 }

</bundles_post_ra>
